<compile_context>
chip_gen: v5e
topology: v5e:2x2
jax: 0.10.0
libtpu: 0.0.40
codegen_flags: <defaults>
</compile_context>

<pallas_src>
import functools
import math

import numpy as np
import jax
import jax.numpy as jnp
from jax import lax
from jax.experimental import pallas as pl
from jax.experimental.pallas import tpu as pltpu


# ---------------------------------------------------------------------------
# Pallas kernel: one grid step == one block of `bb` batch elements
# ---------------------------------------------------------------------------
def _la_kernel(x_ref, ctx_ref, wq_ref, wk_ref, wv_ref, out_ref, *,
               bb, t, c, h, w, heads, dph, k_size, norm):
    f32 = jnp.float32
    wc = w * c
    inv_hw = 1.0 / (h * w)
    pad = (k_size - 1) // 2

    # border masks for the depthwise 3x3 conv (hoisted, reused by every tap)
    lane_pos = lax.broadcasted_iota(jnp.int32, (1, wc), 1)
    row_pos = lax.broadcasted_iota(jnp.int32, (h, 1), 0)
    maskx = {1: (lane_pos < (w - 1) * c).astype(f32),
             -1: (lane_pos >= c).astype(f32)}
    masky = {1: (row_pos < (h - 1)).astype(f32),
             -1: (row_pos >= 1).astype(f32)}

    def conv1d_lanes(sig, w_smem):
        # PyTorch Conv1d(1,1,k, padding=(k-1)//2, bias=False) along the lane axis.
        r, cc = sig.shape
        out = jnp.zeros_like(sig)
        for j in range(k_size):
            off = j - pad
            if off == 0:
                sh = sig
            elif off > 0:
                sh = jnp.concatenate([sig[:, off:], jnp.zeros((r, off), sig.dtype)], axis=1)
            else:
                sh = jnp.concatenate([jnp.zeros((r, -off), sig.dtype), sig[:, :cc + off]], axis=1)
            out = out + w_smem[0, j] * sh
        return out

    def sum_x_blocks(v):
        # (rows, w*c) -> (rows, c): sum the w lane-blocks (spatial x reduction).
        acc = v[:, 0:c]
        for xx in range(1, w):
            acc = acc + v[:, xx * c:(xx + 1) * c]
        return acc

    for bi in range(bb):
        x_b = x_ref[bi]                # (h, wc)
        ctx_b = ctx_ref[bi]            # (t, h, wc)   permuted-channel layout

        # ---- Q path: GAP(x) + conv1d (channel order of Q is unchanged) ----
        q_gap = sum_x_blocks(jnp.sum(x_b, axis=0, keepdims=True)) * inv_hw    # (1, c)
        q_c = conv1d_lanes(q_gap, wq_ref)                                     # (1, c)

        # ---- K path: GAP(ctx_perm) -> un-permute -> conv1d -> re-permute ----
        gp_rows = [jnp.sum(ctx_b[tp], axis=0, keepdims=True) for tp in range(t)]
        gap_perm = sum_x_blocks(jnp.concatenate(gp_rows, axis=0)) * inv_hw    # (t, c)

        # un-permute dph-sized lane blocks back to the original (t_orig, c_orig) layout
        orig_rows = []
        for to in range(t):
            pieces = []
            for ho in range(heads):
                j = to * heads + ho
                tpp, gg = j % t, j // t
                pieces.append(gap_perm[tpp:tpp + 1, gg * dph:(gg + 1) * dph])
            orig_rows.append(jnp.concatenate(pieces, axis=1))
        gap_orig = jnp.concatenate(orig_rows, axis=0)                          # (t, c)

        k_orig = conv1d_lanes(gap_orig, wk_ref)                                # (t, c)

        # re-permute into the (t', out-channel) layout used by the V path
        perm_rows = []
        for tp in range(t):
            pieces = []
            for gg in range(heads):
                j = gg * t + tp
                to, ho = j // heads, j % heads
                pieces.append(k_orig[to:to + 1, ho * dph:(ho + 1) * dph])
            perm_rows.append(jnp.concatenate(pieces, axis=1))
        k_perm = jnp.concatenate(perm_rows, axis=0)                            # (t, c)

        # ---- attention: per-head dot over dph lanes + softmax over t (VPU/XLU only) ----
        qk = q_c * k_perm                                                      # (t, c)
        blocks = []
        for gg in range(heads):
            s = jnp.sum(qk[:, gg * dph:(gg + 1) * dph], axis=1, keepdims=True) * norm  # (t, 1)
            mx = jnp.max(s, axis=0, keepdims=True)
            e = jnp.exp(s - mx)
            a = e / jnp.sum(e, axis=0, keepdims=True)                          # softmax over t
            blocks.append(jnp.broadcast_to(a, (t, dph)))
        coef = jnp.concatenate(blocks, axis=1)                                 # (t, c): attn[ch//dph, t']
        coef_wc = jnp.concatenate([coef] * w, axis=1)                          # (t, wc)

        # ---- depthwise 3x3 conv fused with the attention-weighted sum over t ----
        out_acc = jnp.zeros((h, wc), f32)
        for tp in range(t):
            a = ctx_b[tp]                                                      # (h, wc)
            # hoisted x-shifts (roll by +/- c lanes, circular; borders masked below)
            ax = {0: a,
                  1: pltpu.roll(a, shift=(wc - c) % wc, axis=1),
                  -1: pltpu.roll(a, shift=c, axis=1)}
            coef_row = coef_wc[tp:tp + 1, :]                                   # (1, wc)
            for ky in range(3):
                for kx in range(3):
                    dy, dx = ky - 1, kx - 1
                    wrow = wv_ref[ky * 3 + kx][tp:tp + 1, :] * coef_row        # (1, wc)
                    if dx != 0:
                        wrow = wrow * maskx[dx]
                    sh = ax[dx]
                    if dy != 0:
                        sh = pltpu.roll(sh, shift=(-dy) % h, axis=0)
                    contrib = wrow * sh
                    if dy != 0:
                        contrib = contrib * masky[dy]
                    out_acc = out_acc + contrib
        out_ref[bi] = out_acc.astype(out_ref.dtype)


# ---------------------------------------------------------------------------
# host wrapper (layout glue: transposes + static channel permutation of ctx/Wv)
# ---------------------------------------------------------------------------
def _pick_batch_block(b):
    # keep >= 2 grid steps when possible (feeds both v7x TensorCores), otherwise
    # pack several batch elements per step to amortize per-step overhead.
    if b <= 2:
        return 1
    for bb in range(b // 2, 0, -1):
        if b % bb == 0:
            return bb
    return 1


def la_layer_pallas(x, ctx, wq, wk, wv, heads):
    b, c, h, w = x.shape
    t = ctx.shape[1]
    dph = c // heads
    k_size = wq.shape[-1]
    norm = 1.0 / math.sqrt(dph)
    wc = w * c

    # static permutation: output position (t', ch) <- flat original index m over (t, c)
    p_t = np.repeat(np.arange(t), c)                       # t' for flat position p = t'*c + ch
    p_ch = np.tile(np.arange(c), t)                        # ch
    m_of_p = (p_ch // dph) * (t * dph) + p_t * dph + (p_ch % dph)
    csrc_of_p = m_of_p % c                                 # original channel feeding (t', ch)

    # lane-dense inputs
    x_le = jnp.transpose(x, (0, 2, 3, 1)).reshape(b, h, wc).astype(jnp.float32)
    ctx_perm = ctx.reshape(b, t * c, h, w)[:, m_of_p].reshape(b, t, c, h, w)
    ctx_le = jnp.transpose(ctx_perm, (0, 1, 3, 4, 2)).reshape(b, t, h, wc).astype(jnp.float32)

    # conv weights: 1d taps to SMEM scalars, depthwise taps permuted + lane-tiled
    wq2 = wq.reshape(1, k_size).astype(jnp.float32)
    wk2 = wk.reshape(1, k_size).astype(jnp.float32)
    wv_flat = wv.reshape(c, 9).astype(jnp.float32)                       # (c, 9), tap = ky*3+kx
    wv_perm = jnp.transpose(wv_flat[csrc_of_p].reshape(t, c, 9), (2, 0, 1))   # (9, t, c)
    wv_lane = jnp.tile(wv_perm, (1, 1, w))                               # (9, t, w*c)

    bb = _pick_batch_block(b)
    grid = (b // bb,)

    kernel = functools.partial(_la_kernel, bb=bb, t=t, c=c, h=h, w=w,
                               heads=heads, dph=dph, k_size=k_size, norm=norm)

    out_le = pl.pallas_call(
        kernel,
        out_shape=jax.ShapeDtypeStruct((b, h, wc), jnp.float32),
        grid=grid,
        in_specs=[
            pl.BlockSpec((bb, h, wc), lambda i: (i, 0, 0)),
            pl.BlockSpec((bb, t, h, wc), lambda i: (i, 0, 0, 0)),
            pl.BlockSpec(memory_space=pltpu.MemorySpace.SMEM),   # wq taps (scalars)
            pl.BlockSpec(memory_space=pltpu.MemorySpace.SMEM),   # wk taps (scalars)
            pl.BlockSpec((9, t, wc), lambda i: (0, 0, 0)),       # permuted depthwise taps
        ],
        out_specs=pl.BlockSpec((bb, h, wc), lambda i: (i, 0, 0)),
        compiler_params=pltpu.CompilerParams(dimension_semantics=("parallel",)),
    )(x_le, ctx_le, wq2, wk2, wv_lane)

    return jnp.transpose(out_le.reshape(b, h, w, c), (0, 3, 1, 2))       # (b, c, h, w)


# ---------------------------------------------------------------------------
# pure-JAX reference (mirrors the PyTorch forward exactly, incl. the .view()s)
# ---------------------------------------------------------------------------
def la_layer_ref(x, ctx, wq, wk, wv, heads):
    b, c, h, w = x.shape
    t = ctx.shape[1]
    dph = c // heads
    k_size = wq.shape[-1]
    pad = (k_size - 1) // 2
    norm = 1.0 / math.sqrt(dph)
    hi = lax.Precision.HIGHEST

    def conv1d(sig, wvec):
        sp = jnp.pad(sig, [(0, 0)] * (sig.ndim - 1) + [(pad, pad)])
        out = jnp.zeros_like(sig)
        for j in range(k_size):
            out = out + wvec[j] * lax.slice_in_dim(sp, j, j + sig.shape[-1], axis=-1)
        return out

    q = jnp.mean(x, axis=(2, 3))[:, None, :]
    kk = jnp.mean(ctx, axis=(3, 4)).reshape(b * t, 1, c)
    Q = conv1d(q, wq.reshape(-1))
    K = conv1d(kk, wk.reshape(-1)).reshape(b, t, c)

    v = ctx.reshape(b * t, c, h, w)
    vp = jnp.pad(v, ((0, 0), (0, 0), (1, 1), (1, 1)))
    V = jnp.zeros_like(v)
    for ky in range(3):
        for kx in range(3):
            V = V + wv[:, 0, ky, kx][None, :, None, None] * vp[:, :, ky:ky + h, kx:kx + w]
    V = V.reshape(b, t, c, h, w)

    Qh = Q.reshape(b, heads, 1, dph)
    Kh = K.reshape(b, heads, t, dph)
    Vh = V.reshape(b, heads, t, dph, h, w)
    attn = jnp.einsum('bgid,bgtd->bgit', Qh, Kh, precision=hi) * norm
    attn = jax.nn.softmax(attn, axis=-1)
    out = jnp.einsum('bgit,bgtdhw->bgidhw', attn, Vh, precision=hi)
    return out.reshape(b, c, h, w)


# ---------------------------------------------------------------------------
if __name__ == "__main__":
    b, c, h, w = 2, 32, 8, 16
    layer_idx = 3                       # t: number of context layers
    dim_perhead = 8
    heads = c // dim_perhead            # 4
    s = int(abs((math.log(c, 2) + 1) / 2.0))
    k_size = s if s % 2 else s + 1      # 3 for c=32 (matches the module's __init__)

    key = jax.random.PRNGKey(0)
    kx, kc, kq, kk_, kv = jax.random.split(key, 5)
    x = jax.random.normal(kx, (b, c, h, w), jnp.float32)
    ctx = jax.random.normal(kc, (b, layer_idx, c, h, w), jnp.float32)
    wq = jax.random.normal(kq, (1, 1, k_size), jnp.float32) * 0.5     # Conv1d weight
    wk = jax.random.normal(kk_, (1, 1, k_size), jnp.float32) * 0.5    # Conv1d weight
    wv = jax.random.normal(kv, (c, 1, 3, 3), jnp.float32) * 0.3       # depthwise Conv2d weight

    out = jax.block_until_ready(la_layer_pallas(x, ctx, wq, wk, wv, heads))
    ref = jax.block_until_ready(la_layer_ref(x, ctx, wq, wk, wv, heads))
    assert out.shape == (b, c, h, w)
    if not jnp.allclose(out, ref, rtol=1e-3, atol=1e-3):
        max_err = float(jnp.max(jnp.abs(out - ref)))
        raise AssertionError(f"Pallas output mismatch vs reference, max abs err={max_err}")
    print("KERNEL_OK")
</pallas_src>

<mosaic_0001>
module attributes {stable_mosaic.version = 11 : i64} {
  func.func @_la_kernel(%arg0: i32, %arg1: memref<1x8x512xf32, #tpu.memory_space<vmem>>, %arg2: memref<1x3x8x512xf32, #tpu.memory_space<vmem>>, %arg3: memref<1x3xf32, #tpu.memory_space<smem>>, %arg4: memref<1x3xf32, #tpu.memory_space<smem>>, %arg5: memref<9x3x512xf32, #tpu.memory_space<vmem>>, %arg6: memref<1x8x512xf32, #tpu.memory_space<vmem>>) attributes {dimension_semantics = [#tpu.dimension_semantics<parallel>], iteration_bounds = array<i64: 2>, scalar_prefetch = 0 : i64, scratch_operands = 0 : i64, tpu.core_type = #tpu.core_type<tc>, window_params = [{transform_indices = @transform_0, window_bounds = array<i64: 1, 8, 512>}, {transform_indices = @transform_1, window_bounds = array<i64: 1, 3, 8, 512>}, {transform_indices = @transform_2, window_bounds = array<i64: 1, 3>}, {transform_indices = @transform_3, window_bounds = array<i64: 1, 3>}, {pipeline_mode = #tpu.pipeline_mode<synchronous>, transform_indices = @transform_4, window_bounds = array<i64: 9, 3, 512>}, {transform_indices = @transform_5, window_bounds = array<i64: 1, 8, 512>}]} {
    %0 = tpu.iota {dimensions = array<i32: 1>} : vector<1x512xi32>
    %1 = tpu.iota {dimensions = array<i32: 0>} : vector<8x1xi32>
    %c480_i32 = arith.constant 480 : i32
    %2 = vector.broadcast %c480_i32 : i32 to vector<1x512xi32>
    %3 = arith.cmpi slt, %0, %2 : vector<1x512xi32>
    %4 = arith.extui %3 : vector<1x512xi1> to vector<1x512xi32>
    %5 = arith.sitofp %4 : vector<1x512xi32> to vector<1x512xf32>
    %c32_i32 = arith.constant 32 : i32
    %6 = vector.broadcast %c32_i32 : i32 to vector<1x512xi32>
    %7 = arith.cmpi sge, %0, %6 : vector<1x512xi32>
    %8 = arith.extui %7 : vector<1x512xi1> to vector<1x512xi32>
    %9 = arith.sitofp %8 : vector<1x512xi32> to vector<1x512xf32>
    %c7_i32 = arith.constant 7 : i32
    %10 = vector.broadcast %c7_i32 : i32 to vector<8x1xi32>
    %11 = arith.cmpi slt, %1, %10 : vector<8x1xi32>
    %12 = arith.extui %11 : vector<8x1xi1> to vector<8x1xi32>
    %13 = arith.sitofp %12 : vector<8x1xi32> to vector<8x1xf32>
    %c1_i32 = arith.constant 1 : i32
    %14 = vector.broadcast %c1_i32 : i32 to vector<8x1xi32>
    %15 = arith.cmpi sge, %1, %14 : vector<8x1xi32>
    %16 = arith.extui %15 : vector<8x1xi1> to vector<8x1xi32>
    %17 = arith.sitofp %16 : vector<8x1xi32> to vector<8x1xf32>
    %c0 = arith.constant 0 : index
    %c0_0 = arith.constant 0 : index
    %c0_1 = arith.constant 0 : index
    %18 = vector.load %arg1[%c0, %c0_0, %c0_1] : memref<1x8x512xf32, #tpu.memory_space<vmem>>, vector<1x8x512xf32>
    %19 = vector.shape_cast %18 : vector<1x8x512xf32> to vector<8x512xf32>
    %c0_2 = arith.constant 0 : index
    %c0_3 = arith.constant 0 : index
    %c0_4 = arith.constant 0 : index
    %c0_5 = arith.constant 0 : index
    %20 = vector.load %arg2[%c0_2, %c0_3, %c0_4, %c0_5] : memref<1x3x8x512xf32, #tpu.memory_space<vmem>>, vector<1x3x8x512xf32>
    %21 = vector.shape_cast %20 : vector<1x3x8x512xf32> to vector<3x8x512xf32>
    %cst = arith.constant dense<0.000000e+00> : vector<512xf32>
    %22 = vector.multi_reduction <add>, %19, %cst [0] : vector<8x512xf32> to vector<512xf32>
    %23 = vector.shape_cast %22 : vector<512xf32> to vector<1x512xf32>
    %24 = vector.extract_strided_slice %23 {offsets = [0, 0], sizes = [1, 32], strides = [1, 1]} : vector<1x512xf32> to vector<1x32xf32>
    %25 = vector.extract_strided_slice %23 {offsets = [0, 32], sizes = [1, 32], strides = [1, 1]} : vector<1x512xf32> to vector<1x32xf32>
    %26 = arith.addf %24, %25 : vector<1x32xf32>
    %27 = vector.extract_strided_slice %23 {offsets = [0, 64], sizes = [1, 32], strides = [1, 1]} : vector<1x512xf32> to vector<1x32xf32>
    %28 = arith.addf %26, %27 : vector<1x32xf32>
    %29 = vector.extract_strided_slice %23 {offsets = [0, 96], sizes = [1, 32], strides = [1, 1]} : vector<1x512xf32> to vector<1x32xf32>
    %30 = arith.addf %28, %29 : vector<1x32xf32>
    %31 = vector.extract_strided_slice %23 {offsets = [0, 128], sizes = [1, 32], strides = [1, 1]} : vector<1x512xf32> to vector<1x32xf32>
    %32 = arith.addf %30, %31 : vector<1x32xf32>
    %33 = vector.extract_strided_slice %23 {offsets = [0, 160], sizes = [1, 32], strides = [1, 1]} : vector<1x512xf32> to vector<1x32xf32>
    %34 = arith.addf %32, %33 : vector<1x32xf32>
    %35 = vector.extract_strided_slice %23 {offsets = [0, 192], sizes = [1, 32], strides = [1, 1]} : vector<1x512xf32> to vector<1x32xf32>
    %36 = arith.addf %34, %35 : vector<1x32xf32>
    %37 = vector.extract_strided_slice %23 {offsets = [0, 224], sizes = [1, 32], strides = [1, 1]} : vector<1x512xf32> to vector<1x32xf32>
    %38 = arith.addf %36, %37 : vector<1x32xf32>
    %39 = vector.extract_strided_slice %23 {offsets = [0, 256], sizes = [1, 32], strides = [1, 1]} : vector<1x512xf32> to vector<1x32xf32>
    %40 = arith.addf %38, %39 : vector<1x32xf32>
    %41 = vector.extract_strided_slice %23 {offsets = [0, 288], sizes = [1, 32], strides = [1, 1]} : vector<1x512xf32> to vector<1x32xf32>
    %42 = arith.addf %40, %41 : vector<1x32xf32>
    %43 = vector.extract_strided_slice %23 {offsets = [0, 320], sizes = [1, 32], strides = [1, 1]} : vector<1x512xf32> to vector<1x32xf32>
    %44 = arith.addf %42, %43 : vector<1x32xf32>
    %45 = vector.extract_strided_slice %23 {offsets = [0, 352], sizes = [1, 32], strides = [1, 1]} : vector<1x512xf32> to vector<1x32xf32>
    %46 = arith.addf %44, %45 : vector<1x32xf32>
    %47 = vector.extract_strided_slice %23 {offsets = [0, 384], sizes = [1, 32], strides = [1, 1]} : vector<1x512xf32> to vector<1x32xf32>
    %48 = arith.addf %46, %47 : vector<1x32xf32>
    %49 = vector.extract_strided_slice %23 {offsets = [0, 416], sizes = [1, 32], strides = [1, 1]} : vector<1x512xf32> to vector<1x32xf32>
    %50 = arith.addf %48, %49 : vector<1x32xf32>
    %51 = vector.extract_strided_slice %23 {offsets = [0, 448], sizes = [1, 32], strides = [1, 1]} : vector<1x512xf32> to vector<1x32xf32>
    %52 = arith.addf %50, %51 : vector<1x32xf32>
    %53 = vector.extract_strided_slice %23 {offsets = [0, 480], sizes = [1, 32], strides = [1, 1]} : vector<1x512xf32> to vector<1x32xf32>
    %54 = arith.addf %52, %53 : vector<1x32xf32>
    %cst_6 = arith.constant 7.812500e-03 : f32
    %55 = vector.broadcast %cst_6 : f32 to vector<1x32xf32>
    %56 = arith.mulf %54, %55 : vector<1x32xf32>
    %cst_7 = arith.constant 0.000000e+00 : f32
    %57 = vector.broadcast %cst_7 : f32 to vector<1x32xf32>
    %cst_8 = arith.constant 0.000000e+00 : f32
    %58 = vector.broadcast %cst_8 : f32 to vector<1x1xf32>
    %59 = vector.extract_strided_slice %56 {offsets = [0, 0], sizes = [1, 31], strides = [1, 1]} : vector<1x32xf32> to vector<1x31xf32>
    %60 = tpu.concatenate %58, %59 in 1 : vector<1x1xf32>, vector<1x31xf32> -> vector<1x32xf32>
    %c0_9 = arith.constant 0 : index
    %c0_10 = arith.constant 0 : index
    %61 = memref.load %arg3[%c0_9, %c0_10] : memref<1x3xf32, #tpu.memory_space<smem>>
    %62 = vector.broadcast %61 : f32 to vector<1x32xf32>
    %63 = arith.mulf %62, %60 : vector<1x32xf32>
    %64 = arith.addf %57, %63 : vector<1x32xf32>
    %c0_11 = arith.constant 0 : index
    %c1 = arith.constant 1 : index
    %65 = memref.load %arg3[%c0_11, %c1] : memref<1x3xf32, #tpu.memory_space<smem>>
    %66 = vector.broadcast %65 : f32 to vector<1x32xf32>
    %67 = arith.mulf %66, %56 : vector<1x32xf32>
    %68 = arith.addf %64, %67 : vector<1x32xf32>
    %69 = vector.extract_strided_slice %56 {offsets = [0, 1], sizes = [1, 31], strides = [1, 1]} : vector<1x32xf32> to vector<1x31xf32>
    %cst_12 = arith.constant 0.000000e+00 : f32
    %70 = vector.broadcast %cst_12 : f32 to vector<1x1xf32>
    %71 = tpu.concatenate %69, %70 in 1 : vector<1x31xf32>, vector<1x1xf32> -> vector<1x32xf32>
    %c0_13 = arith.constant 0 : index
    %c2 = arith.constant 2 : index
    %72 = memref.load %arg3[%c0_13, %c2] : memref<1x3xf32, #tpu.memory_space<smem>>
    %73 = vector.broadcast %72 : f32 to vector<1x32xf32>
    %74 = arith.mulf %73, %71 : vector<1x32xf32>
    %75 = arith.addf %68, %74 : vector<1x32xf32>
    %76 = vector.extract_strided_slice %21 {offsets = [0, 0, 0], sizes = [1, 8, 512], strides = [1, 1, 1]} : vector<3x8x512xf32> to vector<1x8x512xf32>
    %77 = vector.shape_cast %76 : vector<1x8x512xf32> to vector<8x512xf32>
    %cst_14 = arith.constant dense<0.000000e+00> : vector<512xf32>
    %78 = vector.multi_reduction <add>, %77, %cst_14 [0] : vector<8x512xf32> to vector<512xf32>
    %79 = vector.shape_cast %78 : vector<512xf32> to vector<1x512xf32>
    %80 = vector.extract_strided_slice %21 {offsets = [1, 0, 0], sizes = [1, 8, 512], strides = [1, 1, 1]} : vector<3x8x512xf32> to vector<1x8x512xf32>
    %81 = vector.shape_cast %80 : vector<1x8x512xf32> to vector<8x512xf32>
    %cst_15 = arith.constant dense<0.000000e+00> : vector<512xf32>
    %82 = vector.multi_reduction <add>, %81, %cst_15 [0] : vector<8x512xf32> to vector<512xf32>
    %83 = vector.shape_cast %82 : vector<512xf32> to vector<1x512xf32>
    %84 = vector.extract_strided_slice %21 {offsets = [2, 0, 0], sizes = [1, 8, 512], strides = [1, 1, 1]} : vector<3x8x512xf32> to vector<1x8x512xf32>
    %85 = vector.shape_cast %84 : vector<1x8x512xf32> to vector<8x512xf32>
    %cst_16 = arith.constant dense<0.000000e+00> : vector<512xf32>
    %86 = vector.multi_reduction <add>, %85, %cst_16 [0] : vector<8x512xf32> to vector<512xf32>
    %87 = vector.shape_cast %86 : vector<512xf32> to vector<1x512xf32>
    %88 = tpu.concatenate %79, %83, %87 in 0 : vector<1x512xf32>, vector<1x512xf32>, vector<1x512xf32> -> vector<3x512xf32>
    %89 = vector.extract_strided_slice %88 {offsets = [0, 0], sizes = [3, 32], strides = [1, 1]} : vector<3x512xf32> to vector<3x32xf32>
    %90 = vector.extract_strided_slice %88 {offsets = [0, 32], sizes = [3, 32], strides = [1, 1]} : vector<3x512xf32> to vector<3x32xf32>
    %91 = arith.addf %89, %90 : vector<3x32xf32>
    %92 = vector.extract_strided_slice %88 {offsets = [0, 64], sizes = [3, 32], strides = [1, 1]} : vector<3x512xf32> to vector<3x32xf32>
    %93 = arith.addf %91, %92 : vector<3x32xf32>
    %94 = vector.extract_strided_slice %88 {offsets = [0, 96], sizes = [3, 32], strides = [1, 1]} : vector<3x512xf32> to vector<3x32xf32>
    %95 = arith.addf %93, %94 : vector<3x32xf32>
    %96 = vector.extract_strided_slice %88 {offsets = [0, 128], sizes = [3, 32], strides = [1, 1]} : vector<3x512xf32> to vector<3x32xf32>
    %97 = arith.addf %95, %96 : vector<3x32xf32>
    %98 = vector.extract_strided_slice %88 {offsets = [0, 160], sizes = [3, 32], strides = [1, 1]} : vector<3x512xf32> to vector<3x32xf32>
    %99 = arith.addf %97, %98 : vector<3x32xf32>
    %100 = vector.extract_strided_slice %88 {offsets = [0, 192], sizes = [3, 32], strides = [1, 1]} : vector<3x512xf32> to vector<3x32xf32>
    %101 = arith.addf %99, %100 : vector<3x32xf32>
    %102 = vector.extract_strided_slice %88 {offsets = [0, 224], sizes = [3, 32], strides = [1, 1]} : vector<3x512xf32> to vector<3x32xf32>
    %103 = arith.addf %101, %102 : vector<3x32xf32>
    %104 = vector.extract_strided_slice %88 {offsets = [0, 256], sizes = [3, 32], strides = [1, 1]} : vector<3x512xf32> to vector<3x32xf32>
    %105 = arith.addf %103, %104 : vector<3x32xf32>
    %106 = vector.extract_strided_slice %88 {offsets = [0, 288], sizes = [3, 32], strides = [1, 1]} : vector<3x512xf32> to vector<3x32xf32>
    %107 = arith.addf %105, %106 : vector<3x32xf32>
    %108 = vector.extract_strided_slice %88 {offsets = [0, 320], sizes = [3, 32], strides = [1, 1]} : vector<3x512xf32> to vector<3x32xf32>
    %109 = arith.addf %107, %108 : vector<3x32xf32>
    %110 = vector.extract_strided_slice %88 {offsets = [0, 352], sizes = [3, 32], strides = [1, 1]} : vector<3x512xf32> to vector<3x32xf32>
    %111 = arith.addf %109, %110 : vector<3x32xf32>
    %112 = vector.extract_strided_slice %88 {offsets = [0, 384], sizes = [3, 32], strides = [1, 1]} : vector<3x512xf32> to vector<3x32xf32>
    %113 = arith.addf %111, %112 : vector<3x32xf32>
    %114 = vector.extract_strided_slice %88 {offsets = [0, 416], sizes = [3, 32], strides = [1, 1]} : vector<3x512xf32> to vector<3x32xf32>
    %115 = arith.addf %113, %114 : vector<3x32xf32>
    %116 = vector.extract_strided_slice %88 {offsets = [0, 448], sizes = [3, 32], strides = [1, 1]} : vector<3x512xf32> to vector<3x32xf32>
    %117 = arith.addf %115, %116 : vector<3x32xf32>
    %118 = vector.extract_strided_slice %88 {offsets = [0, 480], sizes = [3, 32], strides = [1, 1]} : vector<3x512xf32> to vector<3x32xf32>
    %119 = arith.addf %117, %118 : vector<3x32xf32>
    %cst_17 = arith.constant 7.812500e-03 : f32
    %120 = vector.broadcast %cst_17 : f32 to vector<3x32xf32>
    %121 = arith.mulf %119, %120 : vector<3x32xf32>
    %122 = vector.extract_strided_slice %121 {offsets = [0, 0], sizes = [1, 8], strides = [1, 1]} : vector<3x32xf32> to vector<1x8xf32>
    %123 = vector.extract_strided_slice %121 {offsets = [1, 0], sizes = [1, 8], strides = [1, 1]} : vector<3x32xf32> to vector<1x8xf32>
    %124 = vector.extract_strided_slice %121 {offsets = [2, 0], sizes = [1, 8], strides = [1, 1]} : vector<3x32xf32> to vector<1x8xf32>
    %125 = vector.extract_strided_slice %121 {offsets = [0, 8], sizes = [1, 8], strides = [1, 1]} : vector<3x32xf32> to vector<1x8xf32>
    %126 = tpu.concatenate %122, %123, %124, %125 in 1 : vector<1x8xf32>, vector<1x8xf32>, vector<1x8xf32>, vector<1x8xf32> -> vector<1x32xf32>
    %127 = vector.extract_strided_slice %121 {offsets = [1, 8], sizes = [1, 8], strides = [1, 1]} : vector<3x32xf32> to vector<1x8xf32>
    %128 = vector.extract_strided_slice %121 {offsets = [2, 8], sizes = [1, 8], strides = [1, 1]} : vector<3x32xf32> to vector<1x8xf32>
    %129 = vector.extract_strided_slice %121 {offsets = [0, 16], sizes = [1, 8], strides = [1, 1]} : vector<3x32xf32> to vector<1x8xf32>
    %130 = vector.extract_strided_slice %121 {offsets = [1, 16], sizes = [1, 8], strides = [1, 1]} : vector<3x32xf32> to vector<1x8xf32>
    %131 = tpu.concatenate %127, %128, %129, %130 in 1 : vector<1x8xf32>, vector<1x8xf32>, vector<1x8xf32>, vector<1x8xf32> -> vector<1x32xf32>
    %132 = vector.extract_strided_slice %121 {offsets = [2, 16], sizes = [1, 8], strides = [1, 1]} : vector<3x32xf32> to vector<1x8xf32>
    %133 = vector.extract_strided_slice %121 {offsets = [0, 24], sizes = [1, 8], strides = [1, 1]} : vector<3x32xf32> to vector<1x8xf32>
    %134 = vector.extract_strided_slice %121 {offsets = [1, 24], sizes = [1, 8], strides = [1, 1]} : vector<3x32xf32> to vector<1x8xf32>
    %135 = vector.extract_strided_slice %121 {offsets = [2, 24], sizes = [1, 8], strides = [1, 1]} : vector<3x32xf32> to vector<1x8xf32>
    %136 = tpu.concatenate %132, %133, %134, %135 in 1 : vector<1x8xf32>, vector<1x8xf32>, vector<1x8xf32>, vector<1x8xf32> -> vector<1x32xf32>
    %137 = tpu.concatenate %126, %131, %136 in 0 : vector<1x32xf32>, vector<1x32xf32>, vector<1x32xf32> -> vector<3x32xf32>
    %cst_18 = arith.constant 0.000000e+00 : f32
    %138 = vector.broadcast %cst_18 : f32 to vector<3x32xf32>
    %cst_19 = arith.constant 0.000000e+00 : f32
    %139 = vector.broadcast %cst_19 : f32 to vector<3x1xf32>
    %140 = vector.extract_strided_slice %137 {offsets = [0, 0], sizes = [3, 31], strides = [1, 1]} : vector<3x32xf32> to vector<3x31xf32>
    %141 = tpu.concatenate %139, %140 in 1 : vector<3x1xf32>, vector<3x31xf32> -> vector<3x32xf32>
    %c0_20 = arith.constant 0 : index
    %c0_21 = arith.constant 0 : index
    %142 = memref.load %arg4[%c0_20, %c0_21] : memref<1x3xf32, #tpu.memory_space<smem>>
    %143 = vector.broadcast %142 : f32 to vector<3x32xf32>
    %144 = arith.mulf %143, %141 : vector<3x32xf32>
    %145 = arith.addf %138, %144 : vector<3x32xf32>
    %c0_22 = arith.constant 0 : index
    %c1_23 = arith.constant 1 : index
    %146 = memref.load %arg4[%c0_22, %c1_23] : memref<1x3xf32, #tpu.memory_space<smem>>
    %147 = vector.broadcast %146 : f32 to vector<3x32xf32>
    %148 = arith.mulf %147, %137 : vector<3x32xf32>
    %149 = arith.addf %145, %148 : vector<3x32xf32>
    %150 = vector.extract_strided_slice %137 {offsets = [0, 1], sizes = [3, 31], strides = [1, 1]} : vector<3x32xf32> to vector<3x31xf32>
    %cst_24 = arith.constant 0.000000e+00 : f32
    %151 = vector.broadcast %cst_24 : f32 to vector<3x1xf32>
    %152 = tpu.concatenate %150, %151 in 1 : vector<3x31xf32>, vector<3x1xf32> -> vector<3x32xf32>
    %c0_25 = arith.constant 0 : index
    %c2_26 = arith.constant 2 : index
    %153 = memref.load %arg4[%c0_25, %c2_26] : memref<1x3xf32, #tpu.memory_space<smem>>
    %154 = vector.broadcast %153 : f32 to vector<3x32xf32>
    %155 = arith.mulf %154, %152 : vector<3x32xf32>
    %156 = arith.addf %149, %155 : vector<3x32xf32>
    %157 = vector.extract_strided_slice %156 {offsets = [0, 0], sizes = [1, 8], strides = [1, 1]} : vector<3x32xf32> to vector<1x8xf32>
    %158 = vector.extract_strided_slice %156 {offsets = [0, 24], sizes = [1, 8], strides = [1, 1]} : vector<3x32xf32> to vector<1x8xf32>
    %159 = vector.extract_strided_slice %156 {offsets = [1, 16], sizes = [1, 8], strides = [1, 1]} : vector<3x32xf32> to vector<1x8xf32>
    %160 = vector.extract_strided_slice %156 {offsets = [2, 8], sizes = [1, 8], strides = [1, 1]} : vector<3x32xf32> to vector<1x8xf32>
    %161 = tpu.concatenate %157, %158, %159, %160 in 1 : vector<1x8xf32>, vector<1x8xf32>, vector<1x8xf32>, vector<1x8xf32> -> vector<1x32xf32>
    %162 = vector.extract_strided_slice %156 {offsets = [0, 8], sizes = [1, 8], strides = [1, 1]} : vector<3x32xf32> to vector<1x8xf32>
    %163 = vector.extract_strided_slice %156 {offsets = [1, 0], sizes = [1, 8], strides = [1, 1]} : vector<3x32xf32> to vector<1x8xf32>
    %164 = vector.extract_strided_slice %156 {offsets = [1, 24], sizes = [1, 8], strides = [1, 1]} : vector<3x32xf32> to vector<1x8xf32>
    %165 = vector.extract_strided_slice %156 {offsets = [2, 16], sizes = [1, 8], strides = [1, 1]} : vector<3x32xf32> to vector<1x8xf32>
    %166 = tpu.concatenate %162, %163, %164, %165 in 1 : vector<1x8xf32>, vector<1x8xf32>, vector<1x8xf32>, vector<1x8xf32> -> vector<1x32xf32>
    %167 = vector.extract_strided_slice %156 {offsets = [0, 16], sizes = [1, 8], strides = [1, 1]} : vector<3x32xf32> to vector<1x8xf32>
    %168 = vector.extract_strided_slice %156 {offsets = [1, 8], sizes = [1, 8], strides = [1, 1]} : vector<3x32xf32> to vector<1x8xf32>
    %169 = vector.extract_strided_slice %156 {offsets = [2, 0], sizes = [1, 8], strides = [1, 1]} : vector<3x32xf32> to vector<1x8xf32>
    %170 = vector.extract_strided_slice %156 {offsets = [2, 24], sizes = [1, 8], strides = [1, 1]} : vector<3x32xf32> to vector<1x8xf32>
    %171 = tpu.concatenate %167, %168, %169, %170 in 1 : vector<1x8xf32>, vector<1x8xf32>, vector<1x8xf32>, vector<1x8xf32> -> vector<1x32xf32>
    %172 = tpu.concatenate %161, %166, %171 in 0 : vector<1x32xf32>, vector<1x32xf32>, vector<1x32xf32> -> vector<3x32xf32>
    %173 = vector.broadcast %75 : vector<1x32xf32> to vector<3x32xf32>
    %174 = arith.mulf %173, %172 : vector<3x32xf32>
    %175 = vector.extract_strided_slice %174 {offsets = [0, 0], sizes = [3, 8], strides = [1, 1]} : vector<3x32xf32> to vector<3x8xf32>
    %cst_27 = arith.constant dense<0.000000e+00> : vector<3xf32>
    %176 = vector.multi_reduction <add>, %175, %cst_27 [1] : vector<3x8xf32> to vector<3xf32>
    %177 = vector.shape_cast %176 : vector<3xf32> to vector<3x1xf32>
    %cst_28 = arith.constant 0.353553385 : f32
    %178 = vector.broadcast %cst_28 : f32 to vector<3x1xf32>
    %179 = arith.mulf %177, %178 : vector<3x1xf32>
    %cst_29 = arith.constant dense<0xFF800000> : vector<1xf32>
    %180 = vector.multi_reduction <maximumf>, %179, %cst_29 [0] : vector<3x1xf32> to vector<1xf32>
    %181 = vector.shape_cast %180 : vector<1xf32> to vector<1x1xf32>
    %182 = vector.broadcast %181 : vector<1x1xf32> to vector<3x1xf32>
    %183 = arith.subf %179, %182 : vector<3x1xf32>
    %184 = math.exp %183 : vector<3x1xf32>
    %cst_30 = arith.constant dense<0.000000e+00> : vector<1xf32>
    %185 = vector.multi_reduction <add>, %184, %cst_30 [0] : vector<3x1xf32> to vector<1xf32>
    %186 = vector.shape_cast %185 : vector<1xf32> to vector<1x1xf32>
    %187 = vector.broadcast %186 : vector<1x1xf32> to vector<3x1xf32>
    %188 = arith.divf %184, %187 : vector<3x1xf32>
    %189 = vector.shape_cast %188 : vector<3x1xf32> to vector<3x1xf32>
    %190 = vector.broadcast %189 : vector<3x1xf32> to vector<3x8xf32>
    %191 = vector.extract_strided_slice %174 {offsets = [0, 8], sizes = [3, 8], strides = [1, 1]} : vector<3x32xf32> to vector<3x8xf32>
    %cst_31 = arith.constant dense<0.000000e+00> : vector<3xf32>
    %192 = vector.multi_reduction <add>, %191, %cst_31 [1] : vector<3x8xf32> to vector<3xf32>
    %193 = vector.shape_cast %192 : vector<3xf32> to vector<3x1xf32>
    %cst_32 = arith.constant 0.353553385 : f32
    %194 = vector.broadcast %cst_32 : f32 to vector<3x1xf32>
    %195 = arith.mulf %193, %194 : vector<3x1xf32>
    %cst_33 = arith.constant dense<0xFF800000> : vector<1xf32>
    %196 = vector.multi_reduction <maximumf>, %195, %cst_33 [0] : vector<3x1xf32> to vector<1xf32>
    %197 = vector.shape_cast %196 : vector<1xf32> to vector<1x1xf32>
    %198 = vector.broadcast %197 : vector<1x1xf32> to vector<3x1xf32>
    %199 = arith.subf %195, %198 : vector<3x1xf32>
    %200 = math.exp %199 : vector<3x1xf32>
    %cst_34 = arith.constant dense<0.000000e+00> : vector<1xf32>
    %201 = vector.multi_reduction <add>, %200, %cst_34 [0] : vector<3x1xf32> to vector<1xf32>
    %202 = vector.shape_cast %201 : vector<1xf32> to vector<1x1xf32>
    %203 = vector.broadcast %202 : vector<1x1xf32> to vector<3x1xf32>
    %204 = arith.divf %200, %203 : vector<3x1xf32>
    %205 = vector.shape_cast %204 : vector<3x1xf32> to vector<3x1xf32>
    %206 = vector.broadcast %205 : vector<3x1xf32> to vector<3x8xf32>
    %207 = vector.extract_strided_slice %174 {offsets = [0, 16], sizes = [3, 8], strides = [1, 1]} : vector<3x32xf32> to vector<3x8xf32>
    %cst_35 = arith.constant dense<0.000000e+00> : vector<3xf32>
    %208 = vector.multi_reduction <add>, %207, %cst_35 [1] : vector<3x8xf32> to vector<3xf32>
    %209 = vector.shape_cast %208 : vector<3xf32> to vector<3x1xf32>
    %cst_36 = arith.constant 0.353553385 : f32
    %210 = vector.broadcast %cst_36 : f32 to vector<3x1xf32>
    %211 = arith.mulf %209, %210 : vector<3x1xf32>
    %cst_37 = arith.constant dense<0xFF800000> : vector<1xf32>
    %212 = vector.multi_reduction <maximumf>, %211, %cst_37 [0] : vector<3x1xf32> to vector<1xf32>
    %213 = vector.shape_cast %212 : vector<1xf32> to vector<1x1xf32>
    %214 = vector.broadcast %213 : vector<1x1xf32> to vector<3x1xf32>
    %215 = arith.subf %211, %214 : vector<3x1xf32>
    %216 = math.exp %215 : vector<3x1xf32>
    %cst_38 = arith.constant dense<0.000000e+00> : vector<1xf32>
    %217 = vector.multi_reduction <add>, %216, %cst_38 [0] : vector<3x1xf32> to vector<1xf32>
    %218 = vector.shape_cast %217 : vector<1xf32> to vector<1x1xf32>
    %219 = vector.broadcast %218 : vector<1x1xf32> to vector<3x1xf32>
    %220 = arith.divf %216, %219 : vector<3x1xf32>
    %221 = vector.shape_cast %220 : vector<3x1xf32> to vector<3x1xf32>
    %222 = vector.broadcast %221 : vector<3x1xf32> to vector<3x8xf32>
    %223 = vector.extract_strided_slice %174 {offsets = [0, 24], sizes = [3, 8], strides = [1, 1]} : vector<3x32xf32> to vector<3x8xf32>
    %cst_39 = arith.constant dense<0.000000e+00> : vector<3xf32>
    %224 = vector.multi_reduction <add>, %223, %cst_39 [1] : vector<3x8xf32> to vector<3xf32>
    %225 = vector.shape_cast %224 : vector<3xf32> to vector<3x1xf32>
    %cst_40 = arith.constant 0.353553385 : f32
    %226 = vector.broadcast %cst_40 : f32 to vector<3x1xf32>
    %227 = arith.mulf %225, %226 : vector<3x1xf32>
    %cst_41 = arith.constant dense<0xFF800000> : vector<1xf32>
    %228 = vector.multi_reduction <maximumf>, %227, %cst_41 [0] : vector<3x1xf32> to vector<1xf32>
    %229 = vector.shape_cast %228 : vector<1xf32> to vector<1x1xf32>
    %230 = vector.broadcast %229 : vector<1x1xf32> to vector<3x1xf32>
    %231 = arith.subf %227, %230 : vector<3x1xf32>
    %232 = math.exp %231 : vector<3x1xf32>
    %cst_42 = arith.constant dense<0.000000e+00> : vector<1xf32>
    %233 = vector.multi_reduction <add>, %232, %cst_42 [0] : vector<3x1xf32> to vector<1xf32>
    %234 = vector.shape_cast %233 : vector<1xf32> to vector<1x1xf32>
    %235 = vector.broadcast %234 : vector<1x1xf32> to vector<3x1xf32>
    %236 = arith.divf %232, %235 : vector<3x1xf32>
    %237 = vector.shape_cast %236 : vector<3x1xf32> to vector<3x1xf32>
    %238 = vector.broadcast %237 : vector<3x1xf32> to vector<3x8xf32>
    %239 = tpu.concatenate %190, %206, %222, %238 in 1 : vector<3x8xf32>, vector<3x8xf32>, vector<3x8xf32>, vector<3x8xf32> -> vector<3x32xf32>
    %240 = tpu.concatenate %239, %239, %239, %239, %239, %239, %239, %239, %239, %239, %239, %239, %239, %239, %239, %239 in 1 : vector<3x32xf32>, vector<3x32xf32>, vector<3x32xf32>, vector<3x32xf32>, vector<3x32xf32>, vector<3x32xf32>, vector<3x32xf32>, vector<3x32xf32>, vector<3x32xf32>, vector<3x32xf32>, vector<3x32xf32>, vector<3x32xf32>, vector<3x32xf32>, vector<3x32xf32>, vector<3x32xf32>, vector<3x32xf32> -> vector<3x512xf32>
    %cst_43 = arith.constant 0.000000e+00 : f32
    %241 = vector.broadcast %cst_43 : f32 to vector<8x512xf32>
    %242 = vector.extract_strided_slice %21 {offsets = [0, 0, 0], sizes = [1, 8, 512], strides = [1, 1, 1]} : vector<3x8x512xf32> to vector<1x8x512xf32>
    %243 = vector.shape_cast %242 : vector<1x8x512xf32> to vector<8x512xf32>
    %c480_i32_44 = arith.constant 480 : i32
    %244 = tpu.dynamic_rotate %243 by %c480_i32_44 dim 1 : vector<8x512xf32>, i32 -> vector<8x512xf32>
    %c32_i32_45 = arith.constant 32 : i32
    %245 = tpu.dynamic_rotate %243 by %c32_i32_45 dim 1 : vector<8x512xf32>, i32 -> vector<8x512xf32>
    %246 = vector.extract_strided_slice %240 {offsets = [0, 0], sizes = [1, 512], strides = [1, 1]} : vector<3x512xf32> to vector<1x512xf32>
    %c0_46 = arith.constant 0 : index
    %c0_47 = arith.constant 0 : index
    %c0_48 = arith.constant 0 : index
    %247 = vector.load %arg5[%c0_46, %c0_47, %c0_48] : memref<9x3x512xf32, #tpu.memory_space<vmem>>, vector<1x3x512xf32>
    %248 = vector.shape_cast %247 : vector<1x3x512xf32> to vector<3x512xf32>
    %249 = vector.extract_strided_slice %248 {offsets = [0, 0], sizes = [1, 512], strides = [1, 1]} : vector<3x512xf32> to vector<1x512xf32>
    %250 = arith.mulf %249, %246 : vector<1x512xf32>
    %251 = arith.mulf %250, %9 : vector<1x512xf32>
    %c1_i32_49 = arith.constant 1 : i32
    %252 = tpu.dynamic_rotate %245 by %c1_i32_49 dim 0 : vector<8x512xf32>, i32 -> vector<8x512xf32>
    %253 = vector.broadcast %251 : vector<1x512xf32> to vector<8x512xf32>
    %254 = arith.mulf %253, %252 : vector<8x512xf32>
    %255 = vector.broadcast %17 : vector<8x1xf32> to vector<8x512xf32>
    %256 = arith.mulf %254, %255 : vector<8x512xf32>
    %257 = arith.addf %241, %256 : vector<8x512xf32>
    %c1_50 = arith.constant 1 : index
    %c0_51 = arith.constant 0 : index
    %c0_52 = arith.constant 0 : index
    %258 = vector.load %arg5[%c1_50, %c0_51, %c0_52] : memref<9x3x512xf32, #tpu.memory_space<vmem>>, vector<1x3x512xf32>
    %259 = vector.shape_cast %258 : vector<1x3x512xf32> to vector<3x512xf32>
    %260 = vector.extract_strided_slice %259 {offsets = [0, 0], sizes = [1, 512], strides = [1, 1]} : vector<3x512xf32> to vector<1x512xf32>
    %261 = arith.mulf %260, %246 : vector<1x512xf32>
    %c1_i32_53 = arith.constant 1 : i32
    %262 = tpu.dynamic_rotate %243 by %c1_i32_53 dim 0 : vector<8x512xf32>, i32 -> vector<8x512xf32>
    %263 = vector.broadcast %261 : vector<1x512xf32> to vector<8x512xf32>
    %264 = arith.mulf %263, %262 : vector<8x512xf32>
    %265 = vector.broadcast %17 : vector<8x1xf32> to vector<8x512xf32>
    %266 = arith.mulf %264, %265 : vector<8x512xf32>
    %267 = arith.addf %257, %266 : vector<8x512xf32>
    %c2_54 = arith.constant 2 : index
    %c0_55 = arith.constant 0 : index
    %c0_56 = arith.constant 0 : index
    %268 = vector.load %arg5[%c2_54, %c0_55, %c0_56] : memref<9x3x512xf32, #tpu.memory_space<vmem>>, vector<1x3x512xf32>
    %269 = vector.shape_cast %268 : vector<1x3x512xf32> to vector<3x512xf32>
    %270 = vector.extract_strided_slice %269 {offsets = [0, 0], sizes = [1, 512], strides = [1, 1]} : vector<3x512xf32> to vector<1x512xf32>
    %271 = arith.mulf %270, %246 : vector<1x512xf32>
    %272 = arith.mulf %271, %5 : vector<1x512xf32>
    %c1_i32_57 = arith.constant 1 : i32
    %273 = tpu.dynamic_rotate %244 by %c1_i32_57 dim 0 : vector<8x512xf32>, i32 -> vector<8x512xf32>
    %274 = vector.broadcast %272 : vector<1x512xf32> to vector<8x512xf32>
    %275 = arith.mulf %274, %273 : vector<8x512xf32>
    %276 = vector.broadcast %17 : vector<8x1xf32> to vector<8x512xf32>
    %277 = arith.mulf %275, %276 : vector<8x512xf32>
    %278 = arith.addf %267, %277 : vector<8x512xf32>
    %c3 = arith.constant 3 : index
    %c0_58 = arith.constant 0 : index
    %c0_59 = arith.constant 0 : index
    %279 = vector.load %arg5[%c3, %c0_58, %c0_59] : memref<9x3x512xf32, #tpu.memory_space<vmem>>, vector<1x3x512xf32>
    %280 = vector.shape_cast %279 : vector<1x3x512xf32> to vector<3x512xf32>
    %281 = vector.extract_strided_slice %280 {offsets = [0, 0], sizes = [1, 512], strides = [1, 1]} : vector<3x512xf32> to vector<1x512xf32>
    %282 = arith.mulf %281, %246 : vector<1x512xf32>
    %283 = arith.mulf %282, %9 : vector<1x512xf32>
    %284 = vector.broadcast %283 : vector<1x512xf32> to vector<8x512xf32>
    %285 = arith.mulf %284, %245 : vector<8x512xf32>
    %286 = arith.addf %278, %285 : vector<8x512xf32>
    %c4 = arith.constant 4 : index
    %c0_60 = arith.constant 0 : index
    %c0_61 = arith.constant 0 : index
    %287 = vector.load %arg5[%c4, %c0_60, %c0_61] : memref<9x3x512xf32, #tpu.memory_space<vmem>>, vector<1x3x512xf32>
    %288 = vector.shape_cast %287 : vector<1x3x512xf32> to vector<3x512xf32>
    %289 = vector.extract_strided_slice %288 {offsets = [0, 0], sizes = [1, 512], strides = [1, 1]} : vector<3x512xf32> to vector<1x512xf32>
    %290 = arith.mulf %289, %246 : vector<1x512xf32>
    %291 = vector.broadcast %290 : vector<1x512xf32> to vector<8x512xf32>
    %292 = arith.mulf %291, %243 : vector<8x512xf32>
    %293 = arith.addf %286, %292 : vector<8x512xf32>
    %c5 = arith.constant 5 : index
    %c0_62 = arith.constant 0 : index
    %c0_63 = arith.constant 0 : index
    %294 = vector.load %arg5[%c5, %c0_62, %c0_63] : memref<9x3x512xf32, #tpu.memory_space<vmem>>, vector<1x3x512xf32>
    %295 = vector.shape_cast %294 : vector<1x3x512xf32> to vector<3x512xf32>
    %296 = vector.extract_strided_slice %295 {offsets = [0, 0], sizes = [1, 512], strides = [1, 1]} : vector<3x512xf32> to vector<1x512xf32>
    %297 = arith.mulf %296, %246 : vector<1x512xf32>
    %298 = arith.mulf %297, %5 : vector<1x512xf32>
    %299 = vector.broadcast %298 : vector<1x512xf32> to vector<8x512xf32>
    %300 = arith.mulf %299, %244 : vector<8x512xf32>
    %301 = arith.addf %293, %300 : vector<8x512xf32>
    %c6 = arith.constant 6 : index
    %c0_64 = arith.constant 0 : index
    %c0_65 = arith.constant 0 : index
    %302 = vector.load %arg5[%c6, %c0_64, %c0_65] : memref<9x3x512xf32, #tpu.memory_space<vmem>>, vector<1x3x512xf32>
    %303 = vector.shape_cast %302 : vector<1x3x512xf32> to vector<3x512xf32>
    %304 = vector.extract_strided_slice %303 {offsets = [0, 0], sizes = [1, 512], strides = [1, 1]} : vector<3x512xf32> to vector<1x512xf32>
    %305 = arith.mulf %304, %246 : vector<1x512xf32>
    %306 = arith.mulf %305, %9 : vector<1x512xf32>
    %c7_i32_66 = arith.constant 7 : i32
    %307 = tpu.dynamic_rotate %245 by %c7_i32_66 dim 0 : vector<8x512xf32>, i32 -> vector<8x512xf32>
    %308 = vector.broadcast %306 : vector<1x512xf32> to vector<8x512xf32>
    %309 = arith.mulf %308, %307 : vector<8x512xf32>
    %310 = vector.broadcast %13 : vector<8x1xf32> to vector<8x512xf32>
    %311 = arith.mulf %309, %310 : vector<8x512xf32>
    %312 = arith.addf %301, %311 : vector<8x512xf32>
    %c7 = arith.constant 7 : index
    %c0_67 = arith.constant 0 : index
    %c0_68 = arith.constant 0 : index
    %313 = vector.load %arg5[%c7, %c0_67, %c0_68] : memref<9x3x512xf32, #tpu.memory_space<vmem>>, vector<1x3x512xf32>
    %314 = vector.shape_cast %313 : vector<1x3x512xf32> to vector<3x512xf32>
    %315 = vector.extract_strided_slice %314 {offsets = [0, 0], sizes = [1, 512], strides = [1, 1]} : vector<3x512xf32> to vector<1x512xf32>
    %316 = arith.mulf %315, %246 : vector<1x512xf32>
    %c7_i32_69 = arith.constant 7 : i32
    %317 = tpu.dynamic_rotate %243 by %c7_i32_69 dim 0 : vector<8x512xf32>, i32 -> vector<8x512xf32>
    %318 = vector.broadcast %316 : vector<1x512xf32> to vector<8x512xf32>
    %319 = arith.mulf %318, %317 : vector<8x512xf32>
    %320 = vector.broadcast %13 : vector<8x1xf32> to vector<8x512xf32>
    %321 = arith.mulf %319, %320 : vector<8x512xf32>
    %322 = arith.addf %312, %321 : vector<8x512xf32>
    %c8 = arith.constant 8 : index
    %c0_70 = arith.constant 0 : index
    %c0_71 = arith.constant 0 : index
    %323 = vector.load %arg5[%c8, %c0_70, %c0_71] : memref<9x3x512xf32, #tpu.memory_space<vmem>>, vector<1x3x512xf32>
    %324 = vector.shape_cast %323 : vector<1x3x512xf32> to vector<3x512xf32>
    %325 = vector.extract_strided_slice %324 {offsets = [0, 0], sizes = [1, 512], strides = [1, 1]} : vector<3x512xf32> to vector<1x512xf32>
    %326 = arith.mulf %325, %246 : vector<1x512xf32>
    %327 = arith.mulf %326, %5 : vector<1x512xf32>
    %c7_i32_72 = arith.constant 7 : i32
    %328 = tpu.dynamic_rotate %244 by %c7_i32_72 dim 0 : vector<8x512xf32>, i32 -> vector<8x512xf32>
    %329 = vector.broadcast %327 : vector<1x512xf32> to vector<8x512xf32>
    %330 = arith.mulf %329, %328 : vector<8x512xf32>
    %331 = vector.broadcast %13 : vector<8x1xf32> to vector<8x512xf32>
    %332 = arith.mulf %330, %331 : vector<8x512xf32>
    %333 = arith.addf %322, %332 : vector<8x512xf32>
    %334 = vector.extract_strided_slice %21 {offsets = [1, 0, 0], sizes = [1, 8, 512], strides = [1, 1, 1]} : vector<3x8x512xf32> to vector<1x8x512xf32>
    %335 = vector.shape_cast %334 : vector<1x8x512xf32> to vector<8x512xf32>
    %c480_i32_73 = arith.constant 480 : i32
    %336 = tpu.dynamic_rotate %335 by %c480_i32_73 dim 1 : vector<8x512xf32>, i32 -> vector<8x512xf32>
    %c32_i32_74 = arith.constant 32 : i32
    %337 = tpu.dynamic_rotate %335 by %c32_i32_74 dim 1 : vector<8x512xf32>, i32 -> vector<8x512xf32>
    %338 = vector.extract_strided_slice %240 {offsets = [1, 0], sizes = [1, 512], strides = [1, 1]} : vector<3x512xf32> to vector<1x512xf32>
    %c0_75 = arith.constant 0 : index
    %c0_76 = arith.constant 0 : index
    %c0_77 = arith.constant 0 : index
    %339 = vector.load %arg5[%c0_75, %c0_76, %c0_77] : memref<9x3x512xf32, #tpu.memory_space<vmem>>, vector<1x3x512xf32>
    %340 = vector.shape_cast %339 : vector<1x3x512xf32> to vector<3x512xf32>
    %341 = vector.extract_strided_slice %340 {offsets = [1, 0], sizes = [1, 512], strides = [1, 1]} : vector<3x512xf32> to vector<1x512xf32>
    %342 = arith.mulf %341, %338 : vector<1x512xf32>
    %343 = arith.mulf %342, %9 : vector<1x512xf32>
    %c1_i32_78 = arith.constant 1 : i32
    %344 = tpu.dynamic_rotate %337 by %c1_i32_78 dim 0 : vector<8x512xf32>, i32 -> vector<8x512xf32>
    %345 = vector.broadcast %343 : vector<1x512xf32> to vector<8x512xf32>
    %346 = arith.mulf %345, %344 : vector<8x512xf32>
    %347 = vector.broadcast %17 : vector<8x1xf32> to vector<8x512xf32>
    %348 = arith.mulf %346, %347 : vector<8x512xf32>
    %349 = arith.addf %333, %348 : vector<8x512xf32>
    %c1_79 = arith.constant 1 : index
    %c0_80 = arith.constant 0 : index
    %c0_81 = arith.constant 0 : index
    %350 = vector.load %arg5[%c1_79, %c0_80, %c0_81] : memref<9x3x512xf32, #tpu.memory_space<vmem>>, vector<1x3x512xf32>
    %351 = vector.shape_cast %350 : vector<1x3x512xf32> to vector<3x512xf32>
    %352 = vector.extract_strided_slice %351 {offsets = [1, 0], sizes = [1, 512], strides = [1, 1]} : vector<3x512xf32> to vector<1x512xf32>
    %353 = arith.mulf %352, %338 : vector<1x512xf32>
    %c1_i32_82 = arith.constant 1 : i32
    %354 = tpu.dynamic_rotate %335 by %c1_i32_82 dim 0 : vector<8x512xf32>, i32 -> vector<8x512xf32>
    %355 = vector.broadcast %353 : vector<1x512xf32> to vector<8x512xf32>
    %356 = arith.mulf %355, %354 : vector<8x512xf32>
    %357 = vector.broadcast %17 : vector<8x1xf32> to vector<8x512xf32>
    %358 = arith.mulf %356, %357 : vector<8x512xf32>
    %359 = arith.addf %349, %358 : vector<8x512xf32>
    %c2_83 = arith.constant 2 : index
    %c0_84 = arith.constant 0 : index
    %c0_85 = arith.constant 0 : index
    %360 = vector.load %arg5[%c2_83, %c0_84, %c0_85] : memref<9x3x512xf32, #tpu.memory_space<vmem>>, vector<1x3x512xf32>
    %361 = vector.shape_cast %360 : vector<1x3x512xf32> to vector<3x512xf32>
    %362 = vector.extract_strided_slice %361 {offsets = [1, 0], sizes = [1, 512], strides = [1, 1]} : vector<3x512xf32> to vector<1x512xf32>
    %363 = arith.mulf %362, %338 : vector<1x512xf32>
    %364 = arith.mulf %363, %5 : vector<1x512xf32>
    %c1_i32_86 = arith.constant 1 : i32
    %365 = tpu.dynamic_rotate %336 by %c1_i32_86 dim 0 : vector<8x512xf32>, i32 -> vector<8x512xf32>
    %366 = vector.broadcast %364 : vector<1x512xf32> to vector<8x512xf32>
    %367 = arith.mulf %366, %365 : vector<8x512xf32>
    %368 = vector.broadcast %17 : vector<8x1xf32> to vector<8x512xf32>
    %369 = arith.mulf %367, %368 : vector<8x512xf32>
    %370 = arith.addf %359, %369 : vector<8x512xf32>
    %c3_87 = arith.constant 3 : index
    %c0_88 = arith.constant 0 : index
    %c0_89 = arith.constant 0 : index
    %371 = vector.load %arg5[%c3_87, %c0_88, %c0_89] : memref<9x3x512xf32, #tpu.memory_space<vmem>>, vector<1x3x512xf32>
    %372 = vector.shape_cast %371 : vector<1x3x512xf32> to vector<3x512xf32>
    %373 = vector.extract_strided_slice %372 {offsets = [1, 0], sizes = [1, 512], strides = [1, 1]} : vector<3x512xf32> to vector<1x512xf32>
    %374 = arith.mulf %373, %338 : vector<1x512xf32>
    %375 = arith.mulf %374, %9 : vector<1x512xf32>
    %376 = vector.broadcast %375 : vector<1x512xf32> to vector<8x512xf32>
    %377 = arith.mulf %376, %337 : vector<8x512xf32>
    %378 = arith.addf %370, %377 : vector<8x512xf32>
    %c4_90 = arith.constant 4 : index
    %c0_91 = arith.constant 0 : index
    %c0_92 = arith.constant 0 : index
    %379 = vector.load %arg5[%c4_90, %c0_91, %c0_92] : memref<9x3x512xf32, #tpu.memory_space<vmem>>, vector<1x3x512xf32>
    %380 = vector.shape_cast %379 : vector<1x3x512xf32> to vector<3x512xf32>
    %381 = vector.extract_strided_slice %380 {offsets = [1, 0], sizes = [1, 512], strides = [1, 1]} : vector<3x512xf32> to vector<1x512xf32>
    %382 = arith.mulf %381, %338 : vector<1x512xf32>
    %383 = vector.broadcast %382 : vector<1x512xf32> to vector<8x512xf32>
    %384 = arith.mulf %383, %335 : vector<8x512xf32>
    %385 = arith.addf %378, %384 : vector<8x512xf32>
    %c5_93 = arith.constant 5 : index
    %c0_94 = arith.constant 0 : index
    %c0_95 = arith.constant 0 : index
    %386 = vector.load %arg5[%c5_93, %c0_94, %c0_95] : memref<9x3x512xf32, #tpu.memory_space<vmem>>, vector<1x3x512xf32>
    %387 = vector.shape_cast %386 : vector<1x3x512xf32> to vector<3x512xf32>
    %388 = vector.extract_strided_slice %387 {offsets = [1, 0], sizes = [1, 512], strides = [1, 1]} : vector<3x512xf32> to vector<1x512xf32>
    %389 = arith.mulf %388, %338 : vector<1x512xf32>
    %390 = arith.mulf %389, %5 : vector<1x512xf32>
    %391 = vector.broadcast %390 : vector<1x512xf32> to vector<8x512xf32>
    %392 = arith.mulf %391, %336 : vector<8x512xf32>
    %393 = arith.addf %385, %392 : vector<8x512xf32>
    %c6_96 = arith.constant 6 : index
    %c0_97 = arith.constant 0 : index
    %c0_98 = arith.constant 0 : index
    %394 = vector.load %arg5[%c6_96, %c0_97, %c0_98] : memref<9x3x512xf32, #tpu.memory_space<vmem>>, vector<1x3x512xf32>
    %395 = vector.shape_cast %394 : vector<1x3x512xf32> to vector<3x512xf32>
    %396 = vector.extract_strided_slice %395 {offsets = [1, 0], sizes = [1, 512], strides = [1, 1]} : vector<3x512xf32> to vector<1x512xf32>
    %397 = arith.mulf %396, %338 : vector<1x512xf32>
    %398 = arith.mulf %397, %9 : vector<1x512xf32>
    %c7_i32_99 = arith.constant 7 : i32
    %399 = tpu.dynamic_rotate %337 by %c7_i32_99 dim 0 : vector<8x512xf32>, i32 -> vector<8x512xf32>
    %400 = vector.broadcast %398 : vector<1x512xf32> to vector<8x512xf32>
    %401 = arith.mulf %400, %399 : vector<8x512xf32>
    %402 = vector.broadcast %13 : vector<8x1xf32> to vector<8x512xf32>
    %403 = arith.mulf %401, %402 : vector<8x512xf32>
    %404 = arith.addf %393, %403 : vector<8x512xf32>
    %c7_100 = arith.constant 7 : index
    %c0_101 = arith.constant 0 : index
    %c0_102 = arith.constant 0 : index
    %405 = vector.load %arg5[%c7_100, %c0_101, %c0_102] : memref<9x3x512xf32, #tpu.memory_space<vmem>>, vector<1x3x512xf32>
    %406 = vector.shape_cast %405 : vector<1x3x512xf32> to vector<3x512xf32>
    %407 = vector.extract_strided_slice %406 {offsets = [1, 0], sizes = [1, 512], strides = [1, 1]} : vector<3x512xf32> to vector<1x512xf32>
    %408 = arith.mulf %407, %338 : vector<1x512xf32>
    %c7_i32_103 = arith.constant 7 : i32
    %409 = tpu.dynamic_rotate %335 by %c7_i32_103 dim 0 : vector<8x512xf32>, i32 -> vector<8x512xf32>
    %410 = vector.broadcast %408 : vector<1x512xf32> to vector<8x512xf32>
    %411 = arith.mulf %410, %409 : vector<8x512xf32>
    %412 = vector.broadcast %13 : vector<8x1xf32> to vector<8x512xf32>
    %413 = arith.mulf %411, %412 : vector<8x512xf32>
    %414 = arith.addf %404, %413 : vector<8x512xf32>
    %c8_104 = arith.constant 8 : index
    %c0_105 = arith.constant 0 : index
    %c0_106 = arith.constant 0 : index
    %415 = vector.load %arg5[%c8_104, %c0_105, %c0_106] : memref<9x3x512xf32, #tpu.memory_space<vmem>>, vector<1x3x512xf32>
    %416 = vector.shape_cast %415 : vector<1x3x512xf32> to vector<3x512xf32>
    %417 = vector.extract_strided_slice %416 {offsets = [1, 0], sizes = [1, 512], strides = [1, 1]} : vector<3x512xf32> to vector<1x512xf32>
    %418 = arith.mulf %417, %338 : vector<1x512xf32>
    %419 = arith.mulf %418, %5 : vector<1x512xf32>
    %c7_i32_107 = arith.constant 7 : i32
    %420 = tpu.dynamic_rotate %336 by %c7_i32_107 dim 0 : vector<8x512xf32>, i32 -> vector<8x512xf32>
    %421 = vector.broadcast %419 : vector<1x512xf32> to vector<8x512xf32>
    %422 = arith.mulf %421, %420 : vector<8x512xf32>
    %423 = vector.broadcast %13 : vector<8x1xf32> to vector<8x512xf32>
    %424 = arith.mulf %422, %423 : vector<8x512xf32>
    %425 = arith.addf %414, %424 : vector<8x512xf32>
    %426 = vector.extract_strided_slice %21 {offsets = [2, 0, 0], sizes = [1, 8, 512], strides = [1, 1, 1]} : vector<3x8x512xf32> to vector<1x8x512xf32>
    %427 = vector.shape_cast %426 : vector<1x8x512xf32> to vector<8x512xf32>
    %c480_i32_108 = arith.constant 480 : i32
    %428 = tpu.dynamic_rotate %427 by %c480_i32_108 dim 1 : vector<8x512xf32>, i32 -> vector<8x512xf32>
    %c32_i32_109 = arith.constant 32 : i32
    %429 = tpu.dynamic_rotate %427 by %c32_i32_109 dim 1 : vector<8x512xf32>, i32 -> vector<8x512xf32>
    %430 = vector.extract_strided_slice %240 {offsets = [2, 0], sizes = [1, 512], strides = [1, 1]} : vector<3x512xf32> to vector<1x512xf32>
    %c0_110 = arith.constant 0 : index
    %c0_111 = arith.constant 0 : index
    %c0_112 = arith.constant 0 : index
    %431 = vector.load %arg5[%c0_110, %c0_111, %c0_112] : memref<9x3x512xf32, #tpu.memory_space<vmem>>, vector<1x3x512xf32>
    %432 = vector.shape_cast %431 : vector<1x3x512xf32> to vector<3x512xf32>
    %433 = vector.extract_strided_slice %432 {offsets = [2, 0], sizes = [1, 512], strides = [1, 1]} : vector<3x512xf32> to vector<1x512xf32>
    %434 = arith.mulf %433, %430 : vector<1x512xf32>
    %435 = arith.mulf %434, %9 : vector<1x512xf32>
    %c1_i32_113 = arith.constant 1 : i32
    %436 = tpu.dynamic_rotate %429 by %c1_i32_113 dim 0 : vector<8x512xf32>, i32 -> vector<8x512xf32>
    %437 = vector.broadcast %435 : vector<1x512xf32> to vector<8x512xf32>
    %438 = arith.mulf %437, %436 : vector<8x512xf32>
    %439 = vector.broadcast %17 : vector<8x1xf32> to vector<8x512xf32>
    %440 = arith.mulf %438, %439 : vector<8x512xf32>
    %441 = arith.addf %425, %440 : vector<8x512xf32>
    %c1_114 = arith.constant 1 : index
    %c0_115 = arith.constant 0 : index
    %c0_116 = arith.constant 0 : index
    %442 = vector.load %arg5[%c1_114, %c0_115, %c0_116] : memref<9x3x512xf32, #tpu.memory_space<vmem>>, vector<1x3x512xf32>
    %443 = vector.shape_cast %442 : vector<1x3x512xf32> to vector<3x512xf32>
    %444 = vector.extract_strided_slice %443 {offsets = [2, 0], sizes = [1, 512], strides = [1, 1]} : vector<3x512xf32> to vector<1x512xf32>
    %445 = arith.mulf %444, %430 : vector<1x512xf32>
    %c1_i32_117 = arith.constant 1 : i32
    %446 = tpu.dynamic_rotate %427 by %c1_i32_117 dim 0 : vector<8x512xf32>, i32 -> vector<8x512xf32>
    %447 = vector.broadcast %445 : vector<1x512xf32> to vector<8x512xf32>
    %448 = arith.mulf %447, %446 : vector<8x512xf32>
    %449 = vector.broadcast %17 : vector<8x1xf32> to vector<8x512xf32>
    %450 = arith.mulf %448, %449 : vector<8x512xf32>
    %451 = arith.addf %441, %450 : vector<8x512xf32>
    %c2_118 = arith.constant 2 : index
    %c0_119 = arith.constant 0 : index
    %c0_120 = arith.constant 0 : index
    %452 = vector.load %arg5[%c2_118, %c0_119, %c0_120] : memref<9x3x512xf32, #tpu.memory_space<vmem>>, vector<1x3x512xf32>
    %453 = vector.shape_cast %452 : vector<1x3x512xf32> to vector<3x512xf32>
    %454 = vector.extract_strided_slice %453 {offsets = [2, 0], sizes = [1, 512], strides = [1, 1]} : vector<3x512xf32> to vector<1x512xf32>
    %455 = arith.mulf %454, %430 : vector<1x512xf32>
    %456 = arith.mulf %455, %5 : vector<1x512xf32>
    %c1_i32_121 = arith.constant 1 : i32
    %457 = tpu.dynamic_rotate %428 by %c1_i32_121 dim 0 : vector<8x512xf32>, i32 -> vector<8x512xf32>
    %458 = vector.broadcast %456 : vector<1x512xf32> to vector<8x512xf32>
    %459 = arith.mulf %458, %457 : vector<8x512xf32>
    %460 = vector.broadcast %17 : vector<8x1xf32> to vector<8x512xf32>
    %461 = arith.mulf %459, %460 : vector<8x512xf32>
    %462 = arith.addf %451, %461 : vector<8x512xf32>
    %c3_122 = arith.constant 3 : index
    %c0_123 = arith.constant 0 : index
    %c0_124 = arith.constant 0 : index
    %463 = vector.load %arg5[%c3_122, %c0_123, %c0_124] : memref<9x3x512xf32, #tpu.memory_space<vmem>>, vector<1x3x512xf32>
    %464 = vector.shape_cast %463 : vector<1x3x512xf32> to vector<3x512xf32>
    %465 = vector.extract_strided_slice %464 {offsets = [2, 0], sizes = [1, 512], strides = [1, 1]} : vector<3x512xf32> to vector<1x512xf32>
    %466 = arith.mulf %465, %430 : vector<1x512xf32>
    %467 = arith.mulf %466, %9 : vector<1x512xf32>
    %468 = vector.broadcast %467 : vector<1x512xf32> to vector<8x512xf32>
    %469 = arith.mulf %468, %429 : vector<8x512xf32>
    %470 = arith.addf %462, %469 : vector<8x512xf32>
    %c4_125 = arith.constant 4 : index
    %c0_126 = arith.constant 0 : index
    %c0_127 = arith.constant 0 : index
    %471 = vector.load %arg5[%c4_125, %c0_126, %c0_127] : memref<9x3x512xf32, #tpu.memory_space<vmem>>, vector<1x3x512xf32>
    %472 = vector.shape_cast %471 : vector<1x3x512xf32> to vector<3x512xf32>
    %473 = vector.extract_strided_slice %472 {offsets = [2, 0], sizes = [1, 512], strides = [1, 1]} : vector<3x512xf32> to vector<1x512xf32>
    %474 = arith.mulf %473, %430 : vector<1x512xf32>
    %475 = vector.broadcast %474 : vector<1x512xf32> to vector<8x512xf32>
    %476 = arith.mulf %475, %427 : vector<8x512xf32>
    %477 = arith.addf %470, %476 : vector<8x512xf32>
    %c5_128 = arith.constant 5 : index
    %c0_129 = arith.constant 0 : index
    %c0_130 = arith.constant 0 : index
    %478 = vector.load %arg5[%c5_128, %c0_129, %c0_130] : memref<9x3x512xf32, #tpu.memory_space<vmem>>, vector<1x3x512xf32>
    %479 = vector.shape_cast %478 : vector<1x3x512xf32> to vector<3x512xf32>
    %480 = vector.extract_strided_slice %479 {offsets = [2, 0], sizes = [1, 512], strides = [1, 1]} : vector<3x512xf32> to vector<1x512xf32>
    %481 = arith.mulf %480, %430 : vector<1x512xf32>
    %482 = arith.mulf %481, %5 : vector<1x512xf32>
    %483 = vector.broadcast %482 : vector<1x512xf32> to vector<8x512xf32>
    %484 = arith.mulf %483, %428 : vector<8x512xf32>
    %485 = arith.addf %477, %484 : vector<8x512xf32>
    %c6_131 = arith.constant 6 : index
    %c0_132 = arith.constant 0 : index
    %c0_133 = arith.constant 0 : index
    %486 = vector.load %arg5[%c6_131, %c0_132, %c0_133] : memref<9x3x512xf32, #tpu.memory_space<vmem>>, vector<1x3x512xf32>
    %487 = vector.shape_cast %486 : vector<1x3x512xf32> to vector<3x512xf32>
    %488 = vector.extract_strided_slice %487 {offsets = [2, 0], sizes = [1, 512], strides = [1, 1]} : vector<3x512xf32> to vector<1x512xf32>
    %489 = arith.mulf %488, %430 : vector<1x512xf32>
    %490 = arith.mulf %489, %9 : vector<1x512xf32>
    %c7_i32_134 = arith.constant 7 : i32
    %491 = tpu.dynamic_rotate %429 by %c7_i32_134 dim 0 : vector<8x512xf32>, i32 -> vector<8x512xf32>
    %492 = vector.broadcast %490 : vector<1x512xf32> to vector<8x512xf32>
    %493 = arith.mulf %492, %491 : vector<8x512xf32>
    %494 = vector.broadcast %13 : vector<8x1xf32> to vector<8x512xf32>
    %495 = arith.mulf %493, %494 : vector<8x512xf32>
    %496 = arith.addf %485, %495 : vector<8x512xf32>
    %c7_135 = arith.constant 7 : index
    %c0_136 = arith.constant 0 : index
    %c0_137 = arith.constant 0 : index
    %497 = vector.load %arg5[%c7_135, %c0_136, %c0_137] : memref<9x3x512xf32, #tpu.memory_space<vmem>>, vector<1x3x512xf32>
    %498 = vector.shape_cast %497 : vector<1x3x512xf32> to vector<3x512xf32>
    %499 = vector.extract_strided_slice %498 {offsets = [2, 0], sizes = [1, 512], strides = [1, 1]} : vector<3x512xf32> to vector<1x512xf32>
    %500 = arith.mulf %499, %430 : vector<1x512xf32>
    %c7_i32_138 = arith.constant 7 : i32
    %501 = tpu.dynamic_rotate %427 by %c7_i32_138 dim 0 : vector<8x512xf32>, i32 -> vector<8x512xf32>
    %502 = vector.broadcast %500 : vector<1x512xf32> to vector<8x512xf32>
    %503 = arith.mulf %502, %501 : vector<8x512xf32>
    %504 = vector.broadcast %13 : vector<8x1xf32> to vector<8x512xf32>
    %505 = arith.mulf %503, %504 : vector<8x512xf32>
    %506 = arith.addf %496, %505 : vector<8x512xf32>
    %c8_139 = arith.constant 8 : index
    %c0_140 = arith.constant 0 : index
    %c0_141 = arith.constant 0 : index
    %507 = vector.load %arg5[%c8_139, %c0_140, %c0_141] : memref<9x3x512xf32, #tpu.memory_space<vmem>>, vector<1x3x512xf32>
    %508 = vector.shape_cast %507 : vector<1x3x512xf32> to vector<3x512xf32>
    %509 = vector.extract_strided_slice %508 {offsets = [2, 0], sizes = [1, 512], strides = [1, 1]} : vector<3x512xf32> to vector<1x512xf32>
    %510 = arith.mulf %509, %430 : vector<1x512xf32>
    %511 = arith.mulf %510, %5 : vector<1x512xf32>
    %c7_i32_142 = arith.constant 7 : i32
    %512 = tpu.dynamic_rotate %428 by %c7_i32_142 dim 0 : vector<8x512xf32>, i32 -> vector<8x512xf32>
    %513 = vector.broadcast %511 : vector<1x512xf32> to vector<8x512xf32>
    %514 = arith.mulf %513, %512 : vector<8x512xf32>
    %515 = vector.broadcast %13 : vector<8x1xf32> to vector<8x512xf32>
    %516 = arith.mulf %514, %515 : vector<8x512xf32>
    %517 = arith.addf %506, %516 : vector<8x512xf32>
    %c0_143 = arith.constant 0 : index
    %c0_144 = arith.constant 0 : index
    %c0_145 = arith.constant 0 : index
    %518 = vector.load %arg6[%c0_143, %c0_144, %c0_145] : memref<1x8x512xf32, #tpu.memory_space<vmem>>, vector<1x8x512xf32>
    %519 = vector.shape_cast %518 : vector<1x8x512xf32> to vector<8x512xf32>
    %520 = vector.shape_cast %517 : vector<8x512xf32> to vector<1x8x512xf32>
    tpu.vector_store %arg6[%c0_143, %c0_144, %c0_145], %520 {strides = array<i32>} : memref<1x8x512xf32, #tpu.memory_space<vmem>>, vector<1x8x512xf32>,
    return
  }
  func.func @transform_0(%arg0: i32) -> (i32, i32, i32) {
    %c0_i32 = arith.constant 0 : i32
    %c0_i32_0 = arith.constant 0 : i32
    %c0_i32_1 = arith.constant 0 : i32
    return %arg0, %c0_i32, %c0_i32_0 : i32, i32, i32
  }
  func.func @transform_1(%arg0: i32) -> (i32, i32, i32, i32) {
    %c0_i32 = arith.constant 0 : i32
    %c0_i32_0 = arith.constant 0 : i32
    %c0_i32_1 = arith.constant 0 : i32
    %c0_i32_2 = arith.constant 0 : i32
    return %arg0, %c0_i32, %c0_i32_0, %c0_i32_1 : i32, i32, i32, i32
  }
  func.func @transform_2(%arg0: i32) -> (i32, i32) {
    %c0_i32 = arith.constant 0 : i32
    %c0_i32_0 = arith.constant 0 : i32
    %c0_i32_1 = arith.constant 0 : i32
    return %c0_i32, %c0_i32_0 : i32, i32
  }
  func.func @transform_3(%arg0: i32) -> (i32, i32) {
    %c0_i32 = arith.constant 0 : i32
    %c0_i32_0 = arith.constant 0 : i32
    %c0_i32_1 = arith.constant 0 : i32
    return %c0_i32, %c0_i32_0 : i32, i32
  }
  func.func @transform_4(%arg0: i32) -> (i32, i32, i32) {
    %c0_i32 = arith.constant 0 : i32
    %c0_i32_0 = arith.constant 0 : i32
    %c0_i32_1 = arith.constant 0 : i32
    %c0_i32_2 = arith.constant 0 : i32
    return %c0_i32, %c0_i32_0, %c0_i32_1 : i32, i32, i32
  }
  func.func @transform_5(%arg0: i32) -> (i32, i32, i32) {
    %c0_i32 = arith.constant 0 : i32
    %c0_i32_0 = arith.constant 0 : i32
    %c0_i32_1 = arith.constant 0 : i32
    return %arg0, %c0_i32, %c0_i32_0 : i32, i32, i32
  }
}

</mosaic_0001>

<bundles_post_ra>
// kernel: tpu_custom_call.1
= control target key start
LH: loop header
LB: loop body
LE: loop exit
PB: predicated region body
PF: predicated region fallthrough
CT: control target
= control target key end

     0   :  { %s3533_s0 = inlined_call_operand.hbm [shape: f32[2,8,512], index: 0, kind: input, shape index: {}]   ;;  %s3534_s1 = inlined_call_operand.hbm [shape: f32[2,3,8,512], index: 1, kind: input, shape index: {}]   ;;  %s3535_s2 = inlined_call_operand.vmem [shape: f32[1,3], index: 2, kind: input, shape index: {}]   ;;  %s3536_s3 = inlined_call_operand.vmem [shape: f32[1,3], index: 3, kind: input, shape index: {}]   ;;  %s3537_s4 = inlined_call_operand.hbm [shape: f32[9,3,512], index: 4, kind: input, shape index: {}]   ;;  %s3538_s5 = inlined_call_operand.hbm [shape: f32[2,8,512], index: 5, kind: output, shape index: {}]  }
   0x1   :  { %3573 = sst [smem:[#allocation41_spill]] %s3535_s2 }
   0x2   :  { %3574 = sst [smem:[#allocation42_spill]] %s3536_s3 }
   0x3   :  { %3575 = sst [smem:[#allocation43_spill]] %s3537_s4 }
   0x4   :  { %10 = vsyncpa [#allocation3], 0 }
   0x5   :  { %12 = vsyncpa [#allocation3 + $0x1], 0 }
   0x6   :  { %13 = vsyncpa [#allocation7], 0 }
   0x7   :  { %15 = vsyncpa [#allocation7 + $0x1], 0 }
   0x8   :  { %16 = vsyncpa [#allocation5], 0 }
   0x9   :  { %17 = vsyncpa [#allocation10], 0 }
   0xa   :  { %18 = vsyncpa [#allocation4], 0 }
   0xb   :  { %20 = vsyncpa [#allocation4 + $0x1], 0  ;;  %s2384_s18 = smov 0   ;;  %s2386_s19 = smov 0  }
   0xc   :  { %s2388_s20 = smov 0   ;;  %s2390_s21 = smov 0  }
   0xd LB: > { %3576 = sst [smem:[#allocation19_spill]] %s2329_s20  ;;  %s2408_s25 = sadd.s32 4294967295, %s2333_s21   ;;  %s2333_s21 = sphi %s2390_s21, %s3659_s21   ;;  %s2329_s20 = sphi %s2388_s20, %s3656_s20   ;;  %s2325_s19 = sphi %s2386_s19, %s3658_s19   ;;  %s2321_s18 = sphi %s2384_s18, %s3657_s18  }
   0xe   : > { %s3577_s4 = sld [smem:[#allocation43_spill]]  ;;  %p1972_p0 = scmp.ge.s32.totalorder %s2333_s21, 1 }
   0xf   : > { %p47_p1 = scmp.eq.s32.totalorder %s2408_s25, 0  ;;  %p172_p2 = scmp.lt.s32.totalorder %s2333_s21, 3 }
  0x10   : > { %s2335_s27 = smov [#allocation11]   ;;  %s3579_s2 = sld [smem:[#allocation41_spill]] }
  0x11   : > { %p2413_p3 = pnand %p1972_p0, %p172_p2  ;;  %s205_s28 = sshll.u32 %s2335_s27, 4  ;;  %s206_s28 = int_to_ptr.vmem [resolvable:$true] %s205_s28 }
  0x12   : > { %s3580_s3 = sld [smem:[#allocation42_spill]]  ;;  %s2336_s10 = smov 256  }
  0x13   : > { %p2023_p4 = pneg %p2413_p3  ;;  %s2337_s11 = smov 16  }
  0x14   : > { %s203_s24 = sshll.u32 %s3577_s4, 4  ;;  %s2338_s12 = smov [#allocation8]   ;;  %s204_s24 = int_to_ptr.hbm [resolvable:$true] %s203_s24 }
  0x15   : > { %p2024_p6 = pnand %p2023_p4, %p47_p1  ;;  %s2339_s13 = smov [#allocation9]  }
  0x16   : > { %s184_s6 = sshll.u32 %s3579_s2, 4  ;;  %s1971_s14 = sadd.s32 4294967294, %s2333_s21   ;;  %s185_s6 = int_to_ptr.vmem [resolvable:$true] %s184_s6 }
  0x17   : > { %2032 = dma.hbm_to_vmem [thread:$0]  (!%p2024_p6), %s204_s24, 2304, %s206_s28, [#allocation7], %s2336_s10, %s2336_s10, %s2337_s11  }
  0x18   : > { %s194_s9 = sshll.u32 %s3580_s3, 4  ;;  %s2430_s15 = sadd.s32 1, %s2333_s21   ;;  %s195_s9 = int_to_ptr.vmem [resolvable:$true] %s194_s9 }
  0x19   : > { %2026 = dma.vmem_to_smem (!%p2024_p6), %s185_s6, 16, %s2338_s12, [#allocation5]  }
  0x1a   : > { %2029 = dma.vmem_to_smem (!%p2024_p6), %s195_s9, 16, %s2339_s13, [#allocation10]  }
  0x1b   : > { %s33_s16 = sadd.s32 1, %s2329_s20  ;;  %s30_s17 = ssub.s32 %s2333_s21, %s2430_s15 }
  0x1c   : > { %p40_p7 = scmp.ne.s32.totalorder %s2329_s20, %s2325_s19  ;;  %p31_p8 = scmp.eq.s32.totalorder %s30_s17, 0 }
  0x1d   : > { %p41_p9 = scmp.eq.s32.totalorder %s2333_s21, 0  ;;  %p46_p10 = scmp.ne.s32.totalorder %s2325_s19, %s2321_s18 }
  0x1e   : > { %p159_p11 = scmp.eq.s32.totalorder %s2408_s25, 1  ;;  %p165_p2 = scmp.eq.s32.totalorder %s1971_s14, 1 }
  0x1f   : > { %s2442_s22 = scalar_select %p31_p8, %s2329_s20, %s33_s16  }
  0x20   : > { %p2444_p12 = por %p41_p9, %p40_p7  ;;  %p2450_p13 = por %p47_p1, %p46_p10 }
  0x21   : > { %3581 = sst [smem:[#allocation20_spill]] %s2442_s22  ;;  %p2454_p0 = por %p159_p11, %p40_p7 }
  0x22   : > { %p2047_p4 = scmp.lt.s32.totalorder %s2333_s21, 2  ;;  %s2460_s28 = sand.u32 1, %s2329_s20  }
  0x23   : > { %p2462_p6 = por %p165_p2, %p46_p10  ;;  %s1977_s30 = sshll.u32 %s2460_s28, 5 }
  0x24   : > { %s2000_s6 = sshll.u32 %s2333_s21, 5  ;;  %s223_s11 = scalar_lea.vmem [#allocation2], %s1977_s30 }
  0x25   : > { %s228_s9 = scalar_lea.hbm %s3533_s0, %s2000_s6  ;;  %s232_s12 = sshll.u32 %s223_s11, 4  ;;  %s233_s12 = int_to_ptr.vmem [resolvable:$true] %s232_s12 }
  0x26   : > { %s230_s10 = sshll.u32 %s228_s9, 4  ;;  %p2473_p7 = pnand %p2047_p4, %p2444_p12  ;;  %s231_s10 = int_to_ptr.hbm [resolvable:$true] %s230_s10 }
  0x27   : > { %s2002_s14 = smul.u32 96, %s2460_s28  ;;  %s239_s16 = sand.u32 1, %s2333_s21  }
  0x28   : > { %s2003_s17 = smul.u32 96, %s2333_s21  ;;  %s220_s2 = scalar_lea.sflag [#allocation3], %s2460_s28 }
  0x29   : > { %s2191_s3 = sshra.s32 %s231_s10, 4  ;;  %p2195_p9 = pneg %p2473_p7  ;;  %s2192_s3 = int_to_ptr.hbm [resolvable:$true] %s2191_s3 }
  0x2a   : > { %s2193_s7 = scalar_lea.hbm %s2192_s3, 32  ;;  %s2198_s6 = scalar_lea.hbm %s3533_s0, 64 }
  0x2b   : > { %p2194_p8 = scmp.ne.s32.totalorder %s2192_s3, %s2193_s7  ;;  %p2199_p12 = scmp.lt.s32.totalorder %s2192_s3, %s3533_s0 }
  0x2c   : > { %p2200_p2 = scmp.lt.s32.totalorder %s2198_s6, %s2193_s7 }
  0x2d   : > { %p2196_p10 = pnand %p2195_p9, %p2194_p8 }
  0x2e   : > { %p2201_p4 = por %p2200_p2, %p2199_p12 }
  0x2f   : > { %p2197_p11 = pneg %p2196_p10 }
  0x31   : > { %p2202_p5 = pnand %p2201_p4, %p2197_p11 }
  0x33   : > { %2205 = shalt.err (!%p2202_p5)
}
  0x34   : > { %2036 = dma.hbm_to_vmem [thread:$0]  (!%p2473_p7), %s231_s10, 512, %s233_s12, %s220_s2  }
  0x35   : > { %s243_s28 = scalar_lea.vmem [#allocation6], %s2002_s14  ;;  %s248_s23 = scalar_lea.hbm %s3534_s1, %s2003_s17 }
  0x36   : > { %s251_s11 = sshll.u32 %s243_s28, 4  ;;  %s249_s30 = sshll.u32 %s248_s23, 4  ;;  %s252_s11 = int_to_ptr.vmem [resolvable:$true] %s251_s11  ;;  %s250_s30 = int_to_ptr.hbm [resolvable:$true] %s249_s30 }
  0x37   : > { %s240_s20 = scalar_lea.sflag [#allocation7], %s239_s16  ;;  %s2221_s8 = sshra.s32 %s250_s30, 4  ;;  %s2222_s8 = int_to_ptr.hbm [resolvable:$true] %s2221_s8 }
  0x38   : > { %s2223_s3 = scalar_lea.hbm %s2222_s8, 96  ;;  %s2228_s10 = scalar_lea.hbm %s3534_s1, 192 }
  0x39   : > { %p2224_p8 = scmp.ne.s32.totalorder %s2222_s8, %s2223_s3  ;;  %p2229_p11 = scmp.lt.s32.totalorder %s2222_s8, %s3534_s1 }
  0x3a   : > { %p2230_p12 = scmp.lt.s32.totalorder %s2228_s10, %s2223_s3 }
  0x3b   : > { %p2226_p5 = pnand %p2224_p8, %p2195_p9 }
  0x3c   : > { %p2231_p2 = por %p2230_p12, %p2229_p11 }
  0x3d   : > { %p2227_p10 = pneg %p2226_p5 }
  0x3f   : > { %p2232_p4 = pnand %p2231_p2, %p2227_p10 }
  0x41   : > { %2235 = shalt.err (!%p2232_p4)
}
  0x42   : > { %s2340_s4 = smov 512   ;;  %s2341_s22 = smov 32  }
  0x43   : > { %2039 = dma.hbm_to_vmem [thread:$0]  (!%p2473_p7), %s250_s30, 1536, %s252_s11, %s240_s20, %s2340_s4, %s2340_s4, %s2341_s22  }
  0x44   : > { %263 = sbr.rel (%p2413_p3) target bundleno = 1249 (0x4e1), region = 40 }
  0x49   : > { %s2511_s16 = sand.u32 1, %s2325_s19  }
  0x4a   : > { %s1982_s17 = sshll.u32 %s2511_s16, 5  ;;  %s266_s6 = scalar_lea.sflag [#allocation3], %s2511_s16 }
  0x4b   : > { %s2517_s9 = scalar_lea.vmem [#allocation2], %s1982_s17 }
  0x4c   : > { %2296 = dma.done.wait (%p2450_p13), %s266_s6, 512  }
  0x4d   : > { %2298 = vsyncadd (%p2450_p13), %s266_s6, 4294966784  ;;  %s275_s20 = sand.u32 1, %s2408_s25   ;;  %s2004_s26 = smul.u32 96, %s2511_s16 }
  0x4e   : > { %s276_s13 = scalar_lea.sflag [#allocation7], %s275_s20 }
  0x4f   : > { %s2525_s28 = scalar_lea.vmem [#allocation6], %s2004_s26 }
  0x50   : > { %2300 = dma.done.wait (%p2450_p13), %s276_s13, 1536  }
  0x51   : > { %2302 = vsyncadd (%p2450_p13), %s276_s13, 4294965760 }
  0x52   : > { %2304 = dma.done.wait (%p47_p1), [#allocation5], 16  }
  0x53   : > { %2306 = vsyncadd (%p47_p1), [#allocation5], 4294967280 }
  0x54   : > { %2308 = dma.done.wait (%p47_p1), [#allocation10], 16  }
  0x55   : > { %2310 = vsyncadd (%p47_p1), [#allocation10], 4294967280 }
  0x56   : > { %2312 = dma.done.wait (%p47_p1), [#allocation7], 2304  }
  0x57   : > { %2314 = vsyncadd (%p47_p1), [#allocation7], 4294964992 }
  0x58   : > { %300 = sfence }
  0x59   : > { %v2544_v0 = vld [vmem:[%s2525_s28] sm:$0xff]  ;;  %v2556_v6 = vld [vmem:[%s2525_s28 + $0x8] sm:$0xff]  ;;  %v2566_v10 = vld [vmem:[%s2525_s28 + $0x10] sm:$0xff]  ;;  %vm556_vm0 = vcmask 1040384   ;;  %vm561_vm1 = vcmask 1041408   ;;  %s2342_s24 = smov 96  }
  0x5a   : > { %v2547_v1 = vld [vmem:[%s2525_s28 + $0x20] sm:$0xff]  ;;  %v484_v3 = vrot.slane %v2544_v0, 4  ;;  %v2559_v7 = vld [vmem:[%s2525_s28 + $0x28] sm:$0xff]  ;;  %v490_v9 = vrot.slane %v2556_v6, 4  ;;  %v2573_v15 = vld [vmem:[%s2525_s28 + $0x30] sm:$0xff]  ;;  %v496_v18 = vrot.slane %v2566_v10, 4 }
  0x5b   : > { %v2550_v2 = vld [vmem:[%s2525_s28 + $0x40] sm:$0xff]  ;;  %v508_v4 = vrot.slane %v2547_v1, 4  ;;  %v2562_v8 = vld [vmem:[%s2525_s28 + $0x48] sm:$0xff]  ;;  %v514_v14 = vrot.slane %v2559_v7, 4  ;;  %v520_v19 = vrot.slane %v2573_v15, 4  ;;  %v2584_v42 = vld [vmem:[%s2525_s28 + $0x50] sm:$0xff] }
  0x5c   : > { %v532_v5 = vrot.slane %v2550_v2, 4  ;;  %v485_v11 = vadd.f32 %v484_v3, %v2544_v0  ;;  %v491_v16 = vadd.f32 %v490_v9, %v2556_v6  ;;  %v538_v17 = vrot.slane %v2562_v8, 4  ;;  %v2587_v43 = vld [vmem:[%s2525_s28 + $0x18] sm:$0xff]  ;;  %s2343_s11 = smov 32   ;;  %s2344_s23 = smov 64  }
  0x5d   : > { %v509_v12 = vadd.f32 %v508_v4, %v2547_v1  ;;  %v515_v23 = vadd.f32 %v514_v14, %v2559_v7  ;;  %v497_v26 = vadd.f32 %v496_v18, %v2566_v10  ;;  %v521_v27 = vadd.f32 %v520_v19, %v2573_v15  ;;  %v2590_v52 = vld [vmem:[%s2525_s28 + $0x38] sm:$0xff]  ;;  %s2345_s30 = smov 112   ;;  %s2346_s8 = smov 120  }
  0x5e   : > { %v533_v13 = vadd.f32 %v532_v5, %v2550_v2  ;;  %v486_v20 = vrot.slane %v485_v11, 2  ;;  %v492_v24 = vrot.slane %v491_v16, 2  ;;  %v539_v25 = vadd.f32 %v538_v17, %v2562_v8  ;;  %v2595_v56 = vld [vmem:[%s2525_s28 + $0x58] sm:$0xff]  ;;  %s2347_s3 = smov 16   ;;  %s2348_s7 = smov 8  }
  0x5f   : > { %v510_v21 = vrot.slane %v509_v12, 2  ;;  %v516_v31 = vrot.slane %v515_v23, 2  ;;  %v498_v34 = vrot.slane %v497_v26, 2  ;;  %v522_v35 = vrot.slane %v521_v27, 2  ;;  %s2349_s2 = smov 1   ;;  %s2350_s10 = smov 127  }
  0x60   : > { %v534_v22 = vrot.slane %v533_v13, 2  ;;  %v487_v28 = vadd.f32 %v486_v20, %v485_v11  ;;  %v493_v32 = vadd.f32 %v492_v24, %v491_v16  ;;  %v540_v33 = vrot.slane %v539_v25, 2  ;;  %s1993_s12 = sld [smem:[#allocation9 + $0x1]]  ;;  %s2351_s20 = smov 104  }
  0x61   : > { %v511_v29 = vadd.f32 %v510_v21, %v509_v12  ;;  %v517_v39 = vadd.f32 %v516_v31, %v515_v23  ;;  %v499_v50 = vadd.f32 %v498_v34, %v497_v26  ;;  %v523_v51 = vadd.f32 %v522_v35, %v521_v27  ;;  %s672_s14 = sld [smem:[#allocation9]]  ;;  %s3429_s26 = scalar_lea.vmem [#allocation12], %s1982_s17 }
  0x62   : > { %v535_v30 = vadd.f32 %v534_v22, %v533_v13  ;;  %v488_v36 = vrot.slane %v487_v28, 1  ;;  %v494_v40 = vrot.slane %v493_v32, 1  ;;  %v541_v41 = vadd.f32 %v540_v33, %v539_v25  ;;  %s1994_s4 = sld [smem:[#allocation9 + $0x2]]  ;;  %s2001_s17 = sshll.u32 %s2408_s25, 5 }
  0x63   : > { %v512_v37 = vrot.slane %v511_v29, 1  ;;  %v518_v47 = vrot.slane %v517_v39, 1  ;;  %v544_v55 = vrot.slane %v2584_v42, 4  ;;  %v502_v57 = vrot.slane %v2587_v43, 4  ;;  %s467_s22 = sld [smem:[#allocation8]]  ;;  %s1844_s25 = sshll.u32 %s3429_s26, 4  ;;  %s1845_s25 = int_to_ptr.vmem [resolvable:$true] %s1844_s25 }
  0x64   : > { %v536_v38 = vrot.slane %v535_v30, 1  ;;  %v489_v44 = vadd.f32 %v488_v36, %v487_v28  ;;  %v495_v48 = vadd.f32 %v494_v40, %v493_v32  ;;  %v542_v49 = vrot.slane %v541_v41, 1  ;;  %s1991_s6 = sld [smem:[#allocation8 + $0x1]] }
  0x65   : > { %v513_v45 = vadd.f32 %v512_v37, %v511_v29  ;;  %v519_v54 = vadd.f32 %v518_v47, %v517_v39  ;;  %v545_v61 = vadd.f32 %v544_v55, %v2584_v42  ;;  %v503_v62 = vadd.f32 %v502_v57, %v2587_v43 }
  0x66   : > { %v537_v46 = vadd.f32 %v536_v38, %v535_v30  ;;  %v543_v59 = vadd.f32 %v542_v49, %v541_v41  ;;  %v526_v63 = vrot.slane %v2590_v52, 4  ;;  %v500_v4 = vrot.slane %v499_v50, 1 }
  0x67   : > { %v557_v53 = vsel %vm556_vm0, %v489_v44, %v513_v45  ;;  %v558_v60 = vsel %vm556_vm0, %v495_v48, %v519_v54  ;;  %v550_v5 = vrot.slane %v2595_v56, 4  ;;  %v524_v9 = vrot.slane %v523_v51, 1 }
  0x68   : > { %v562_v58 = vsel %vm561_vm1, %v557_v53, %v537_v46  ;;  %v563_v3 = vsel %vm561_vm1, %v558_v60, %v543_v59  ;;  %v546_v11 = vrot.slane %v545_v61, 2  ;;  %v504_v12 = vrot.slane %v503_v62, 2 }
  0x69   : > { %567 = vrot.lane.b32.xlu0 %v562_v58, %s2342_s24  ;;  %575 = vrot.lane.b32.xlu1 %v562_v58, %s2343_s11  ;;  %v527_v13 = vadd.f32 %v526_v63, %v2590_v52  ;;  %v551_v14 = vadd.f32 %v550_v5, %v2595_v56  ;;  %v501_v18 = vadd.f32 %v500_v4, %v499_v50  ;;  %vm634_vm2 = vcmask 64512  }
  0x6a   : > { %585 = vrot.lane.b32.xlu2 %v563_v3, %s2344_s23  ;;  %v547_v16 = vadd.f32 %v546_v11, %v545_v61  ;;  %v525_v20 = vadd.f32 %v524_v9, %v523_v51  ;;  %v505_v22 = vadd.f32 %v504_v12, %v503_v62  ;;  %vm636_vm3 = vcmask 130048  }
  0x6b   : > { %v528_v17 = vrot.slane %v527_v13, 2  ;;  %v552_v19 = vrot.slane %v551_v14, 2  ;;  %vm638_vm4 = vcmask 195584   ;;  %vm478_vm5 = vcmask 252928  }
  0x6c   : > { %v548_v21 = vrot.slane %v547_v16, 1  ;;  %v559_v26 = vsel %vm556_vm0, %v501_v18, %v525_v20  ;;  %v506_v27 = vrot.slane %v505_v22, 1  ;;  %vm465_vm6 = vcmask 7168  }
  0x6d   : > { %v529_v23 = vadd.f32 %v528_v17, %v527_v13  ;;  %v553_v25 = vadd.f32 %v552_v19, %v551_v14  ;;  %vm730_vm7 = vcmask 59392   ;;  %vm735_vm8 = vcmask 1042432  }
  0x6e   : > { %v549_v24 = vadd.f32 %v548_v21, %v547_v16  ;;  %v507_v31 = vadd.f32 %v506_v27, %v505_v22  ;;  %v365_v16 = vld [vmem:[%s2517_s9] sm:$0xff]  ;;  %v366_v21 = vld [vmem:[%s2517_s9 + $0x8] sm:$0xff] }
  0x6f   : > { %v530_v28 = vrot.slane %v529_v23, 1  ;;  %v554_v30 = vrot.slane %v553_v25, 1  ;;  %v381_v17 = vrot.slane %v365_v16, 4 }
  0x70   : > { %v564_v29 = vsel %vm561_vm1, %v559_v26, %v549_v24 }
  0x71   : > { %571 = vrot.lane.b32.xlu0 %v562_v58, %s2344_s23  ;;  %581 = vrot.lane.b32.xlu1 %v563_v3, %s2342_s24  ;;  %v531_v32 = vadd.f32 %v530_v28, %v529_v23  ;;  %v555_v33 = vadd.f32 %v554_v30, %v553_v25  ;;  %v382_v18 = vadd.f32 %v381_v17, %v365_v16  ;;  %v387_v23 = vrot.slane %v366_v21, 4  ;;  %v367_v28 = vld [vmem:[%s2517_s9 + $0x10] sm:$0xff] }
  0x72   : > { %589 = vrot.lane.b32.xlu2 %v563_v3, %s2343_s11  ;;  %v393_v30 = vrot.slane %v367_v28, 4 }
  0x73   : > { %v560_v34 = vsel %vm556_vm0, %v507_v31, %v531_v32  ;;  %v383_v19 = vrot.slane %v382_v18, 2  ;;  %v388_v25 = vadd.f32 %v387_v23, %v366_v21 }
  0x74   : > { %v565_v35 = vsel %vm561_vm1, %v560_v34, %v555_v33  ;;  %v394_v32 = vadd.f32 %v393_v30, %v367_v28 }
  0x75   : > { %v384_v20 = vadd.f32 %v383_v19, %v382_v18  ;;  %v389_v26 = vrot.slane %v388_v25, 2 }
  0x76   : > { %v395_v33 = vrot.slane %v394_v32, 2 }
  0x77   : > { %v385_v22 = vrot.slane %v384_v20, 1  ;;  %v390_v27 = vadd.f32 %v389_v26, %v388_v25 }
  0x78   : > { %v396_v34 = vadd.f32 %v395_v33, %v394_v32 }
  0x79   : > { %595 = vrot.lane.b32.xlu0 %v564_v29, %s2342_s24  ;;  %599 = vrot.lane.b32.xlu1 %v564_v29, %s2344_s23  ;;  %v386_v24 = vadd.f32 %v385_v22, %v384_v20 }
  0x7a   : > { %603 = vrot.lane.b32.xlu2 %v564_v29, %s2343_s11 }
  0x81   : > { %609 = vrot.lane.b32.xlu0 %v565_v35, %s2342_s24  ;;  %613 = vrot.lane.b32.xlu1 %v565_v35, %s2344_s23 }
  0x82   : > { %617 = vrot.lane.b32.xlu2 %v565_v35, %s2343_s11 }
  0xc4   : > { %v586_v38 = vpop.permute.xlu2 %585 }
  0xcc   : > { %v590_v46 = vpop.permute.xlu2 %589 }
  0xd4   : > { %v604_v55 = vpop.permute.xlu2 %603 }
  0xdb   : > { %v568_v36 = vpop.permute.xlu0 %567  ;;  %v576_v37 = vpop.permute.xlu1 %575 }
  0xdc   : > { %v570_v39 = vadd.f32 %v568_v36, %v562_v58  ;;  %v618_v4 = vpop.permute.xlu2 %617  ;;  %v397_v36 = vrot.slane %v396_v34, 1 }
  0xe3   : > { %v572_v40 = vpop.permute.xlu0 %571  ;;  %v582_v45 = vpop.permute.xlu1 %581 }
  0xe4   : > { %v574_v41 = vadd.f32 %v572_v40, %v570_v39 }
  0xe6   : > { %v578_v44 = vadd.f32 %v576_v37, %v574_v41 }
  0xe8   : > { %v579_v47 = vadd.f32 %v578_v44, %v563_v3 }
  0xea   : > { %v584_v48 = vadd.f32 %v582_v45, %v579_v47 }
  0xeb   : > { %v596_v50 = vpop.permute.xlu0 %595  ;;  %v600_v53 = vpop.permute.xlu1 %599 }
  0xec   : > { %v588_v49 = vadd.f32 %v586_v38, %v584_v48  ;;  %v398_v38 = vadd.f32 %v397_v36, %v396_v34 }
  0xee   : > { %v592_v51 = vadd.f32 %v590_v46, %v588_v49 }
  0xf0   : > { %v593_v54 = vadd.f32 %v592_v51, %v564_v29  ;;  %v391_v29 = vrot.slane %v390_v27, 1 }
  0xf2   : > { %v598_v57 = vadd.f32 %v596_v50, %v593_v54  ;;  %v392_v31 = vadd.f32 %v391_v29, %v390_v27 }
  0xf3   : > { %v610_v61 = vpop.permute.xlu0 %609  ;;  %v614_v63 = vpop.permute.xlu1 %613 }
  0xf4   : > { %v602_v59 = vadd.f32 %v600_v53, %v598_v57 }
  0xf6   : > { %v606_v60 = vadd.f32 %v604_v55, %v602_v59 }
  0xf8   : > { %v607_v62 = vadd.f32 %v606_v60, %v565_v35  ;;  %v368_v35 = vld [vmem:[%s2517_s9 + $0x18] sm:$0xff]  ;;  %s1992_s9 = sld [smem:[#allocation8 + $0x2]] }
  0xf9   : > { %v399_v37 = vrot.slane %v368_v35, 4 }
  0xfa   : > { %v612_v58 = vadd.f32 %v610_v61, %v607_v62 }
  0xfb   : > { %v400_v39 = vadd.f32 %v399_v37, %v368_v35  ;;  %v673_v35 = vstv %s672_s14  ;;  %v685_v37 = vstv %s1994_s4 }
  0xfc   : > { %v616_v5 = vadd.f32 %v614_v63, %v612_v58 }
  0xfd   : > { %v401_v40 = vrot.slane %v400_v39, 2 }
  0xfe   : > { %v620_v9 = vadd.f32 %v618_v4, %v616_v5 }
  0xff   : > { %v402_v41 = vadd.f32 %v401_v40, %v400_v39 }
 0x100   : > { %v2623_v11 = vmul.f32 0.0078125, %v620_v9 }
 0x101   : > { %v403_v44 = vrot.slane %v402_v41, 1 }
 0x102   : > { %652 = vrot.lane.b32.xlu0 %v2623_v11, %s2345_s30  ;;  %640 = vrot.lane.b32.xlu1 %v2623_v11, %s2346_s8  ;;  %v627_v3 = vrot.slane %v2623_v11, 2  ;;  %v655_v12 = vrot.slane %v2623_v11, 6  ;;  %v623_v13 = vrot.slane %v2623_v11, 1  ;;  %v644_v14 = vrot.slane %v2623_v11, 7 }
 0x103   : > { %v404_v45 = vadd.f32 %v403_v44, %v402_v41 }
 0x104   : > { %628 = vrot.lane.b32.xlu2 %v627_v3, %s2347_s3 }
 0x10a   : > { %656 = vrot.lane.b32.xlu1 %v655_v12, %s2345_s30  ;;  %624 = vrot.lane.b32.xlu0 %v623_v13, %s2348_s7 }
 0x10c   : > { %631 = vrot.lane.b32.xlu2 %v2623_v11, %s2347_s3 }
 0x112   : > { %659 = vrot.lane.b32.xlu1 %v644_v14, %s2346_s8  ;;  %646 = vrot.lane.b32.xlu0 %v2623_v11, %s2348_s7 }
 0x114   : > { %406 = vrot.lane.b32.xlu2 %v386_v24, %s2342_s24 }
 0x11a   : > { %414 = vrot.lane.b32.xlu1 %v386_v24, %s2343_s11  ;;  %410 = vrot.lane.b32.xlu0 %v386_v24, %s2344_s23 }
 0x11c   : > { %420 = vrot.lane.b32.xlu2 %v392_v31, %s2342_s24 }
 0x122   : > { %428 = vrot.lane.b32.xlu1 %v392_v31, %s2343_s11  ;;  %424 = vrot.lane.b32.xlu0 %v392_v31, %s2344_s23 }
 0x124   : > { %434 = vrot.lane.b32.xlu2 %v398_v38, %s2342_s24 }
 0x12a   : > { %442 = vrot.lane.b32.xlu1 %v398_v38, %s2343_s11  ;;  %438 = vrot.lane.b32.xlu0 %v398_v38, %s2344_s23 }
 0x12c   : > { %448 = vrot.lane.b32.xlu2 %v404_v45, %s2342_s24 }
 0x132   : > { %452 = vrot.lane.b32.xlu1 %v404_v45, %s2344_s23 }
 0x15e   : > { %v629_v48 = vpop.permute.xlu2 %628 }
 0x166   : > { %v632_v55 = vpop.permute.xlu2 %631 }
 0x16e   : > { %v407_v3 = vpop.permute.xlu2 %406 }
 0x16f   : > { %v409_v12 = vadd.f32 %v407_v3, %v386_v24 }
 0x174   : > { %v653_v46 = vpop.permute.xlu0 %652  ;;  %v641_v47 = vpop.permute.xlu1 %640 }
 0x175   : > { %v649_v53 = vsel %vm634_vm2, %v641_v47, %v623_v13 }
 0x176   : > { %v650_v61 = vsel %vm636_vm3, %v649_v53, %v644_v14 }
 0x17c   : > { %v657_v49 = vpop.permute.xlu1 %656  ;;  %v625_v50 = vpop.permute.xlu0 %624 }
 0x17d   : > { %v635_v51 = vsel %vm634_vm2, %v2623_v11, %v625_v50  ;;  %v662_v57 = vsel %vm634_vm2, %v653_v46, %v657_v49 }
 0x17e   : > { %v637_v54 = vsel %vm636_vm3, %v635_v51, %v629_v48 }
 0x17f   : > { %v639_v58 = vsel %vm638_vm4, %v637_v54, %v632_v55 }
 0x184   : > { %v660_v59 = vpop.permute.xlu1 %659  ;;  %v647_v60 = vpop.permute.xlu0 %646 }
 0x185   : > { %v663_v62 = vsel %vm636_vm3, %v662_v57, %v660_v59  ;;  %v651_v63 = vsel %vm638_vm4, %v650_v61, %v647_v60 }
 0x186   : > { %v664_v4 = vsel %vm638_vm4, %v663_v62, %v2623_v11  ;;  %v665_v5 = vsel %vm556_vm0, %v639_v58, %v651_v63  ;;  %v421_v11 = vpop.permute.xlu2 %420  ;;  %v468_v62 = vstv %s467_s22  ;;  %v472_v58 = vstv %s1991_s6 }
 0x187   : > { %v666_v9 = vsel %vm561_vm1, %v665_v5, %v664_v4 }
 0x188   : > { %668 = vrot.lane.b32.xlu0 %v666_v9, %s2349_s2  ;;  %680 = vrot.lane.b32.xlu2 %v666_v9, %s2350_s10 }
 0x18c   : > { %v411_v13 = vpop.permute.xlu0 %410  ;;  %v415_v16 = vpop.permute.xlu1 %414 }
 0x18d   : > { %v413_v14 = vadd.f32 %v411_v13, %v409_v12  ;;  %v481_v12 = vstv %s1992_s9 }
 0x18e   : > { %v435_v22 = vpop.permute.xlu2 %434 }
 0x18f   : > { %v417_v17 = vadd.f32 %v415_v16, %v413_v14 }
 0x190   : > { %456 = vrot.lane.b32.xlu0 %v404_v45, %s2343_s11 }
 0x191   : > { %v418_v18 = vadd.f32 %v417_v17, %v392_v31  ;;  %v677_v31 = vstv %s1993_s12 }
 0x192   : > { %v678_v40 = vmul.f32 %v677_v31, %v666_v9 }
 0x193   : > { %v423_v19 = vadd.f32 %v421_v11, %v418_v18 }
 0x194   : > { %v425_v20 = vpop.permute.xlu0 %424  ;;  %v429_v23 = vpop.permute.xlu1 %428 }
 0x195   : > { %v427_v21 = vadd.f32 %v425_v20, %v423_v19 }
 0x196   : > { %v449_v28 = vpop.permute.xlu2 %448 }
 0x197   : > { %v431_v25 = vadd.f32 %v429_v23, %v427_v21 }
 0x199   : > { %v432_v26 = vadd.f32 %v431_v25, %v398_v38 }
 0x19b   : > { %v437_v27 = vadd.f32 %v435_v22, %v432_v26 }
 0x19c   : > { %v439_v29 = vpop.permute.xlu0 %438  ;;  %v443_v24 = vpop.permute.xlu1 %442 }
 0x19d   : > { %v441_v30 = vadd.f32 %v439_v29, %v437_v27 }
 0x19f   : > { %v445_v32 = vadd.f32 %v443_v24, %v441_v30 }
 0x1a1   : > { %v446_v34 = vadd.f32 %v445_v32, %v404_v45 }
 0x1a3   : > { %v451_v44 = vadd.f32 %v449_v28, %v446_v34 }
 0x1a4   : > { %v453_v47 = vpop.permute.xlu1 %452 }
 0x1a5   : > { %v455_v50 = vadd.f32 %v453_v47, %v451_v44 }
 0x1e2   : > { %v681_v33 = vpop.permute.xlu2 %680 }
 0x1e3   : > { %v683_v39 = vsel %vm478_vm5, %v681_v33, 0.0 }
 0x1e4   : > { %v686_v46 = vmul.f32 %v685_v37, %v683_v39 }
 0x1fa   : > { %v669_v36 = vpop.permute.xlu0 %668 }
 0x1fb   : > { %v671_v38 = vsel %vm465_vm6, 0.0, %v669_v36 }
 0x1fc   : > { %v674_v41 = vmul.f32 %v673_v35, %v671_v38 }
 0x1fe   : > { %v679_v48 = vadd.f32 %v678_v40, %v674_v41 }
 0x200   : > { %v687_v49 = vadd.f32 %v686_v46, %v679_v48 }
 0x202   : > { %v457_v51 = vpop.permute.xlu0 %456  ;;  %701 = vrot.lane.b32.xlu0 %v687_v49, %s2346_s8  ;;  %v692_v54 = vrot.slane %v687_v49, 1  ;;  %v694_v55 = vrot.slane %v687_v49, 2 }
 0x203   : > { %v459_v53 = vadd.f32 %v457_v51, %v455_v50 }
 0x205   : > { %v460_v45 = vmul.f32 0.0078125, %v459_v53 }
 0x207   : > { %475 = vrot.lane.b32.xlu2 %v460_v45, %s2350_s10  ;;  %462 = vrot.lane.b32.xlu1 %v460_v45, %s2349_s2  ;;  %v473_v3 = vmul.f32 %v472_v58, %v460_v45  ;;  %s2271_s2 = scalar_lea.hbm %s3538_s5, 64 }
 0x20a   : > { %707 = vrot.lane.b32.xlu0 %v692_v54, %s2346_s8 }
 0x20f   : > { %689 = vrot.lane.b32.xlu2 %v687_v49, %s2345_s30  ;;  %704 = vrot.lane.b32.xlu1 %v692_v54, %s2348_s7 }
 0x217   : > { %710 = vrot.lane.b32.xlu2 %v694_v55, %s2348_s7  ;;  %695 = vrot.lane.b32.xlu1 %v694_v55, %s2347_s3 }
 0x261   : > { %v476_v57 = vpop.permute.xlu2 %475 }
 0x262   : > { %v479_v13 = vsel %vm478_vm5, %v476_v57, 0.0 }
 0x263   : > { %v482_v11 = vmul.f32 %v481_v12, %v479_v13 }
 0x269   : > { %v690_v61 = vpop.permute.xlu2 %689 }
 0x26a   : > { %v698_v18 = vsel %vm634_vm2, %v687_v49, %v690_v61  ;;  %v717_v21 = vsel %vm634_vm2, %v690_v61, %v692_v54 }
 0x26b   : > { %v699_v25 = vsel %vm636_vm3, %v698_v18, %v692_v54 }
 0x271   : > { %v711_v19 = vpop.permute.xlu2 %710 }
 0x274   : > { %v702_v60 = vpop.permute.xlu0 %701 }
 0x279   : > { %v463_v59 = vpop.permute.xlu1 %462 }
 0x27a   : > { %v466_v63 = vsel %vm465_vm6, 0.0, %v463_v59 }
 0x27b   : > { %v469_v4 = vmul.f32 %v468_v62, %v466_v63 }
 0x27c   : > { %v708_v14 = vpop.permute.xlu0 %707 }
 0x27d   : > { %v474_v16 = vadd.f32 %v473_v3, %v469_v4 }
 0x27f   : > { %v483_v22 = vadd.f32 %v482_v11, %v474_v16 }
 0x281   : > { %v705_v5 = vpop.permute.xlu1 %704  ;;  %v728_v24 = vperm.slane %v483_v22, 0 }
 0x282   : > { %v713_v9 = vsel %vm634_vm2, %v702_v60, %v705_v5 }
 0x283   : > { %v714_v17 = vsel %vm636_vm3, %v713_v9, %v708_v14 }
 0x284   : > { %v715_v20 = vsel %vm638_vm4, %v714_v17, %v711_v19 }
 0x285   : > { %v721_v28 = vrot.slane %v715_v20, 7 }
 0x289   : > { %v696_v23 = vpop.permute.xlu1 %695 }
 0x28a   : > { %v700_v26 = vsel %vm638_vm4, %v699_v25, %v696_v23  ;;  %v718_v27 = vsel %vm636_vm3, %v717_v21, %v696_v23 }
 0x28b   : > { %v719_v29 = vsel %vm638_vm4, %v718_v27, %v694_v55  ;;  %v726_v32 = vsel %vm556_vm0, %v700_v26, %v721_v28 }
 0x28c   : > { %v724_v30 = vrot.slane %v719_v29, 6 }
 0x28e   : > { %v727_v33 = vsel %vm561_vm1, %v726_v32, %v724_v30 }
 0x28f   : > { %v729_v31 = vmul.f32 %v728_v24, %v727_v33 }
 0x291   : > { %847 = vrot.lane.b32.xlu2 %v729_v31, %s2351_s20  ;;  %808 = vrot.lane.b32.xlu1 %v729_v31, %s2345_s30  ;;  %v731_v34 = vsel %vm730_vm7, %v729_v31, 0.0 }
 0x292   : > { %769 = vrot.lane.b32.xlu0 %v729_v31, %s2346_s8 }
 0x2bc   : > { %732 = vadd.xlane.f32.xlu0 %v731_v34 }
 0x2d0   : > { %905 = vrot.lane.b32.xlu0 %v2544_v0, %s2342_s24 }
 0x2d8   : > { %909 = vrot.lane.b32.xlu0 %v2566_v10, %s2342_s24 }
 0x2eb   : > { %v848_v38 = vpop.permute.xlu2 %847 }
 0x2ec   : > { %v850_v40 = vsel %vm730_vm7, %v848_v38, 0.0 }
 0x303   : > { %v809_v35 = vpop.permute.xlu1 %808 }
 0x304   : > { %v770_v36 = vpop.permute.xlu0 %769  ;;  %v811_v37 = vsel %vm730_vm7, %v809_v35, 0.0 }
 0x305   : > { %812 = vadd.xlane.f32.xlu2 %v811_v37  ;;  %v772_v39 = vsel %vm730_vm7, %v770_v36, 0.0 }
 0x306   : > { %773 = vadd.xlane.f32.xlu1 %v772_v39 }
 0x30d   : > { %851 = vadd.xlane.f32.xlu2 %v850_v40 }
 0x31f   : > { %907 = vrot.lane.b32.xlu1 %v2556_v6, %s2342_s24 }
 0x325   : > { %911 = vrot.lane.b32.xlu2 %v2587_v43, %s2342_s24 }
 0x327   : > { %918 = vrot.lane.b32.xlu1 %v2544_v0, %s2343_s11 }
 0x32f   : > { %v733_v41 = vpop.xlane.xlu0 %732 }
 0x330   : > { %v734_v44 = vmul.f32 0.35355338, %v733_v41 }
 0x332   : > { %v736_v46 = vsel %vm735_vm8, %v734_v44, -inf }
 0x333   : > { %v737_v47 = vrot.slane %v736_v46, 4 }
 0x335   : > { %v738_v48 = vmax.f32 %v736_v46, %v737_v47 }
 0x337   : > { %v739_v49 = vrot.slane %v738_v48, 2 }
 0x339   : > { %v740_v50 = vmax.f32 %v738_v48, %v739_v49 }
 0x33b   : > { %v741_v51 = vrot.slane %v740_v50, 1 }
 0x33d   : > { %v742_v53 = vmax.f32 %v740_v50, %v741_v51 }
 0x33f   : > { %v743_v45 = vsub.f32 %v734_v44, %v742_v53 }
 0x341   : > { %v744_v54 = vmul.f32 1.442695, %v743_v45 }
 0x343   : > { %2103 = vpow2.f32 %v744_v54 }
 0x349   : > { %v2708_v55 = vpop.eup %2103 }
 0x34a   : > { %v746_v61 = vsel %vm735_vm8, %v2708_v55, 0.0 }
 0x34b   : > { %v747_v5 = vrot.slane %v746_v61, 4 }
 0x34d   : > { %v748_v17 = vadd.f32 %v747_v5, %v746_v61 }
 0x34f   : > { %v749_v23 = vrot.slane %v748_v17, 2 }
 0x351   : > { %v750_v24 = vadd.f32 %v749_v23, %v748_v17 }
 0x353   : > { %v751_v35 = vrot.slane %v750_v24, 1 }
 0x355   : > { %v2717_v38 = vadd.f32 %v751_v35, %v750_v24 }
 0x357   : > { %vm758_vm9 = vweird.f32 %v2717_v38 }
 0x378   : > { %v813_v57 = vpop.xlane.xlu2 %812 }
 0x379   : > { %v814_v59 = vmul.f32 0.35355338, %v813_v57  ;;  %v774_v60 = vpop.xlane.xlu1 %773 }
 0x37a   : > { %v775_v0 = vmul.f32 0.35355338, %v774_v60 }
 0x37b   : > { %v815_v62 = vsel %vm735_vm8, %v814_v59, -inf }
 0x37c   : > { %v816_v63 = vrot.slane %v815_v62, 4  ;;  %v776_v58 = vsel %vm735_vm8, %v775_v0, -inf }
 0x37d   : > { %v777_v4 = vrot.slane %v776_v58, 4 }
 0x37e   : > { %v817_v9 = vmax.f32 %v815_v62, %v816_v63 }
 0x37f   : > { %v778_v3 = vmax.f32 %v776_v58, %v777_v4 }
 0x380   : > { %v818_v12 = vrot.slane %v817_v9, 2  ;;  %v852_v13 = vpop.xlane.xlu2 %851 }
 0x381   : > { %v779_v14 = vrot.slane %v778_v3, 2  ;;  %v853_v16 = vmul.f32 0.35355338, %v852_v13 }
 0x382   : > { %v819_v18 = vmax.f32 %v817_v9, %v818_v12 }
 0x383   : > { %v780_v11 = vmax.f32 %v778_v3, %v779_v14  ;;  %v854_v19 = vsel %vm735_vm8, %v853_v16, -inf }
 0x384   : > { %v820_v20 = vrot.slane %v819_v18, 1  ;;  %v855_v21 = vrot.slane %v854_v19, 4 }
 0x385   : > { %v781_v22 = vrot.slane %v780_v11, 1 }
 0x386   : > { %v821_v25 = vmax.f32 %v819_v18, %v820_v20  ;;  %v856_v26 = vmax.f32 %v854_v19, %v855_v21 }
 0x387   : > { %v782_v27 = vmax.f32 %v780_v11, %v781_v22 }
 0x388   : > { %v822_v28 = vsub.f32 %v814_v59, %v821_v25  ;;  %v857_v29 = vrot.slane %v856_v26, 2 }
 0x389   : > { %v783_v30 = vsub.f32 %v775_v0, %v782_v27 }
 0x38a   : > { %v823_v32 = vmul.f32 1.442695, %v822_v28  ;;  %v858_v33 = vmax.f32 %v856_v26, %v857_v29  ;;  %v764_v26 = vand.u32 2147483648, %v2717_v38 }
 0x38b   : > { %v784_v31 = vmul.f32 1.442695, %v783_v30  ;;  %v762_v30 = vand.u32 2147483647, %v2717_v38 }
 0x38c   : > { %2105 = vpow2.f32 %v823_v32  ;;  %v859_v34 = vrot.slane %v858_v33, 1 }
 0x38d   : > { %2107 = vpow2.f32 %v784_v31  ;;  %vm763_vm6 = vcmp.eq.f32.partialorder %v762_v30, 8.507059e+37 }
 0x38e   : > { %v860_v36 = vmax.f32 %v858_v33, %v859_v34  ;;  %v1018_v34 = vld [vmem:[#allocation11 + $0x20] sm:$0x77] }
 0x390   : > { %v861_v37 = vsub.f32 %v853_v16, %v860_v36 }
 0x392   : > { %v2715_v39 = vpop.eup %2105  ;;  %v862_v40 = vmul.f32 1.442695, %v861_v37 }
 0x393   : > { %v2719_v41 = vpop.eup %2107  ;;  %v825_v44 = vsel %vm735_vm8, %v2715_v39, 0.0 }
 0x394   : > { %v826_v46 = vrot.slane %v825_v44, 4  ;;  %v786_v47 = vsel %vm735_vm8, %v2719_v41, 0.0  ;;  %2109 = vpow2.f32 %v862_v40 }
 0x395   : > { %v787_v48 = vrot.slane %v786_v47, 4  ;;  %2111 = vrcp.f32 %v2717_v38 }
 0x396   : > { %v827_v49 = vadd.f32 %v826_v46, %v825_v44  ;;  %v765_v44 = vor.u32 1.1754944e-38, %v764_v26 }
 0x397   : > { %v788_v50 = vadd.f32 %v787_v48, %v786_v47 }
 0x398   : > { %v828_v51 = vrot.slane %v827_v49, 2 }
 0x399   : > { %v789_v53 = vrot.slane %v788_v50, 2 }
 0x39a   : > { %v2726_v45 = vpop.eup %2109  ;;  %v829_v54 = vadd.f32 %v828_v51, %v827_v49 }
 0x39b   : > { %v790_v57 = vadd.f32 %v789_v53, %v788_v50  ;;  %v864_v59 = vsel %vm735_vm8, %v2726_v45, 0.0  ;;  %v2112_v60 = vpop.eup %2111 }
 0x39c   : > { %v830_v0 = vrot.slane %v829_v54, 1  ;;  %v865_v61 = vrot.slane %v864_v59, 4  ;;  %v754_v4 = vmul.f32 %v2112_v60, %v2717_v38  ;;  %vm759_vm10 = vweird.f32 %v2112_v60 }
 0x39d   : > { %v791_v62 = vrot.slane %v790_v57, 1  ;;  %vm2733_vm13 = vmor %vm758_vm9, %vm759_vm10 }
 0x39e   : > { %v831_v63 = vadd.f32 %v830_v0, %v829_v54  ;;  %v866_v58 = vadd.f32 %v865_v61, %v864_v59  ;;  %v755_v12 = vsub.f32 1.0, %v754_v4 }
 0x39f   : > { %v792_v5 = vadd.f32 %v791_v62, %v790_v57 }
 0x3a0   : > { %2113 = vrcp.f32 %v831_v63  ;;  %v867_v9 = vrot.slane %v866_v58, 2  ;;  %v756_v18 = vmul.f32 %v2112_v60, %v755_v12  ;;  %vm837_vm14 = vweird.f32 %v831_v63 }
 0x3a1   : > { %2115 = vrcp.f32 %v792_v5  ;;  %v804_v23 = vand.u32 2147483648, %v792_v5  ;;  %v802_v28 = vand.u32 2147483647, %v792_v5  ;;  %v843_v32 = vand.u32 2147483648, %v831_v63 }
 0x3a2   : > { %v868_v3 = vadd.f32 %v867_v9, %v866_v58  ;;  %v757_v22 = vadd.f32 %v2112_v60, %v756_v18  ;;  %vm798_vm15 = vweird.f32 %v792_v5  ;;  %v841_v35 = vand.u32 2147483647, %v831_v63 }
 0x3a3   : > { %v805_v37 = vor.u32 1.1754944e-38, %v804_v23  ;;  %vm803_vm5 = vcmp.eq.f32.partialorder %v802_v28, 8.507059e+37  ;;  %v844_v48 = vor.u32 1.1754944e-38, %v843_v32  ;;  %v2352_v18 = vmov 1.0  }
 0x3a4   : > { %v869_v13 = vrot.slane %v868_v3, 1  ;;  %v761_v36 = vsel %vm2733_vm13, %v2112_v60, %v757_v22  ;;  %vm842_vm7 = vcmp.eq.f32.partialorder %v841_v35, 8.507059e+37  ;;  %v983_v22 = vld [vmem:[#allocation11 + $0x10] sm:$0x77] }
 0x3a5   : > { %v766_v50 = vsel %vm763_vm6, %v765_v44, %v761_v36 }
 0x3a6   : > { %v2114_v14 = vpop.eup %2113  ;;  %v870_v16 = vadd.f32 %v869_v13, %v868_v3  ;;  %v767_v60 = vmul.f32 %v2708_v55, %v766_v50 }
 0x3a7   : > { %v2116_v17 = vpop.eup %2115  ;;  %v833_v11 = vmul.f32 %v2114_v14, %v831_v63  ;;  %vm838_vm11 = vweird.f32 %v2114_v14 }
 0x3a8   : > { %v794_v19 = vmul.f32 %v2116_v17, %v792_v5  ;;  %2117 = vrcp.f32 %v870_v16  ;;  %vm799_vm12 = vweird.f32 %v2116_v17  ;;  %vm2738_vm0 = vmor %vm837_vm14, %vm838_vm11  ;;  %v880_v51 = vand.u32 2147483647, %v870_v16 }
 0x3a9   : > { %v834_v20 = vsub.f32 1.0, %v833_v11  ;;  %vm800_vm1 = vmor %vm798_vm15, %vm799_vm12  ;;  %v882_v53 = vand.u32 2147483648, %v870_v16  ;;  %vm876_vm9 = vweird.f32 %v870_v16  ;;  %vm935_vm12 = vcmask 1043456  }
 0x3aa   : > { %v795_v21 = vsub.f32 1.0, %v794_v19  ;;  %vm881_vm11 = vcmp.eq.f32.partialorder %v880_v51, 8.507059e+37  ;;  %v944_v11 = vrot.slane %v2352_v18, 4 }
 0x3ab   : > { %v835_v25 = vmul.f32 %v2114_v14, %v834_v20  ;;  %v883_v62 = vor.u32 1.1754944e-38, %v882_v53  ;;  %v2353_v20 = vmov 0.0  }
 0x3ac   : > { %v796_v27 = vmul.f32 %v2116_v17, %v795_v21  ;;  %v2832_v30 = vsel %vm935_vm12, 1.0, %v944_v11 }
 0x3ad   : > { %v836_v24 = vadd.f32 %v2114_v14, %v835_v25 }
 0x3ae   : > { %v2118_v33 = vpop.eup %2117  ;;  %v797_v31 = vadd.f32 %v2116_v17, %v796_v27 }
 0x3af   : > { %v872_v40 = vmul.f32 %v2118_v33, %v870_v16  ;;  %v840_v38 = vsel %vm2738_vm0, %v2114_v14, %v836_v24  ;;  %vm877_vm8 = vweird.f32 %v2118_v33  ;;  %v931_v16 = vld [vmem:[#allocation11] sm:$0x77]  ;;  %v984_v24 = vld [vmem:[#allocation11 + $0x18] sm:$0x77] }
 0x3b0   : > { %v801_v46 = vsel %vm800_vm1, %v2116_v17, %v797_v31  ;;  %v845_v57 = vsel %vm842_vm7, %v844_v48, %v840_v38  ;;  %vm878_vm10 = vmor %vm876_vm9, %vm877_vm8  ;;  %v932_v17 = vld [vmem:[#allocation11 + $0x8] sm:$0x77] }
 0x3b1   : > { %v806_v47 = vsel %vm803_vm5, %v805_v37, %v801_v46  ;;  %v873_v49 = vsub.f32 1.0, %v872_v40  ;;  %v846_v61 = vmul.f32 %v2715_v39, %v845_v57 }
 0x3b2   : > { %v807_v54 = vmul.f32 %v2719_v41, %v806_v47  ;;  %v1019_v47 = vld [vmem:[#allocation11 + $0x28] sm:$0x77] }
 0x3b3   : > { %v874_v59 = vmul.f32 %v2118_v33, %v873_v49 }
 0x3b4   : > { %v886_v58 = vsel %vm634_vm2, %v767_v60, %v807_v54  ;;  %vm899_vm2 = vcmask 261120   ;;  %v1065_v54 = vld [vmem:[#allocation11 + $0x30] sm:$0x77] }
 0x3b5   : > { %v875_v0 = vadd.f32 %v2118_v33, %v874_v59  ;;  %v887_v41 = vsel %vm636_vm3, %v886_v58, %v846_v61  ;;  %vm901_vm3 = vcmask 523264  }
 0x3b7   : > { %v879_v63 = vsel %vm878_vm10, %v2118_v33, %v875_v0 }
 0x3b8   : > { %v884_v4 = vsel %vm881_vm11, %v883_v62, %v879_v63  ;;  %v2877_v62 = vld [vmem:[%s2525_s28] sm:$0xff] }
 0x3b9   : > { %v885_v5 = vmul.f32 %v2726_v45, %v884_v4  ;;  %v987_v63 = vrot.slane %v2877_v62, 7  ;;  %v2882_v4 = vld [vmem:[%s2525_s28 + $0x18] sm:$0xff] }
 0x3bb   : > { %v888_v9 = vsel %vm638_vm4, %v887_v41, %v885_v5  ;;  %vm903_vm4 = vcmask 785408   ;;  %v990_v5 = vrot.slane %v2882_v4, 7 }
 0x3bc   : > { %896 = vrot.lane.b32.xlu2 %v888_v9, %s2342_s24  ;;  %893 = vrot.lane.b32.xlu1 %v888_v9, %s2344_s23  ;;  %s1831_s23 = scalar_lea.sflag [#allocation4], %s2511_s16 }
 0x3bd   : > { %890 = vrot.lane.b32.xlu0 %v888_v9, %s2343_s11 }
 0x3c4   : > { %922 = vrot.lane.b32.xlu2 %v2566_v10, %s2343_s11  ;;  %924 = vrot.lane.b32.xlu1 %v2587_v43, %s2343_s11  ;;  %v328_v43 = vlaneseq }
 0x3c5   : > { %920 = vrot.lane.b32.xlu0 %v2556_v6, %s2343_s11  ;;  %v906_v6 = vpop.permute.xlu0 %905 }
 0x3c6   : > { %v2803_v12 = vshrl.u32 %v328_v43, 7 }
 0x3c8   : > { %vm359_vm0 = vcmp.lt.s32.totalorder %v2803_v12, 7  ;;  %vm362_vm1 = vcmp.ge.s32.totalorder %v2803_v12, 1  ;;  %v1121_v12 = vld [vmem:[#allocation11 + $0x50] sm:$0x77] }
 0x3cc   : > { %1260 = vrot.lane.b32.xlu2 %v2559_v7, %s2342_s24  ;;  %1262 = vrot.lane.b32.xlu1 %v2573_v15, %s2342_s24 }
 0x3cd   : > { %1258 = vrot.lane.b32.xlu0 %v2547_v1, %s2342_s24 }
 0x3d4   : > { %1270 = vrot.lane.b32.xlu2 %v2547_v1, %s2343_s11  ;;  %1272 = vrot.lane.b32.xlu1 %v2559_v7, %s2343_s11  ;;  %v912_v1 = vpop.permute.xlu2 %911 }
 0x3d5   : > { %1264 = vrot.lane.b32.xlu0 %v2590_v52, %s2342_s24 }
 0x3dc   : > { %1276 = vrot.lane.b32.xlu2 %v2590_v52, %s2343_s11  ;;  %1542 = vrot.lane.b32.xlu1 %v2550_v2, %s2342_s24  ;;  %v2798_v52 = vand.u32 127, %v328_v43 }
 0x3dd   : > { %1274 = vrot.lane.b32.xlu0 %v2573_v15, %s2343_s11  ;;  %v910_v15 = vpop.permute.xlu0 %909 }
 0x3de   : > { %vm347_vm13 = vcmp.ge.s32.totalorder %v2798_v52, 32  ;;  %vm913_vm14 = vcmp.lt.s32.totalorder %v2798_v52, 96  ;;  %vm926_vm5 = vcmp.lt.s32.totalorder %v2798_v52, 32 }
 0x3df   : > { %v1988_v21 = vsel %vm347_vm13, 1.0, %v2353_v20  ;;  %v2817_v25 = vsel %vm913_vm14, %v912_v1, %v906_v6  ;;  %v2850_v40 = vsel %vm913_vm14, %v910_v15, %v912_v1 }
 0x3e0   : > { %v2829_v29 = vsel %vm935_vm12, %v1988_v21, %v944_v11  ;;  %v1037_v31 = vrot.slane %v2817_v25, 7 }
 0x3e1   : > { %3594 = vst [vmem:[#allocation24_spill] sm:$0xff] %v2829_v29 }
 0x3e4   : > { %1554 = vrot.lane.b32.xlu2 %v2550_v2, %s2343_s11  ;;  %1556 = vrot.lane.b32.xlu1 %v2562_v8, %s2343_s11  ;;  %v908_v2 = vpop.permute.xlu1 %907 }
 0x3e5   : > { %1544 = vrot.lane.b32.xlu0 %v2562_v8, %s2342_s24  ;;  %v2813_v23 = vsel %vm913_vm14, %v906_v6, %v908_v2  ;;  %v2854_v44 = vsel %vm913_vm14, %v908_v2, %v910_v15  ;;  %v1066_v6 = vld [vmem:[#allocation11 + $0x38] sm:$0x77] }
 0x3e6   : > { %v1034_v33 = vrot.slane %v2813_v23, 7 }
 0x3ec   : > { %1560 = vrot.lane.b32.xlu2 %v2595_v56, %s2343_s11  ;;  %1546 = vrot.lane.b32.xlu1 %v2584_v42, %s2342_s24  ;;  %v2794_v10 = vpop.permute.xlu1 %918 }
 0x3ed   : > { %1558 = vrot.lane.b32.xlu0 %v2584_v42, %s2343_s11 }
 0x3f5   : > { %1548 = vrot.lane.b32.xlu0 %v2595_v56, %s2342_s24  ;;  %v332_v56 = vadd.s32 384, %v2798_v52  ;;  %s1842_s24 = scalar_lea.hbm %s3538_s5, %s2001_s17 }
 0x3f6   : > { %s1846_s11 = sshll.u32 %s1842_s24, 4  ;;  %s1847_s11 = int_to_ptr.hbm [resolvable:$true] %s1846_s11 }
 0x3f7   : > { %vm338_vm15 = vcmp.lt.s32.totalorder %v332_v56, 480  ;;  %s2265_s30 = sshra.s32 %s1847_s11, 4  ;;  %s2266_s30 = int_to_ptr.hbm [resolvable:$true] %s2265_s30 }
 0x3f8   : > { %v1987_v28 = vsel %vm338_vm15, 1.0, %v2353_v20  ;;  %s2267_s8 = scalar_lea.hbm %s2266_s30, 32  ;;  %p2272_p7 = scmp.lt.s32.totalorder %s2266_s30, %s3538_s5 }
 0x3f9   : > { %v1027_v46 = vrot.slane %v1987_v28, 4  ;;  %v2925_v28 = vsel %vm362_vm1, 1.0, %v2353_v20  ;;  %p2268_p1 = scmp.ne.s32.totalorder %s2266_s30, %s2267_s8  ;;  %p2273_p9 = scmp.lt.s32.totalorder %s2271_s2, %s2267_s8 }
 0x3fb   : > { %v2894_v1 = vsel %vm935_vm12, 1.0, %v1027_v46  ;;  %p2269_p3 = pnand %p2268_p1, %p2454_p0  ;;  %p2274_p8 = por %p2273_p9, %p2272_p7 }
 0x3fc   : > { %3599 = vst [vmem:[#allocation29_spill] sm:$0xff] %v2894_v1 }
 0x3fd   : > { %p2270_p13 = pneg %p2269_p3 }
 0x3ff   : > { %p2275_p5 = pnand %p2274_p8, %p2270_p13 }
 0x416   : > { %v897_v7 = vpop.permute.xlu2 %896 }
 0x41e   : > { %v2796_v8 = vpop.permute.xlu2 %922 }
 0x426   : > { %v2801_v45 = vpop.permute.xlu2 %1260 }
 0x427   : > { %3591 = vst [vmem:[#allocation21_spill] sm:$0xff] %v2801_v45 }
 0x42e   : > { %v894_v55 = vpop.permute.xlu1 %893  ;;  %v2856_v38 = vpop.permute.xlu2 %1270 }
 0x42f   : > { %v891_v42 = vpop.permute.xlu0 %890  ;;  %3595 = vst [vmem:[#allocation25_spill] sm:$0xff] %v2856_v38 }
 0x430   : > { %v900_v39 = vsel %vm899_vm2, %v888_v9, %v891_v42 }
 0x431   : > { %v902_v3 = vsel %vm901_vm3, %v900_v39, %v894_v55 }
 0x432   : > { %v904_v13 = vsel %vm903_vm4, %v902_v3, %v897_v7 }
 0x433   : > { %v934_v14 = vrot.slane %v904_v13, 4 }
 0x435   : > { %v2808_v19 = vsel %vm935_vm12, %v904_v13, %v934_v14  ;;  %v2913_v14 = vsel %vm359_vm0, 1.0, %v2353_v20 }
 0x436   : > { %v2820_v26 = vmul.f32 %v2808_v19, %v931_v16  ;;  %v2823_v27 = vmul.f32 %v2808_v19, %v932_v17  ;;  %v2835_v32 = vmul.f32 %v983_v22, %v2808_v19  ;;  %v925_v48 = vpop.permute.xlu1 %924  ;;  %v2862_v51 = vmul.f32 %v984_v24, %v2808_v19  ;;  %v1150_v22 = vld [vmem:[#allocation11 + $0x60] sm:$0x77] }
 0x437   : > { %v2868_v57 = vsel %vm926_vm5, %v2796_v8, %v925_v48  ;;  %v2872_v60 = vmul.f32 %v1018_v34, %v2808_v19  ;;  %v2888_v41 = vsel %vm926_vm5, %v925_v48, %v2794_v10  ;;  %v2891_v9 = vmul.f32 %v1019_v47, %v2808_v19  ;;  %v1094_v47 = vld [vmem:[#allocation11 + $0x40] sm:$0x77]  ;;  %v1095_v48 = vld [vmem:[#allocation11 + $0x48] sm:$0x77] }
 0x438   : > { %3592 = vst [vmem:[#allocation22_spill] sm:$0xff] %v2820_v26  ;;  %v2841_v35 = vmul.f32 %v2829_v29, %v2820_v26  ;;  %v2845_v36 = vmul.f32 %v2832_v30, %v2823_v27  ;;  %v993_v59 = vperm.slane %v2835_v32, 0  ;;  %v996_v58 = vperm.slane %v2862_v51, 4 }
 0x439   : > { %3593 = vst [vmem:[#allocation23_spill] sm:$0xff] %v2823_v27  ;;  %v2897_v2 = vmul.f32 %v1065_v54, %v2808_v19  ;;  %v955_v7 = vrot.slane %v2868_v57, 7  ;;  %v2902_v39 = vmul.f32 %v2872_v60, %v2832_v30  ;;  %v2906_v56 = vmul.f32 %v2894_v1, %v2891_v9 }
 0x43a   : > { %v958_v49 = vperm.slane %v2841_v35, 0  ;;  %v961_v50 = vperm.slane %v2845_v36, 4  ;;  %3596 = vst [vmem:[#allocation26_spill] sm:$0xff] %v2862_v51  ;;  %v1001_v55 = vperm.slane %v993_v59, 0  ;;  %v1004_v42 = vperm.slane %v996_v58, 0  ;;  %v2933_v58 = vpop.permute.xlu2 %1276 }
 0x43b   : > { %3597 = vst [vmem:[#allocation27_spill] sm:$0xff] %v2872_v60  ;;  %v952_v16 = vrot.slane %v2888_v41, 7  ;;  %v1282_v17 = vrot.slane %v2829_v29, 7  ;;  %v1040_v18 = vperm.slane %v2902_v39, 0  ;;  %v1043_v11 = vperm.slane %v2906_v56, 4 }
 0x43c   : > { %3598 = vst [vmem:[#allocation28_spill] sm:$0xff] %v2891_v9  ;;  %v966_v15 = vperm.slane %v958_v49, 0  ;;  %v969_v43 = vperm.slane %v961_v50, 0  ;;  %v2920_v21 = vmul.f32 %v1066_v6, %v2808_v19  ;;  %v1005_v50 = vmul.f32 %v1001_v55, %v987_v63  ;;  %v1222_v9 = vld [vmem:[#allocation11 + $0x80] sm:$0x77] }
 0x43d   : > { %3600 = vst [vmem:[#allocation30_spill] sm:$0xff] %v2897_v2  ;;  %v1008_v54 = vmul.f32 %v1004_v42, %v990_v5  ;;  %v2931_v59 = vmul.f32 %v2897_v2, %v2829_v29  ;;  %v1048_v20 = vperm.slane %v1040_v18, 0  ;;  %v1051_v6 = vperm.slane %v1043_v11, 0  ;;  %v1122_v42 = vld [vmem:[#allocation11 + $0x58] sm:$0x77] }
 0x43e   : > { %3601 = vst [vmem:[#allocation31_spill] sm:$0xff] %v2920_v21  ;;  %v970_v34 = vmul.f32 %v966_v15, %v952_v16  ;;  %v973_v46 = vmul.f32 %v969_v43, %v955_v7  ;;  %v2937_v15 = vmul.f32 %v2920_v21, %v2832_v30  ;;  %v2940_v7 = vld [vmem:[%s2525_s28 + $0x8] sm:$0xff]  ;;  %v2944_v63 = vmul.f32 %v1150_v22, %v2808_v19  ;;  %v2956_v16 = vld [vmem:[%s2525_s28 + $0x10] sm:$0xff] }
 0x43f   : > { %3602 = vst [vmem:[#allocation32_spill] sm:$0xff] %v2933_v58  ;;  %v2950_v5 = vsel %vm926_vm5, %v2933_v58, %v2856_v38  ;;  %v2953_v55 = vmul.f32 %v1282_v17, %v2820_v26  ;;  %v1151_v11 = vld [vmem:[#allocation11 + $0x68] sm:$0x77]  ;;  %v2962_v13 = vmul.f32 %v1094_v47, %v2808_v19  ;;  %v2965_v3 = vmul.f32 %v1095_v48, %v2808_v19  ;;  %v1187_v18 = vld [vmem:[#allocation11 + $0x70] sm:$0x77] }
 0x440   : > { %3603 = vst [vmem:[#allocation33_spill] sm:$0xff] %v2944_v63  ;;  %v974_v53 = vmul.f32 %v2925_v28, %v970_v34  ;;  %v977_v22 = vmul.f32 %v2925_v28, %v973_v46  ;;  %v1009_v61 = vmul.f32 %v2925_v28, %v1005_v50  ;;  %v1012_v0 = vmul.f32 %v2925_v28, %v1008_v54 }
 0x441   : > { %3604 = vst [vmem:[#allocation34_spill] sm:$0xff] %v2953_v55  ;;  %v1073_v37 = vperm.slane %v2931_v59, 0  ;;  %v2971_v43 = vmul.f32 %v1121_v12, %v2808_v19  ;;  %v1052_v34 = vmul.f32 %v1048_v20, %v1034_v33  ;;  %v1055_v46 = vmul.f32 %v1051_v6, %v1037_v31 }
 0x442   : > { %3605 = vst [vmem:[#allocation35_spill] sm:$0xff] %v2965_v3  ;;  %v1076_v47 = vperm.slane %v2937_v15, 4  ;;  %v2979_v48 = vmul.f32 %v1122_v42, %v2808_v19  ;;  %v1288_v50 = vrot.slane %v2950_v5, 7  ;;  %v2983_v54 = vmul.f32 %v1282_v17, %v2897_v2 }
 0x443   : > { %3606 = vst [vmem:[#allocation36_spill] sm:$0xff] %v2971_v43  ;;  %v2986_v49 = vmul.f32 %v1282_v17, %v2944_v63  ;;  %v2989_v12 = vmul.f32 %v1151_v11, %v2808_v19  ;;  %v1013_v33 = vadd.f32 %v1009_v61, %v974_v53  ;;  %v1016_v20 = vadd.f32 %v1012_v0, %v977_v22 }
 0x444   : > { %3607 = vst [vmem:[#allocation37_spill] sm:$0xff] %v2979_v48  ;;  %v1100_v31 = vperm.slane %v2962_v13, 0  ;;  %v1103_v6 = vperm.slane %v2965_v3, 4  ;;  %v1081_v42 = vperm.slane %v1073_v37, 0  ;;  %v2995_v24 = vmul.f32 %v2971_v43, %v2832_v30 }
 0x445   : > { %3608 = vst [vmem:[#allocation38_spill] sm:$0xff] %v2983_v54  ;;  %v2999_v21 = vmul.f32 %v2944_v63, %v2829_v29  ;;  %v3003_v17 = vmul.f32 %v2989_v12, %v2832_v30  ;;  %v1056_v53 = vmul.f32 %v2925_v28, %v1052_v34  ;;  %v1059_v0 = vmul.f32 %v2925_v28, %v1055_v46 }
 0x446   : > { %3609 = vst [vmem:[#allocation39_spill] sm:$0xff] %v2986_v49  ;;  %v1084_v61 = vperm.slane %v1076_v47, 0  ;;  %v3009_v37 = vmul.f32 %v2979_v48, %v2894_v1  ;;  %v1294_v11 = vperm.slane %v2953_v55, 1  ;;  %v1386_v22 = vperm.slane %v2983_v54, 1 }
 0x447   : > { %3610 = vst [vmem:[#allocation40_spill] sm:$0xff] %v2989_v12  ;;  %v1452_v58 = vrot.slane %v2950_v5, 1  ;;  %v1458_v27 = vperm.slane %v2986_v49, 1  ;;  %v1188_v12 = vld [vmem:[#allocation11 + $0x78] sm:$0x77]  ;;  %v1060_v2 = vadd.f32 %v1056_v53, %v1013_v33  ;;  %v1063_v63 = vadd.f32 %v1059_v0, %v1016_v20 }
 0x448   : > { %v1108_v34 = vperm.slane %v1100_v31, 0  ;;  %v3016_v46 = vmul.f32 %v1187_v18, %v2808_v19  ;;  %v1085_v47 = vmul.f32 %v1081_v42, %v2888_v41  ;;  %v1111_v48 = vperm.slane %v1103_v6, 0 }
 0x449   : > { %v1162_v1 = vperm.slane %v2999_v21, 0  ;;  %v1165_v26 = vperm.slane %v3003_v17, 4  ;;  %v1088_v54 = vmul.f32 %v1084_v61, %v2868_v57  ;;  %v1129_v55 = vperm.slane %v2995_v24, 0 }
 0x44a   : > { %v1132_v49 = vperm.slane %v3009_v37, 4  ;;  %v3025_v33 = vmul.f32 %v1222_v9, %v2808_v19  ;;  %v1302_v20 = vperm.slane %v1294_v11, 1  ;;  %v1394_v31 = vperm.slane %v1386_v22, 1 }
 0x44b   : > { %v1466_v18 = vperm.slane %v1458_v27, 1  ;;  %v3028_v53 = vmul.f32 %v1188_v12, %v2808_v19  ;;  %v1089_v6 = vadd.f32 %v1085_v47, %v1060_v2  ;;  %v1092_v42 = vadd.f32 %v1088_v54, %v1063_v63 }
 0x44c   : > { %v1112_v0 = vmul.f32 %v2877_v62, %v1108_v34  ;;  %v1197_v38 = vperm.slane %v3016_v46, 0  ;;  %v1115_v61 = vmul.f32 %v2882_v4, %v1111_v48  ;;  %v1159_v29 = vrot.slane %v2868_v57, 1 }
 0x44d   : > { %v1170_v45 = vperm.slane %v1162_v1, 0  ;;  %v1173_v43 = vperm.slane %v1165_v26, 0  ;;  %v1137_v9 = vperm.slane %v1129_v55, 0  ;;  %v1140_v60 = vperm.slane %v1132_v49, 0 }
 0x44e   : > { %v3036_v27 = vmul.f32 %v3025_v33, %v2832_v30  ;;  %v995_v12 = vperm.slane %v2862_v51, 0  ;;  %v1306_v2 = vmul.f32 %v1302_v20, %v1288_v50  ;;  %v1470_v63 = vmul.f32 %v1466_v18, %v1452_v58  ;;  %v921_v20 = vpop.permute.xlu0 %920 }
 0x44f   : > { %v1156_v54 = vrot.slane %v2888_v41, 1  ;;  %v1200_v11 = vperm.slane %v3028_v53, 4  ;;  %v1116_v22 = vadd.f32 %v1112_v0, %v1089_v6  ;;  %v1119_v48 = vadd.f32 %v1115_v61, %v1092_v42 }
 0x450   : > { %v1205_v34 = vperm.slane %v1197_v38, 0  ;;  %v960_v57 = vperm.slane %v2845_v36, 0  ;;  %v3043_v26 = vmul.f32 %v1394_v31, %v2950_v5  ;;  %v1177_v49 = vmul.f32 %v1173_v43, %v1159_v29 }
 0x451   : > { %v1174_v1 = vmul.f32 %v1170_v45, %v1156_v54  ;;  %v994_v55 = vperm.slane %v2835_v32, 4  ;;  %v1141_v47 = vmul.f32 %v1137_v9, %v2813_v23  ;;  %v1144_v58 = vmul.f32 %v1140_v60, %v2817_v25 }
 0x452   : > { %v1234_v41 = vperm.slane %v3036_v27, 0  ;;  %v1003_v50 = vperm.slane %v995_v12, 0  ;;  %v3050_v18 = vmul.f32 %v2925_v28, %v1306_v2  ;;  %v3053_v36 = vmul.f32 %v2913_v14, %v1470_v63 }
 0x453   : > { %v1208_v38 = vperm.slane %v1200_v11, 0  ;;  %v1041_v45 = vperm.slane %v2902_v39, 4  ;;  %v1145_v29 = vadd.f32 %v1141_v47, %v1116_v22  ;;  %v1148_v43 = vadd.f32 %v1144_v58, %v1119_v48 }
 0x454   : > { %v3611_v5 = vrot.slane %v2877_v62, 1  ;;  %v968_v6 = vperm.slane %v960_v57, 0  ;;  %v1178_v60 = vmul.f32 %v2913_v14, %v1174_v1  ;;  %v1181_v42 = vmul.f32 %v2913_v14, %v1177_v49 }
 0x455   : > { %v1002_v0 = vperm.slane %v994_v55, 0  ;;  %v3063_v61 = vsel %vm926_vm5, %v921_v20, %v2796_v8  ;;  %v1242_v9 = vperm.slane %v1234_v41, 0  ;;  %v3612_v12 = vrot.slane %v2956_v16, 7 }
 0x456   : > { %v1209_v31 = vmul.f32 %v1205_v34, %v3611_v5  ;;  %v3070_v62 = vsel %vm926_vm5, %v2794_v10, %v921_v20  ;;  %v954_v2 = vrot.slane %v3063_v61, 7  ;;  %v3613_v63 = vrot.slane %v2882_v4, 1 }
 0x457   : > { %v1007_v39 = vmul.f32 %v1003_v50, %v3612_v12  ;;  %v1049_v11 = vperm.slane %v1041_v45, 0  ;;  %v959_v22 = vperm.slane %v2841_v35, 4  ;;  %v1042_v8 = vperm.slane %v2906_v56, 0 }
 0x458   : > { %v1212_v54 = vmul.f32 %v1208_v38, %v3613_v63  ;;  %v1182_v48 = vadd.f32 %v1178_v60, %v1145_v29  ;;  %v3077_v34 = vadd.f32 %v1181_v42, %v1148_v43  ;;  %v1213_v57 = vmul.f32 %v2913_v14, %v1209_v31 }
 0x459   : > { %v972_v1 = vmul.f32 %v968_v6, %v954_v2  ;;  %v3614_v49 = vrot.slane %v2940_v7, 7  ;;  %v953_v55 = vrot.slane %v3070_v62, 7  ;;  %v967_v47 = vperm.slane %v959_v22, 0 }
 0x45a   : > { %v1050_v58 = vperm.slane %v1042_v8, 0  ;;  %v3615_v4 = vrot.slane %v2813_v23, 1  ;;  %v1075_v35 = vperm.slane %v2937_v15, 0  ;;  %v1011_v50 = vmul.f32 %v2925_v28, %v1007_v39 }
 0x45b   : > { %v1006_v10 = vmul.f32 %v1002_v0, %v3614_v49  ;;  %v976_v56 = vmul.f32 %v2925_v28, %v972_v1  ;;  %v971_v20 = vmul.f32 %v967_v47, %v953_v55  ;;  %v3616_v38 = vrot.slane %v2854_v44, 7 }
 0x45c   : > { %v1246_v41 = vmul.f32 %v1242_v9, %v3615_v4  ;;  %v3617_v29 = vrot.slane %v2850_v40, 7  ;;  %v1074_v5 = vperm.slane %v2931_v59, 4  ;;  %v3094_v31 = vmul.f32 %v2913_v14, %v1212_v54 }
 0x45d   : > { %v1053_v45 = vmul.f32 %v1049_v11, %v3616_v38  ;;  %v1217_v23 = vadd.f32 %v1213_v57, %v1182_v48  ;;  %v1101_v6 = vperm.slane %v2962_v13, 4  ;;  %v1015_v15 = vadd.f32 %v1011_v50, %v976_v56  ;;  %v3618_v38 = vld [vmem:[#allocation27_spill] sm:$0xff] }
 0x45e   : > { %v1054_v43 = vmul.f32 %v1050_v58, %v3617_v29  ;;  %v1102_v60 = vperm.slane %v2965_v3, 0  ;;  %v1130_v42 = vperm.slane %v2995_v24, 4  ;;  %v975_v0 = vmul.f32 %v2925_v28, %v971_v20  ;;  %v3120_v29 = vld [vmem:[%s2525_s28 + $0x20] sm:$0xff] }
 0x45f   : > { %v1010_v9 = vmul.f32 %v2925_v28, %v1006_v10  ;;  %v1250_v12 = vmul.f32 %v2913_v14, %v1246_v41  ;;  %v1083_v39 = vperm.slane %v1075_v35, 0  ;;  %v1198_v59 = vperm.slane %v3016_v46, 4 }
 0x460   : > { %v1058_v2 = vmul.f32 %v2925_v28, %v1054_v43  ;;  %v1199_v63 = vperm.slane %v3028_v53, 0  ;;  %v1057_v11 = vmul.f32 %v2925_v28, %v1053_v45  ;;  %v1082_v22 = vperm.slane %v1074_v5, 0 }
 0x461   : > { %v1014_v54 = vadd.f32 %v1010_v9, %v975_v0  ;;  %v1164_v8 = vperm.slane %v3003_v17, 0  ;;  %v1192_v24 = vrot.slane %v2940_v7, 1  ;;  %v3109_v57 = vrot.slane %v2832_v30, 7 }
 0x462   : > { %v1062_v48 = vadd.f32 %v1058_v2, %v1015_v15  ;;  %v1109_v1 = vperm.slane %v1101_v6, 0  ;;  %v1110_v49 = vperm.slane %v1102_v60, 0  ;;  %v1131_v55 = vperm.slane %v3009_v37, 0  ;;  %v3123_v60 = vpop.permute.xlu1 %1262 }
 0x463   : > { %v1061_v10 = vadd.f32 %v1057_v11, %v1014_v54  ;;  %v1206_v47 = vperm.slane %v1198_v59, 0  ;;  %v1087_v58 = vmul.f32 %v1083_v39, %v3063_v61  ;;  %v1163_v4 = vperm.slane %v2999_v21, 4 }
 0x464   : > { %v1322_v41 = vperm.slane %v2835_v32, 1  ;;  %v1138_v17 = vperm.slane %v1130_v42, 0  ;;  %v1193_v35 = vrot.slane %v2956_v16, 1  ;;  %v1207_v56 = vperm.slane %v1199_v63, 0  ;;  %v3619_v63 = vld [vmem:[#allocation36_spill] sm:$0xff] }
 0x465   : > { %v1086_v50 = vmul.f32 %v1082_v22, %v3070_v62  ;;  %v1091_v20 = vadd.f32 %v1087_v58, %v1062_v48  ;;  %v1350_v45 = vmul.f32 %v3109_v57, %v3618_v38  ;;  %v1318_v37 = vrot.slane %v3120_v29, 7 }
 0x466   : > { %v1330_v43 = vperm.slane %v1322_v41, 1  ;;  %v1254_v5 = vadd.f32 %v1250_v12, %v1217_v23  ;;  %v1172_v6 = vperm.slane %v1164_v8, 0  ;;  %v1139_v15 = vperm.slane %v1131_v55, 0  ;;  %v3136_v12 = vpop.permute.xlu0 %1258 }
 0x467   : > { %v1090_v21 = vadd.f32 %v1086_v50, %v1061_v10  ;;  %v1113_v42 = vmul.f32 %v2940_v7, %v1109_v1  ;;  %v1114_v0 = vmul.f32 %v2956_v16, %v1110_v49  ;;  %v1210_v9 = vmul.f32 %v1206_v47, %v1192_v24  ;;  %v3620_v49 = vld [vmem:[#allocation21_spill] sm:$0xff] }
 0x468   : > { %v1171_v39 = vperm.slane %v1163_v4, 0  ;;  %v1211_v59 = vmul.f32 %v1207_v56, %v1193_v35  ;;  %v1158_v2 = vrot.slane %v3063_v61, 1  ;;  %v3130_v54 = vmul.f32 %v3109_v57, %v3619_v63 }
 0x469   : > { %v3134_v23 = vmul.f32 %v3109_v57, %v3025_v33  ;;  %v1118_v11 = vadd.f32 %v1114_v0, %v1091_v20  ;;  %v1157_v7 = vrot.slane %v3070_v62, 1  ;;  %v1334_v22 = vmul.f32 %v1330_v43, %v1318_v37  ;;  %v3162_v43 = vpop.permute.xlu2 %1554 }
 0x46a   : > { %v1358_v16 = vperm.slane %v1350_v45, 1  ;;  %v1117_v8 = vadd.f32 %v1113_v42, %v1090_v21  ;;  %v1142_v24 = vmul.f32 %v1138_v17, %v2854_v44  ;;  %v1143_v61 = vmul.f32 %v1139_v15, %v2850_v40 }
 0x46b   : > { %v1176_v48 = vmul.f32 %v1172_v6, %v1158_v2  ;;  %v1175_v1 = vmul.f32 %v1171_v39, %v1157_v7  ;;  %v1267_v10 = vsel %vm913_vm14, %v3620_v49, %v3123_v60  ;;  %v1359_v55 = vperm.slane %v1350_v45, 5 }
 0x46c   : > { %v3149_v62 = vsel %vm913_vm14, %v3136_v12, %v3620_v49  ;;  %v1431_v47 = vperm.slane %v3130_v54, 5  ;;  %v1519_v58 = vperm.slane %v3134_v23, 5  ;;  %v1406_v4 = vperm.slane %v2962_v13, 1  ;;  %v3623_v49 = vld [vmem:[#allocation34_spill] sm:$0xff] }
 0x46d   : > { %v1314_v41 = vadd.f32 %v3050_v18, %v1254_v5  ;;  %v1147_v17 = vadd.f32 %v1143_v61, %v1118_v11  ;;  %v1366_v35 = vperm.slane %v1358_v16, 1  ;;  %v1338_v56 = vmul.f32 %v2925_v28, %v1334_v22 }
 0x46e   : > { %v1352_v50 = vrot.slane %v3149_v62, 7  ;;  %v3159_v20 = vadd.f32 %v3094_v31, %v3077_v34  ;;  %v1146_v45 = vadd.f32 %v1142_v24, %v1117_v8  ;;  %v1214_v37 = vmul.f32 %v2913_v14, %v1210_v9  ;;  %v3167_v34 = vpop.permute.xlu1 %1272  ;;  %v3621_v8 = vld [vmem:[#allocation24_spill] sm:$0xff] }
 0x46f   : > { %v1353_v6 = vrot.slane %v1267_v10, 7  ;;  %v1180_v21 = vmul.f32 %v2913_v14, %v1176_v48  ;;  %v1215_v18 = vmul.f32 %v2913_v14, %v1211_v59  ;;  %v1342_v5 = vadd.f32 %v1338_v56, %v1314_v41  ;;  %v3622_v48 = vld [vmem:[#allocation25_spill] sm:$0xff]  ;;  %v3183_v41 = vld [vmem:[%s2525_s28 + $0x28] sm:$0xff] }
 0x470   : > { %v1370_v15 = vmul.f32 %v1366_v35, %v1352_v50  ;;  %v1179_v42 = vmul.f32 %v2913_v14, %v1175_v1  ;;  %v1367_v0 = vperm.slane %v1359_v55, 1  ;;  %v1439_v39 = vperm.slane %v1431_v47, 1 }
 0x471   : > { %v1513_v2 = vrot.slane %v1267_v10, 1  ;;  %v1184_v31 = vadd.f32 %v1180_v21, %v1147_v17  ;;  %v1527_v11 = vperm.slane %v1519_v58, 1  ;;  %v1414_v9 = vperm.slane %v1406_v4, 1 }
 0x472   : > { %v1374_v7 = vmul.f32 %v2925_v28, %v1370_v15  ;;  %v1183_v22 = vadd.f32 %v1179_v42, %v1146_v45  ;;  %v1371_v16 = vmul.f32 %v1367_v0, %v1353_v6  ;;  %v1566_v24 = vrot.slane %v3621_v8, 6 }
 0x473   : > { %v1235_v59 = vperm.slane %v3036_v27, 4  ;;  %v3176_v1 = vsel %vm926_vm5, %v3622_v48, %v3167_v34  ;;  %v1295_v55 = vperm.slane %v3623_v49, 5  ;;  %v1323_v47 = vperm.slane %v2835_v32, 5  ;;  %v3627_v48 = vld [vmem:[#allocation33_spill] sm:$0xff] }
 0x474   : > { %v1378_v61 = vadd.f32 %v1374_v7, %v1342_v5  ;;  %v1430_v58 = vperm.slane %v3130_v54, 1  ;;  %v1486_v4 = vperm.slane %v3016_v46, 1  ;;  %v1319_v17 = vrot.slane %v3183_v41, 7  ;;  %v3625_v7 = vld [vmem:[#allocation22_spill] sm:$0xff] }
 0x475   : > { %v1243_v27 = vperm.slane %v1235_v59, 0  ;;  %v1289_v56 = vrot.slane %v3176_v1, 7  ;;  %v1303_v50 = vperm.slane %v1295_v55, 1  ;;  %v1331_v45 = vperm.slane %v1323_v47, 1 }
 0x476   : > { %v1402_v35 = vadd.f32 %v3043_v26, %v1378_v61  ;;  %v1218_v6 = vadd.f32 %v1214_v37, %v1183_v22  ;;  %v3188_v21 = vmul.f32 %v1439_v39, %v1267_v10  ;;  %v1531_v5 = vmul.f32 %v1527_v11, %v1513_v2  ;;  %v3197_v61 = vpop.permute.xlu2 %1560 }
 0x477   : > { %v3624_v15 = vrot.slane %v2854_v44, 1  ;;  %v1418_v42 = vmul.f32 %v3120_v29, %v1414_v9  ;;  %v1482_v0 = vrot.slane %v3120_v29, 1  ;;  %v3195_v8 = vmul.f32 %v1566_v24, %v3625_v7  ;;  %3626 = vst [vmem:[#allocation27_spill] sm:$0xff] %v3197_v61  ;;  %v3630_v7 = vld [vmem:[#allocation29_spill] sm:$0xff] }
 0x478   : > { %v1307_v59 = vmul.f32 %v1303_v50, %v1289_v56  ;;  %v1438_v26 = vperm.slane %v1430_v58, 1  ;;  %v3200_v49 = vmul.f32 %v1566_v24, %v3627_v48  ;;  %v1335_v37 = vmul.f32 %v1331_v45, %v1319_v17 }
 0x479   : > { %v1247_v54 = vmul.f32 %v1243_v27, %v3624_v15  ;;  %v3203_v39 = vadd.f32 %v1215_v18, %v1184_v31  ;;  %v1494_v44 = vperm.slane %v1486_v4, 1  ;;  %v1518_v2 = vperm.slane %v3134_v23, 1  ;;  %v3628_v18 = vld [vmem:[#allocation30_spill] sm:$0xff] }
 0x47a   : > { %v1422_v11 = vadd.f32 %v1418_v42, %v1402_v35  ;;  %v1442_v29 = vmul.f32 %v1438_v26, %v3149_v62  ;;  %v1512_v9 = vrot.slane %v3149_v62, 1  ;;  %v1311_v55 = vmul.f32 %v2925_v28, %v1307_v59  ;;  %v3629_v4 = vld [vmem:[#allocation38_spill] sm:$0xff]  ;;  %v1223_v42 = vld [vmem:[#allocation11 + $0x88] sm:$0x77] }
 0x47b   : > { %v1251_v10 = vmul.f32 %v2913_v14, %v1247_v54  ;;  %v1565_v47 = vsel %vm926_vm5, %v3197_v61, %v3162_v43  ;;  %v1578_v58 = vperm.slane %v3195_v8, 2  ;;  %v3215_v31 = vmul.f32 %v1566_v24, %v3628_v18 }
 0x47c   : > { %v1387_v23 = vperm.slane %v3629_v4, 5  ;;  %v1742_v17 = vperm.slane %v3200_v49, 2  ;;  %v1339_v62 = vmul.f32 %v2925_v28, %v1335_v37  ;;  %v1407_v35 = vperm.slane %v2962_v13, 5 }
 0x47d   : > { %v1255_v22 = vadd.f32 %v1251_v10, %v1218_v6  ;;  %v1375_v56 = vmul.f32 %v2925_v28, %v1371_v16  ;;  %v3223_v50 = vmul.f32 %v2913_v14, %v1531_v5  ;;  %v1526_v45 = vperm.slane %v1518_v2, 1 }
 0x47e   : > { %v1446_v6 = vadd.f32 %v1442_v29, %v1422_v11  ;;  %v1498_v15 = vmul.f32 %v1494_v44, %v1482_v0  ;;  %v1572_v54 = vrot.slane %v1565_v47, 7  ;;  %v1347_v59 = vrot.slane %v3630_v7, 7  ;;  %v3631_v11 = vld [vmem:[#allocation39_spill] sm:$0xff] }
 0x47f   : > { %v1315_v27 = vadd.f32 %v1311_v55, %v1255_v22  ;;  %v1530_v26 = vmul.f32 %v1526_v45, %v1512_v9  ;;  %v1670_v48 = vperm.slane %v3215_v31, 2  ;;  %v1736_v10 = vrot.slane %v1565_v47, 1 }
 0x480   : > { %v1395_v37 = vperm.slane %v1387_v23, 1  ;;  %v1586_v22 = vperm.slane %v1578_v58, 2  ;;  %v1750_v55 = vperm.slane %v1742_v17, 2  ;;  %v1415_v16 = vperm.slane %v1407_v35, 1  ;;  %v3633_v23 = vld [vmem:[#allocation28_spill] sm:$0xff] }
 0x481   : > { %v1343_v24 = vadd.f32 %v1339_v62, %v1315_v27  ;;  %v1478_v5 = vadd.f32 %v3053_v36, %v1446_v6  ;;  %v1459_v0 = vperm.slane %v3631_v11, 5  ;;  %v3231_v44 = vmul.f32 %v1223_v42, %v2808_v19  ;;  %v1265_v27 = vpop.permute.xlu0 %1264  ;;  %v3634_v6 = vld [vmem:[#allocation37_spill] sm:$0xff] }
 0x482   : > { %v1399_v2 = vmul.f32 %v1395_v37, %v3176_v1  ;;  %v1502_v29 = vmul.f32 %v2913_v14, %v1498_v15  ;;  %v1590_v9 = vmul.f32 %v1586_v22, %v1572_v54  ;;  %v1487_v4 = vperm.slane %v3016_v46, 5 }
 0x483   : > { %v1379_v18 = vadd.f32 %v1375_v56, %v1343_v24  ;;  %3632 = vst [vmem:[#allocation36_spill] sm:$0xff] %v3231_v44  ;;  %v1351_v58 = vmul.f32 %v1347_v59, %v3633_v23  ;;  %v1534_v17 = vmul.f32 %v2913_v14, %v1530_v26  ;;  %v1754_v62 = vmul.f32 %v1750_v55, %v1736_v10 }
 0x484   : > { %v1453_v36 = vrot.slane %v3176_v1, 1  ;;  %v1678_v56 = vperm.slane %v1670_v48, 2  ;;  %v1483_v45 = vrot.slane %v3183_v41, 1  ;;  %v1419_v19 = vmul.f32 %v3183_v41, %v1415_v16 }
 0x485   : > { %v1403_v35 = vadd.f32 %v1399_v2, %v1379_v18  ;;  %v1427_v24 = vmul.f32 %v1347_v59, %v3634_v6  ;;  %v1506_v15 = vadd.f32 %v1502_v29, %v1478_v5  ;;  %v1467_v54 = vperm.slane %v1459_v0, 1  ;;  %v3635_v2 = vld [vmem:[#allocation23_spill] sm:$0xff] }
 0x486   : > { %v1266_v42 = vsel %vm913_vm14, %v3123_v60, %v1265_v27  ;;  %v1511_v37 = vmul.f32 %v1347_v59, %v3231_v44  ;;  %v1594_v26 = vmul.f32 %v2925_v28, %v1590_v9  ;;  %v3246_v10 = vmul.f32 %v1678_v56, %v1565_v47 }
 0x487   : > { %v1495_v1 = vperm.slane %v1487_v4, 1  ;;  %v1360_v48 = vperm.slane %v1351_v58, 1  ;;  %v3249_v22 = vmul.f32 %v2913_v14, %v1754_v62  ;;  %v1423_v41 = vadd.f32 %v1419_v19, %v1403_v35 }
 0x488   : > { %v1471_v55 = vmul.f32 %v1467_v54, %v1453_v36  ;;  %v1269_v18 = vsel %vm913_vm14, %v1265_v27, %v3136_v12  ;;  %v1354_v16 = vrot.slane %v1266_v42, 7  ;;  %v1361_v5 = vperm.slane %v1351_v58, 5 }
 0x489   : > { %v1432_v60 = vperm.slane %v1427_v24, 1  ;;  %v1287_v59 = vmul.f32 %v3109_v57, %v3635_v2  ;;  %v1538_v11 = vadd.f32 %v1534_v17, %v1506_v15  ;;  %v1433_v47 = vperm.slane %v1427_v24, 5 }
 0x48a   : > { %v1520_v0 = vperm.slane %v1511_v37, 1  ;;  %v1521_v29 = vperm.slane %v1511_v37, 5  ;;  %v1499_v9 = vmul.f32 %v1495_v1, %v1483_v45  ;;  %v1227_v4 = vmul.f32 %v3231_v44, %v3630_v7 }
 0x48b   : > { %v1355_v62 = vrot.slane %v1269_v18, 7  ;;  %v1368_v35 = vperm.slane %v1360_v48, 1  ;;  %v1447_v36 = vadd.f32 %v3188_v21, %v1423_v41  ;;  %v1475_v12 = vmul.f32 %v2913_v14, %v1471_v55  ;;  %v1275_v21 = vpop.permute.xlu0 %1274 }
 0x48c   : > { %v1514_v27 = vrot.slane %v1266_v42, 1  ;;  %v1515_v58 = vrot.slane %v1269_v18, 1  ;;  %v1369_v56 = vperm.slane %v1361_v5, 1  ;;  %v1440_v54 = vperm.slane %v1432_v60, 1  ;;  %v3271_v5 = vpop.permute.xlu1 %1542 }
 0x48d   : > { %v1372_v19 = vmul.f32 %v1368_v35, %v1354_v16  ;;  %v1296_v6 = vperm.slane %v1287_v59, 1  ;;  %v3260_v17 = vadd.f32 %v1594_v26, %v1538_v11  ;;  %v1441_v24 = vperm.slane %v1433_v47, 1 }
 0x48e   : > { %v1528_v15 = vperm.slane %v1520_v0, 1  ;;  %v1529_v45 = vperm.slane %v1521_v29, 1  ;;  %v1503_v37 = vmul.f32 %v2913_v14, %v1499_v9  ;;  %v1373_v1 = vmul.f32 %v1369_v56, %v1355_v62  ;;  %v3639_v62 = vld [vmem:[#allocation31_spill] sm:$0xff]  ;;  %v2125_v56 = vld [vmem:[%s2525_s28 + $0x30] sm:$0xff] }
 0x48f   : > { %v3263_v44 = vmul.f32 %v1440_v54, %v1266_v42  ;;  %v1297_v48 = vperm.slane %v1287_v59, 5  ;;  %v1479_v41 = vadd.f32 %v1475_v12, %v1447_v36  ;;  %v3265_v55 = vmul.f32 %v1441_v24, %v1269_v18  ;;  %v3638_v18 = vld [vmem:[#allocation32_spill] sm:$0xff]  ;;  %v3296_v54 = vld [vmem:[%s2525_s28 + $0x38] sm:$0xff] }
 0x490   : > { %v3267_v23 = vmul.f32 %v1528_v15, %v1514_v27  ;;  %v3269_v16 = vmul.f32 %v1529_v45, %v1515_v58  ;;  %v3274_v26 = vmul.f32 %v2925_v28, %v1372_v19  ;;  %v1304_v60 = vperm.slane %v1296_v6, 1 }
 0x491   : > { %v1324_v11 = vperm.slane %v2862_v51, 1  ;;  %v1325_v42 = vperm.slane %v2862_v51, 5  ;;  %v1236_v59 = vperm.slane %v1227_v4, 0  ;;  %v1237_v47 = vperm.slane %v1227_v4, 4 }
 0x492   : > { %3636 = vst [vmem:[#allocation21_spill] sm:$0xff] %v3267_v23  ;;  %v3281_v0 = vsel %vm926_vm5, %v1275_v21, %v3638_v18  ;;  %v3286_v29 = vsel %vm926_vm5, %v3167_v34, %v1275_v21  ;;  %v1305_v9 = vperm.slane %v1297_v48, 1  ;;  %v1383_v6 = vmul.f32 %v3109_v57, %v3639_v62  ;;  %v3642_v23 = vld [vmem:[#allocation40_spill] sm:$0xff] }
 0x493   : > { %3637 = vst [vmem:[#allocation24_spill] sm:$0xff] %v3269_v16  ;;  %v1290_v35 = vrot.slane %v3286_v29, 7  ;;  %v1291_v36 = vrot.slane %v3281_v0, 7  ;;  %v1408_v4 = vperm.slane %v2965_v3, 1  ;;  %v1409_v12 = vperm.slane %v2965_v3, 5 }
 0x494   : > { %v1244_v27 = vperm.slane %v1236_v59, 0  ;;  %v1245_v58 = vperm.slane %v1237_v47, 0  ;;  %v1320_v19 = vrot.slane %v2125_v56, 7  ;;  %v1321_v34 = vrot.slane %v3296_v54, 7 }
 0x495   : > { %v1332_v24 = vperm.slane %v1324_v11, 1  ;;  %v1333_v15 = vperm.slane %v1325_v42, 1  ;;  %v3640_v45 = vrot.slane %v2850_v40, 1  ;;  %v3641_v21 = vrot.slane %v2817_v25, 1 }
 0x496   : > { %v1308_v7 = vmul.f32 %v1304_v60, %v1290_v35  ;;  %v1309_v16 = vmul.f32 %v1305_v9, %v1291_v36  ;;  %v3304_v3 = vmul.f32 %v2925_v28, %v1373_v1  ;;  %v1388_v59 = vperm.slane %v1383_v6, 1  ;;  %v3314_v35 = vpop.permute.xlu1 %1556 }
 0x497   : > { %v1248_v48 = vmul.f32 %v1244_v27, %v3640_v45  ;;  %v1249_v18 = vmul.f32 %v1245_v58, %v3641_v21  ;;  %v1389_v47 = vperm.slane %v1383_v6, 5  ;;  %v1451_v51 = vmul.f32 %v3109_v57, %v3642_v23 }
 0x498   : > { %v1507_v61 = vadd.f32 %v1503_v37, %v1479_v41  ;;  %v1416_v62 = vperm.slane %v1408_v4, 1  ;;  %v1417_v11 = vperm.slane %v1409_v12, 1  ;;  %v1484_v42 = vrot.slane %v2125_v56, 1 }
 0x499   : > { %v1336_v2 = vmul.f32 %v1332_v24, %v1320_v19  ;;  %v1337_v40 = vmul.f32 %v1333_v15, %v1321_v34  ;;  %v1485_v27 = vrot.slane %v3296_v54, 1  ;;  %v1488_v25 = vperm.slane %v3028_v53, 1  ;;  %v3337_v15 = vld [vmem:[%s2525_s28 + $0x40] sm:$0xff] }
 0x49a   : > { %v1252_v60 = vmul.f32 %v2913_v14, %v1248_v48  ;;  %v1253_v1 = vmul.f32 %v2913_v14, %v1249_v18  ;;  %v1312_v9 = vmul.f32 %v2925_v28, %v1308_v7  ;;  %v1313_v6 = vmul.f32 %v2925_v28, %v1309_v16 }
 0x49b   : > { %v1396_v57 = vperm.slane %v1388_v59, 1  ;;  %v1397_v37 = vperm.slane %v1389_v47, 1  ;;  %v1460_v41 = vperm.slane %v1451_v51, 1  ;;  %v1461_v36 = vperm.slane %v1451_v51, 5 }
 0x49c   : > { %v3316_v4 = vmul.f32 %v2125_v56, %v1416_v62  ;;  %v3319_v12 = vmul.f32 %v3296_v54, %v1417_v11  ;;  %v1256_v58 = vadd.f32 %v1252_v60, %v3203_v39  ;;  %v1257_v19 = vadd.f32 %v1253_v1, %v3159_v20 }
 0x49d   : > { %v1489_v7 = vperm.slane %v3028_v53, 5  ;;  %v3328_v16 = vsel %vm926_vm5, %v3162_v43, %v3314_v35  ;;  %v3331_v34 = vrot.slane %v2832_v30, 6  ;;  %v1606_v51 = vperm.slane %v2835_v32, 2 }
 0x49e   : > { %v1496_v62 = vperm.slane %v1488_v25, 1  ;;  %v1316_v56 = vadd.f32 %v1312_v9, %v1256_v58  ;;  %v1317_v24 = vadd.f32 %v1313_v6, %v1257_v19  ;;  %v1579_v39 = vperm.slane %v3195_v8, 6 }
 0x49f   : > { %v1340_v20 = vmul.f32 %v2925_v28, %v1336_v2  ;;  %v1602_v45 = vrot.slane %v3337_v15, 7  ;;  %v1614_v48 = vperm.slane %v1606_v51, 2  ;;  %v1634_v43 = vmul.f32 %v3331_v34, %v3618_v38  ;;  %v1545_v38 = vpop.permute.xlu0 %1544 }
 0x4a0   : > { %v1341_v30 = vmul.f32 %v2925_v28, %v1337_v40  ;;  %v1454_v21 = vrot.slane %v3286_v29, 1  ;;  %v1455_v18 = vrot.slane %v3281_v0, 1  ;;  %v1573_v59 = vrot.slane %v3328_v16, 7 }
 0x4a1   : > { %v1468_v47 = vperm.slane %v1460_v41, 1  ;;  %v1469_v8 = vperm.slane %v1461_v36, 1  ;;  %v3346_v11 = vperm.slane %v1489_v7, 1  ;;  %v1671_v2 = vperm.slane %v3215_v31, 6 }
 0x4a2   : > { %v3349_v25 = vmul.f32 %v1496_v62, %v1484_v42  ;;  %v1344_v60 = vadd.f32 %v1340_v20, %v1316_v56  ;;  %v1345_v1 = vadd.f32 %v1341_v30, %v1317_v24  ;;  %v1587_v9 = vperm.slane %v1579_v39, 2  ;;  %v3368_v56 = vpop.permute.xlu1 %1546 }
 0x4a3   : > { %v1400_v40 = vmul.f32 %v1396_v57, %v3286_v29  ;;  %v1743_v6 = vperm.slane %v3200_v49, 6  ;;  %v1618_v58 = vmul.f32 %v1614_v48, %v1602_v45  ;;  %v1642_v19 = vperm.slane %v1634_v43, 2 }
 0x4a4   : > { %v1401_v51 = vmul.f32 %v1397_v37, %v3281_v0  ;;  %v3354_v41 = vmul.f32 %v1468_v47, %v1454_v21  ;;  %v3356_v36 = vmul.f32 %v1469_v8, %v1455_v18  ;;  %v1591_v7 = vmul.f32 %v1587_v9, %v1573_v59 }
 0x4a5   : > { %v1539_v31 = vadd.f32 %v3223_v50, %v1507_v61  ;;  %v1679_v42 = vperm.slane %v1671_v2, 2  ;;  %v1737_v62 = vrot.slane %v3328_v16, 1  ;;  %v1552_v29 = vsel %vm913_vm14, %v3271_v5, %v1545_v38 }
 0x4a6   : > { %v1380_v49 = vadd.f32 %v3274_v26, %v1344_v60  ;;  %v1381_v57 = vadd.f32 %v3304_v3, %v1345_v1  ;;  %v1690_v0 = vperm.slane %v2962_v13, 2  ;;  %v1710_v37 = vmul.f32 %v3331_v34, %v3619_v63  ;;  %v2128_v3 = vld [vmem:[%s2525_s28 + $0x48] sm:$0xff] }
 0x4a7   : > { %v1751_v61 = vperm.slane %v1743_v6, 2  ;;  %v1650_v50 = vperm.slane %v1642_v19, 2  ;;  %v1622_v24 = vmul.f32 %v2925_v28, %v1618_v58  ;;  %v1636_v39 = vrot.slane %v1552_v29, 7 }
 0x4a8   : > { %v1595_v20 = vmul.f32 %v2925_v28, %v1591_v7  ;;  %v1770_v45 = vperm.slane %v3016_v46, 2  ;;  %v1794_v26 = vmul.f32 %v3331_v34, %v3025_v33  ;;  %v1603_v48 = vrot.slane %v2128_v3, 7 }
 0x4a9   : > { %v1626_v30 = vadd.f32 %v1622_v24, %v3260_v17  ;;  %v1654_v21 = vmul.f32 %v1650_v50, %v1636_v39  ;;  %v3380_v63 = vsel %vm913_vm14, %v1545_v38, %v3368_v56  ;;  %v1607_v18 = vperm.slane %v2835_v32, 6 }
 0x4aa   : > { %v1404_v59 = vadd.f32 %v1400_v40, %v1380_v49  ;;  %v1405_v47 = vadd.f32 %v1401_v51, %v1381_v57  ;;  %v1698_v8 = vperm.slane %v1690_v0, 2  ;;  %v1714_v2 = vperm.slane %v1710_v37, 2 }
 0x4ab   : > { %v1658_v60 = vmul.f32 %v2925_v28, %v1654_v21  ;;  %v1615_v1 = vperm.slane %v1607_v18, 2  ;;  %v1637_v33 = vrot.slane %v3380_v63, 7  ;;  %v1643_v9 = vperm.slane %v1634_v43, 6 }
 0x4ac   : > { %v1599_v6 = vadd.f32 %v1595_v20, %v1539_v31  ;;  %v1766_v17 = vrot.slane %v3337_v15, 1  ;;  %v1778_v58 = vperm.slane %v1770_v45, 2  ;;  %v1802_v19 = vperm.slane %v1794_v26, 2 }
 0x4ad   : > { %v1662_v7 = vadd.f32 %v1658_v60, %v1626_v30  ;;  %v1619_v38 = vmul.f32 %v1615_v1, %v1603_v48  ;;  %v1651_v50 = vperm.slane %v1643_v9, 2  ;;  %v1691_v32 = vperm.slane %v2962_v13, 6 }
 0x4ae   : > { %v1424_v40 = vadd.f32 %v3316_v4, %v1404_v59  ;;  %v1702_v51 = vmul.f32 %v3337_v15, %v1698_v8  ;;  %v1722_v49 = vperm.slane %v1714_v2, 2  ;;  %v1796_v57 = vrot.slane %v1552_v29, 1 }
 0x4af   : > { %v1686_v0 = vadd.f32 %v3246_v10, %v1662_v7  ;;  %v1623_v43 = vmul.f32 %v2925_v28, %v1619_v38  ;;  %v1655_v31 = vmul.f32 %v1651_v50, %v1637_v33  ;;  %v1771_v24 = vperm.slane %v3016_v46, 6  ;;  %v1559_v7 = vpop.permute.xlu0 %1558 }
 0x4b0   : > { %v1782_v39 = vmul.f32 %v1778_v58, %v1766_v17  ;;  %v1810_v20 = vperm.slane %v1802_v19, 2  ;;  %v1726_v45 = vmul.f32 %v1722_v49, %v1552_v29  ;;  %v1715_v48 = vperm.slane %v1710_v37, 6 }
 0x4b1   : > { %v1706_v30 = vadd.f32 %v1702_v51, %v1686_v0  ;;  %v1627_v21 = vadd.f32 %v1623_v43, %v1599_v6  ;;  %v1659_v13 = vmul.f32 %v2925_v28, %v1655_v31  ;;  %v1699_v4 = vperm.slane %v1691_v32, 2  ;;  %v3644_v51 = vld [vmem:[#allocation31_spill] sm:$0xff] }
 0x4b2   : > { %v1425_v15 = vadd.f32 %v3319_v12, %v1405_v47  ;;  %v1683_v18 = vmul.f32 %v1679_v42, %v3328_v16  ;;  %v1814_v59 = vmul.f32 %v1810_v20, %v1796_v57  ;;  %v1803_v10 = vperm.slane %v1794_v26, 6  ;;  %v3643_v47 = vld [vmem:[#allocation23_spill] sm:$0xff] }
 0x4b3   : > { %v1730_v8 = vadd.f32 %v1726_v45, %v1706_v30  ;;  %v1767_v2 = vrot.slane %v2128_v3, 1  ;;  %v1663_v60 = vadd.f32 %v1659_v13, %v1627_v21  ;;  %v1779_v1 = vperm.slane %v1771_v24, 2  ;;  %v3645_v0 = vld [vmem:[#allocation27_spill] sm:$0xff]  ;;  %v3646_v21 = vld [vmem:[#allocation26_spill] sm:$0xff] }
 0x4b4   : > { %v1448_v46 = vadd.f32 %v3263_v44, %v1424_v40  ;;  %v1755_v33 = vmul.f32 %v1751_v61, %v1737_v62  ;;  %v1786_v29 = vmul.f32 %v2913_v14, %v1782_v39  ;;  %v1797_v37 = vrot.slane %v3380_v63, 1 }
 0x4b5   : > { %v1762_v9 = vadd.f32 %v3249_v22, %v1730_v8  ;;  %v1687_v6 = vadd.f32 %v1683_v18, %v1663_v60  ;;  %v1703_v17 = vmul.f32 %v2128_v3, %v1699_v4  ;;  %v1723_v12 = vperm.slane %v1715_v48, 2 }
 0x4b6   : > { %v1449_v16 = vadd.f32 %v3265_v55, %v1425_v15  ;;  %v1818_v42 = vmul.f32 %v2913_v14, %v1814_v59  ;;  %v1811_v26 = vperm.slane %v1803_v10, 2  ;;  %v1571_v58 = vmul.f32 %v3331_v34, %v3643_v47  ;;  %v3647_v10 = vld [vmem:[#allocation21_spill] sm:$0xff] }
 0x4b7   : > { %v1790_v19 = vadd.f32 %v1786_v29, %v1762_v9  ;;  %v1707_v44 = vadd.f32 %v1703_v17, %v1687_v6  ;;  %v1727_v62 = vmul.f32 %v1723_v12, %v3380_v63  ;;  %v1783_v61 = vmul.f32 %v1779_v1, %v1767_v2  ;;  %v3648_v2 = vld [vmem:[#allocation24_spill] sm:$0xff]  ;;  %v3445_v9 = vld [vmem:[%s2525_s28 + $0x50] sm:$0xff]  ;;  %v1549_v17 = vpop.permute.xlu0 %1548 }
 0x4b8   : > { %v1501_v22 = vmul.f32 %v3346_v11, %v1485_v27  ;;  %v1476_v55 = vmul.f32 %v2913_v14, %v3354_v41  ;;  %v1477_v3 = vmul.f32 %v2913_v14, %v3356_v36  ;;  %v1815_v38 = vmul.f32 %v1811_v26, %v1797_v37 }
 0x4b9   : > { %v1759_v50 = vmul.f32 %v2913_v14, %v1755_v33  ;;  %v1822_v32 = vadd.f32 %v1818_v42, %v1790_v19  ;;  %v1731_v40 = vadd.f32 %v1727_v62, %v1707_v44  ;;  %v1667_v63 = vmul.f32 %v3331_v34, %v3644_v51  ;;  %v3649_v62 = vld [vmem:[#allocation29_spill] sm:$0xff]  ;;  %v3651_v51 = vld [vmem:[#allocation28_spill] sm:$0xff] }
 0x4ba   : > { %v1480_v49 = vadd.f32 %v1476_v55, %v1448_v46  ;;  %v1481_v57 = vadd.f32 %v1477_v3, %v1449_v16  ;;  %v1580_v54 = vperm.slane %v1571_v58, 2  ;;  %v3417_v27 = vsel %vm926_vm5, %v3314_v35, %v1559_v7  ;;  %v3450_v16 = vld [vmem:[%s2525_s28 + $0x58] sm:$0xff] }
 0x4bb   : > { %v1763_v11 = vadd.f32 %v1759_v50, %v1731_v40  ;;  %v1787_v41 = vmul.f32 %v2913_v14, %v1783_v61  ;;  %v1735_v36 = vmul.f32 %v3331_v34, %v3642_v23  ;;  %v3425_v43 = vsel %vm926_vm5, %v1559_v7, %v3645_v0  ;;  %1826 = vst [vmem:[%s3429_s26] sm:$0xff] %v1822_v32  ;;  %v3650_v32 = vld [vmem:[#allocation35_spill] sm:$0xff] }
 0x4bc   : > { %v1504_v35 = vmul.f32 %v2913_v14, %v3349_v25  ;;  %v1505_v31 = vmul.f32 %v2913_v14, %v1501_v22  ;;  %v1819_v24 = vmul.f32 %v2913_v14, %v1815_v38  ;;  %v1581_v39 = vperm.slane %v1571_v58, 6 }
 0x4bd   : > { %v1791_v20 = vadd.f32 %v1787_v41, %v1763_v11  ;;  %v1672_v23 = vperm.slane %v1667_v63, 2  ;;  %v1673_v34 = vperm.slane %v1667_v63, 6  ;;  %v1574_v45 = vrot.slane %v3417_v27, 7 }
 0x4be   : > { %v1508_v48 = vadd.f32 %v1504_v35, %v1480_v49  ;;  %v1575_v30 = vrot.slane %v3425_v43, 7  ;;  %v1608_v13 = vperm.slane %v3646_v21, 2  ;;  %v1609_v4 = vperm.slane %v3646_v21, 6  ;;  %v3653_v21 = vld [vmem:[#allocation36_spill] sm:$0xff] }
 0x4bf   : > { %v1509_v25 = vadd.f32 %v1505_v31, %v1481_v57  ;;  %v1823_v15 = vadd.f32 %v1819_v24, %v1791_v20  ;;  %v1588_v18 = vperm.slane %v1580_v54, 2  ;;  %v1744_v59 = vperm.slane %v1735_v36, 2 }
 0x4c0   : > { %v1536_v8 = vmul.f32 %v2913_v14, %v3647_v10  ;;  %v1537_v60 = vmul.f32 %v2913_v14, %v3648_v2  ;;  %v1589_v1 = vperm.slane %v1581_v39, 2  ;;  %v1745_v46 = vperm.slane %v1735_v36, 6 }
 0x4c1   : > { %v1680_v33 = vperm.slane %v1672_v23, 2  ;;  %v1681_v29 = vperm.slane %v1673_v34, 2  ;;  %v1592_v37 = vmul.f32 %v1588_v18, %v1574_v45  ;;  %v1604_v6 = vrot.slane %v3445_v9, 7  ;;  %1827 = vst [vmem:[%s3429_s26 + $0x8] sm:$0xff] %v1823_v15  ;;  %v3652_v23 = vld [vmem:[#allocation37_spill] sm:$0xff] }
 0x4c2   : > { %v1593_v12 = vmul.f32 %v1589_v1, %v1575_v30  ;;  %v1605_v42 = vrot.slane %v3450_v16, 7  ;;  %v1616_v26 = vperm.slane %v1608_v13, 2  ;;  %v1617_v47 = vperm.slane %v1609_v4, 2 }
 0x4c3   : > { %v1752_v58 = vperm.slane %v1744_v59, 2  ;;  %v1540_v19 = vadd.f32 %v1536_v8, %v1508_v48  ;;  %v1541_v44 = vadd.f32 %v1537_v60, %v1509_v25  ;;  %v1631_v61 = vrot.slane %v3649_v62, 6 }
 0x4c4   : > { %v1753_v7 = vperm.slane %v1745_v46, 2  ;;  %v1684_v22 = vmul.f32 %v1680_v33, %v3417_v27  ;;  %v3458_v55 = vsel %vm913_vm14, %v3368_v56, %v1549_v17  ;;  %v3463_v3 = vsel %vm913_vm14, %v1549_v17, %v3271_v5 }
 0x4c5   : > { %v1596_v38 = vmul.f32 %v2925_v28, %v1592_v37  ;;  %v1685_v50 = vmul.f32 %v1681_v29, %v3425_v43  ;;  %v1692_v40 = vperm.slane %v3650_v32, 2  ;;  %v1635_v63 = vmul.f32 %v1631_v61, %v3651_v51 }
 0x4c6   : > { %v1597_v49 = vmul.f32 %v2925_v28, %v1593_v12  ;;  %v1620_v57 = vmul.f32 %v1616_v26, %v1604_v6  ;;  %v1621_v54 = vmul.f32 %v1617_v47, %v1605_v42  ;;  %v1693_v56 = vperm.slane %v3650_v32, 6 }
 0x4c7   : > { %v1638_v11 = vrot.slane %v3458_v55, 7  ;;  %v1639_v52 = vrot.slane %v3463_v3, 7  ;;  %v1644_v5 = vperm.slane %v1635_v63, 2  ;;  %v1645_v41 = vperm.slane %v1635_v63, 6 }
 0x4c8   : > { %v1600_v36 = vadd.f32 %v1596_v38, %v1540_v19  ;;  %v1601_v0 = vadd.f32 %v1597_v49, %v1541_v44  ;;  %v1738_v35 = vrot.slane %v3417_v27, 1  ;;  %v1739_v31 = vrot.slane %v3425_v43, 1 }
 0x4c9   : > { %v1772_v24 = vperm.slane %v3028_v53, 2  ;;  %v1652_v39 = vperm.slane %v1644_v5, 2  ;;  %v1653_v20 = vperm.slane %v1645_v41, 2  ;;  %v1711_v34 = vmul.f32 %v1631_v61, %v3652_v23 }
 0x4ca   : > { %v1773_v45 = vperm.slane %v3028_v53, 6  ;;  %v1624_v48 = vmul.f32 %v2925_v28, %v1620_v57  ;;  %v1625_v30 = vmul.f32 %v2925_v28, %v1621_v54  ;;  %v1795_v13 = vmul.f32 %v1631_v61, %v3653_v21 }
 0x4cb   : > { %v1700_v4 = vperm.slane %v1692_v40, 2  ;;  %v1701_v25 = vperm.slane %v1693_v56, 2  ;;  %v1656_v15 = vmul.f32 %v1652_v39, %v1638_v11  ;;  %v1657_v27 = vmul.f32 %v1653_v20, %v1639_v52 }
 0x4cc   : > { %v1768_v43 = vrot.slane %v3445_v9, 1  ;;  %v1769_v18 = vrot.slane %v3450_v16, 1  ;;  %v1628_v59 = vadd.f32 %v1624_v48, %v1600_v36  ;;  %v1629_v10 = vadd.f32 %v1625_v30, %v1601_v0 }
 0x4cd   : > { %v1660_v8 = vmul.f32 %v2925_v28, %v1656_v15  ;;  %v1661_v53 = vmul.f32 %v2925_v28, %v1657_v27  ;;  %v1716_v2 = vperm.slane %v1711_v34, 2  ;;  %v1717_v60 = vperm.slane %v1711_v34, 6 }
 0x4ce   : > { %v1780_v1 = vperm.slane %v1772_v24, 2  ;;  %v1781_v46 = vperm.slane %v1773_v45, 2  ;;  %v1804_v33 = vperm.slane %v1795_v13, 2  ;;  %v1805_v29 = vperm.slane %v1795_v13, 6 }
 0x4cf   : > { %v1756_v37 = vmul.f32 %v1752_v58, %v1738_v35  ;;  %v1757_v6 = vmul.f32 %v1753_v7, %v1739_v31  ;;  %v1664_v17 = vadd.f32 %v1660_v8, %v1628_v59  ;;  %v1665_v12 = vadd.f32 %v1661_v53, %v1629_v10 }
 0x4d0   : > { %v1704_v42 = vmul.f32 %v3445_v9, %v1700_v4  ;;  %v1705_v26 = vmul.f32 %v3450_v16, %v1701_v25  ;;  %v1798_v47 = vrot.slane %v3458_v55, 1  ;;  %v1799_v19 = vrot.slane %v3463_v3, 1 }
 0x4d1   : > { %v1688_v28 = vadd.f32 %v1684_v22, %v1664_v17  ;;  %v1689_v44 = vadd.f32 %v1685_v50, %v1665_v12  ;;  %v1724_v62 = vperm.slane %v1716_v2, 2  ;;  %v1725_v61 = vperm.slane %v1717_v60, 2 }
 0x4d2   : > { %v1784_v38 = vmul.f32 %v1780_v1, %v1768_v43  ;;  %v1785_v32 = vmul.f32 %v1781_v46, %v1769_v18  ;;  %v1812_v40 = vperm.slane %v1804_v33, 2  ;;  %v1813_v58 = vperm.slane %v1805_v29, 2 }
 0x4d3   : > { %v1708_v7 = vadd.f32 %v1704_v42, %v1688_v28  ;;  %v1709_v51 = vadd.f32 %v1705_v26, %v1689_v44  ;;  %v1728_v63 = vmul.f32 %v1724_v62, %v3458_v55  ;;  %v1729_v9 = vmul.f32 %v1725_v61, %v3463_v3 }
 0x4d4   : > { %v1760_v16 = vmul.f32 %v2913_v14, %v1756_v37  ;;  %v1761_v49 = vmul.f32 %v2913_v14, %v1757_v6  ;;  %v1816_v57 = vmul.f32 %v1812_v40, %v1798_v47  ;;  %v1817_v54 = vmul.f32 %v1813_v58, %v1799_v19 }
 0x4d5   : > { %v1732_v22 = vadd.f32 %v1728_v63, %v1708_v7  ;;  %v1733_v50 = vadd.f32 %v1729_v9, %v1709_v51  ;;  %v1788_v3 = vmul.f32 %v2913_v14, %v1784_v38  ;;  %v1789_v11 = vmul.f32 %v2913_v14, %v1785_v32 }
 0x4d6   : > { %v1820_v41 = vmul.f32 %v2913_v14, %v1816_v57  ;;  %v1821_v36 = vmul.f32 %v2913_v14, %v1817_v54 }
 0x4d7   : > { %v1764_v56 = vadd.f32 %v1760_v16, %v1732_v22  ;;  %v1765_v55 = vadd.f32 %v1761_v49, %v1733_v50 }
 0x4d9   : > { %v1792_v52 = vadd.f32 %v1788_v3, %v1764_v56  ;;  %v1793_v5 = vadd.f32 %v1789_v11, %v1765_v55 }
 0x4db   : > { %v1824_v0 = vadd.f32 %v1820_v41, %v1792_v52  ;;  %v1825_v35 = vadd.f32 %v1821_v36, %v1793_v5 }
 0x4dd   : > { %1828 = vst [vmem:[%s3429_s26 + $0x10] sm:$0xff] %v1824_v0 }
 0x4de   : > { %1829 = vst [vmem:[%s3429_s26 + $0x18] sm:$0xff] %v1825_v35 }
 0x4df   : > { %2278 = shalt.err (!%p2275_p5)
}
 0x4e0   : > { %2021 = dma.vmem_to_hbm [thread:$0]  (%p2454_p0), %s1845_s25, 512, %s1847_s11, %s1831_s23  }
 0x4e1 PF: > { %s1858_s16 = sand.u32 1, %s2321_s18   ;;  %p3654_p10 = scmp.ge.s32.totalorder %s2333_s21, 2 }
 0x4e2   : > { %s1859_s14 = scalar_lea.sflag [#allocation4], %s1858_s16 }
 0x4e3   : > { %p2041_p11 = pnand %p3654_p10, %p2462_p6 }
 0x4e5   : > { %p2042_p12 = pneg %p2041_p11 }
 0x4e7   : > { %2316 = dma.done.wait (%p2042_p12), %s1859_s14, 512  }
 0x4e8   : > { %2318 = vsyncadd (%p2042_p12), %s1859_s14, 4294966784  ;;  %s3655_s4 = sld [smem:[#allocation19_spill]]  ;;  %p23_p2 = scmp.ge.s32.totalorder %s2430_s15, 4  }
 0x4e9   : > { %s3656_s20 = sld [smem:[#allocation20_spill]]  ;;  %s3657_s18 = smov %s2325_s19 }
 0x4ea   : > { %s3659_s21 = smov %s2430_s15  ;;  %25 = sbr.rel (!%p23_p2) target bundleno = 13 (0xd), region = 119 }
 0x4ee   : > { %s3658_s19 = smov %s3655_s4 }
 0x4ef   :  { %1865 = vsyncpa [#allocation3], 1 }
 0x4f0   :  { %1867 = vsyncpa [#allocation3 + $0x1], 1 }
 0x4f1   :  { %1868 = vsyncpa [#allocation7], 1 }
 0x4f2   :  { %1870 = vsyncpa [#allocation7 + $0x1], 1 }
 0x4f3   :  { %1871 = vsyncpa [#allocation4], 1 }
 0x4f4   :  { %1873 = vsyncpa [#allocation4 + $0x1], 1 }
 0x4f5   :  { %1874 = vsyncpa [#allocation5], 1 }
 0x4f6   :  { %1876 = vsyncpa [#allocation5 + $0x1], 1 }
 0x4f7   :  { %1877 = vsyncpa [#allocation10], 1 }

</bundles_post_ra>
